<compile_context>
chip_gen: v7x
topology: tpu7x:2x2x1
jax: 0.10.0
libtpu: 0.0.40
codegen_flags: <defaults>
</compile_context>

<pallas_src>
import math

import jax
import jax.numpy as jnp
from jax.experimental import pallas as pl
from jax.experimental.pallas import tpu as pltpu

F_IN = 32      # args.in_feats  == decoder d_model
F_OUT = 16     # args.out_feats == TopK k == decoder sequence length
N_NODES = 64
T_STEPS = 3
D_FF = 2048    # FeedForward default
NORM_EPS = 1e-6


# ------------------------------------------------------------------ fused kernel
def _grcu_fused_kernel(
    a_ref, x_ref, mask_ref,                       # streamed per timestep
    w0t_ref, scorer_ref,                          # evolve-cell params (VMEM resident)
    nalpha_ref, nbias_ref,
    a1w_ref, a1b_ref, a2w_ref, a2b_ref,
    ff1w_ref, ff1b_ref, ff2w_ref, ff2b_ref,
    out_ref,                                      # per-timestep GCN output
    wt_ref,                                       # VMEM scratch: W^T carried across t
):
    t = pl.program_id(0)

    @pl.when(t == 0)
    def _init():
        wt_ref[...] = w0t_ref[...]                # GCN_init_weights^T

    X = x_ref[...]                                # (N, F_in)
    A = a_ref[...]                                # (N, N)

    # ---------------- TopK: scores stay in vregs, never stored -----------------
    scorer = scorer_ref[...]                                                 # (1, F_in)
    inv_nrm = 1.0 / jnp.sqrt(jnp.sum(scorer * scorer, axis=-1, keepdims=True))
    sc = jnp.sum(X * scorer, axis=-1, keepdims=True) * inv_nrm + mask_ref[...]  # (N,1)

    n = X.shape[0]
    row_n = jax.lax.broadcasted_iota(jnp.int32, (n, 1), 0).astype(jnp.float32)
    col_kn = jax.lax.broadcasted_iota(jnp.int32, (F_OUT, n), 1).astype(jnp.float32)
    row_kn = jax.lax.broadcasted_iota(jnp.int32, (F_OUT, n), 0).astype(jnp.float32)
    row_k1 = jax.lax.broadcasted_iota(jnp.int32, (F_OUT, 1), 0).astype(jnp.float32)

    H = jnp.zeros((F_OUT, n), jnp.float32)        # one-hot row-gather matrix
    vals = jnp.zeros((F_OUT, 1), jnp.float32)     # selected scores (incl. mask)
    for i in range(F_OUT):                        # k=16 static iterations (VPU/XLU only)
        m = jnp.max(sc, axis=0, keepdims=True)                                   # (1,1)
        idx = jnp.min(jnp.where(sc == m, row_n, float(n)), axis=0, keepdims=True)
        H = jnp.where((row_kn == float(i)) & (col_kn == idx), 1.0, H)
        vals = jnp.where(row_k1 == float(i), m, vals)
        sc = jnp.where(row_n == idx, -jnp.inf, sc)
    # TODO(synk): pad_with_last_val fallback for fewer than k finite scores is not
    #             implemented (mask contains no -inf in this script, so it never triggers).

    # gather selected rows via one-hot matmul (MXU) and scale by tanh(score)
    e_out = jnp.dot(H, X, preferred_element_type=jnp.float32) * jnp.tanh(vals)  # (k, F_in)

    # ---------------- DecoderLayer on x = W^T (seq = F_out tokens, d = F_in) ----
    x = wt_ref[...]                               # (F_out, F_in) == prev_Q.T
    d = x.shape[-1]
    inv_sqrt_dk = 1.0 / math.sqrt(d)

    def norm(v, i):
        a = nalpha_ref[i]                         # (1, F_in)
        b = nbias_ref[i]
        mu = jnp.mean(v, axis=-1, keepdims=True)
        c = v - mu
        std = jnp.sqrt(jnp.sum(c * c, axis=-1, keepdims=True) * (1.0 / (d - 1)))
        return a * c / (std + NORM_EPS) + b       # torch.std is unbiased (/(D-1))

    def mha(xq, xkv, w_ref, b_ref):               # heads=1, bs=1 -> pure 2-D path
        q = jnp.dot(xq, w_ref[0], preferred_element_type=jnp.float32) + b_ref[0]
        k = jnp.dot(xkv, w_ref[1], preferred_element_type=jnp.float32) + b_ref[1]
        v = jnp.dot(xkv, w_ref[2], preferred_element_type=jnp.float32) + b_ref[2]
        s = jnp.dot(q, k.T, preferred_element_type=jnp.float32) * inv_sqrt_dk
        s = s - jnp.max(s, axis=-1, keepdims=True)
        e = jnp.exp(s)
        p = e * pl.reciprocal(jnp.sum(e, axis=-1, keepdims=True), approx=True)
        o = jnp.dot(p, v, preferred_element_type=jnp.float32)
        return jnp.dot(o, w_ref[3], preferred_element_type=jnp.float32) + b_ref[3]

    x2 = norm(x, 0)
    x = x + mha(x2, x2, a1w_ref, a1b_ref)         # dropout_1 == identity (eval)
    x2 = norm(x, 1)
    x = x + mha(x2, e_out, a2w_ref, a2b_ref)      # dropout_2 == identity (eval)
    x2 = norm(x, 2)
    h = jnp.maximum(
        jnp.dot(x2, ff1w_ref[...], preferred_element_type=jnp.float32) + ff1b_ref[...],
        0.0)
    x = x + jnp.dot(h, ff2w_ref[...], preferred_element_type=jnp.float32) + ff2b_ref[...]
    # dropout_3 (and FF-internal dropout) == identity (eval)

    wt_ref[...] = x                               # carry evolved W^T to the next step

    # ---------------- GCN for this timestep: relu(Ahat @ (X @ W)) ---------------
    xw = jnp.dot(X, x.T, preferred_element_type=jnp.float32)          # (N, F_out)
    out_ref[...] = jnp.maximum(
        jnp.dot(A, xw, preferred_element_type=jnp.float32), 0.0)      # activation = ReLU


# ------------------------------------------------------------------ wrapper
def _pack_params(p):
    stack_w = lambda d: jnp.stack([d[n]["w"] for n in ("q", "k", "v", "o")])
    stack_b = lambda d: jnp.stack([d[n]["b"] for n in ("q", "k", "v", "o")])[:, None]
    return dict(
        w0t=p["gcn_w"].T,                                    # (F_out, F_in)
        scorer=p["scorer"].reshape(1, F_IN),                 # (1, F_in)
        nalpha=jnp.stack([p["norm1"]["alpha"], p["norm2"]["alpha"],
                          p["norm3"]["alpha"]])[:, None],    # (3, 1, F_in)
        nbias=jnp.stack([p["norm1"]["bias"], p["norm2"]["bias"],
                         p["norm3"]["bias"]])[:, None],      # (3, 1, F_in)
        a1w=stack_w(p["attn1"]), a1b=stack_b(p["attn1"]),    # (4,F_in,F_in), (4,1,F_in)
        a2w=stack_w(p["attn2"]), a2b=stack_b(p["attn2"]),
        ff1w=p["ff1"]["w"], ff1b=p["ff1"]["b"].reshape(1, D_FF),
        ff2w=p["ff2"]["w"], ff2b=p["ff2"]["b"].reshape(1, F_IN),
    )


def grcu_forward(params, A_stack, X_stack, mask_stack):
    """Fused GRCU forward: one pallas_call, grid=(T,), recurrent W^T resident in VMEM."""
    T, N, _ = A_stack.shape
    w = _pack_params(params)

    def tspec(*tail):      # streamed over the time axis
        return pl.BlockSpec((None,) + tail, lambda t: (t,) + (0,) * len(tail))

    def cspec(shape):      # time-invariant: DMA'd once, stays resident in VMEM
        zeros = (0,) * len(shape)
        return pl.BlockSpec(shape, lambda t, _z=zeros: _z)

    in_specs = [
        tspec(N, N),                                         # A_t
        tspec(N, F_IN),                                      # X_t
        tspec(N, 1),                                         # mask_t
        cspec((F_OUT, F_IN)),                                # W0^T
        cspec((1, F_IN)),                                    # TopK scorer
        cspec((3, 1, F_IN)), cspec((3, 1, F_IN)),            # norm alpha / bias
        cspec((4, F_IN, F_IN)), cspec((4, 1, F_IN)),         # attn1 [q,k,v,o] w / b
        cspec((4, F_IN, F_IN)), cspec((4, 1, F_IN)),         # attn2 [q,k,v,o] w / b
        cspec((F_IN, D_FF)), cspec((1, D_FF)),               # ff1 w / b
        cspec((D_FF, F_IN)), cspec((1, F_IN)),               # ff2 w / b
    ]

    fused = pl.pallas_call(
        _grcu_fused_kernel,
        grid=(T,),
        in_specs=in_specs,
        out_specs=pl.BlockSpec((None, N, F_OUT), lambda t: (t, 0, 0)),
        out_shape=jax.ShapeDtypeStruct((T, N, F_OUT), jnp.float32),
        scratch_shapes=[pltpu.VMEM((F_OUT, F_IN), jnp.float32)],
        compiler_params=pltpu.CompilerParams(
            dimension_semantics=("arbitrary",)),             # recurrent in t: sequential
    )
    return fused(A_stack, X_stack, mask_stack,
                 w["w0t"], w["scorer"], w["nalpha"], w["nbias"],
                 w["a1w"], w["a1b"], w["a2w"], w["a2b"],
                 w["ff1w"], w["ff1b"], w["ff2w"], w["ff2b"])


# ------------------------------------------------------------------ pure-JAX reference
_HP = jax.lax.Precision.HIGHEST


def _ref_norm(x, a, b):
    mu = jnp.mean(x, axis=-1, keepdims=True)
    c = x - mu
    std = jnp.sqrt(jnp.sum(c * c, axis=-1, keepdims=True) / (x.shape[-1] - 1))
    return a * c / (std + NORM_EPS) + b


def _ref_linear(p, x):
    return jnp.dot(x, p["w"], precision=_HP) + p["b"]


def _ref_mha(p, q, k, v):
    q = _ref_linear(p["q"], q)
    k = _ref_linear(p["k"], k)
    v = _ref_linear(p["v"], v)
    s = jnp.dot(q, k.T, precision=_HP) / math.sqrt(q.shape[-1])
    s = jax.nn.softmax(s, axis=-1)
    return _ref_linear(p["o"], jnp.dot(s, v, precision=_HP))


def _ref_decoder(params, x, e):
    x2 = _ref_norm(x, params["norm1"]["alpha"], params["norm1"]["bias"])
    x = x + _ref_mha(params["attn1"], x2, x2, x2)
    x2 = _ref_norm(x, params["norm2"]["alpha"], params["norm2"]["bias"])
    x = x + _ref_mha(params["attn2"], x2, e, e)
    x2 = _ref_norm(x, params["norm3"]["alpha"], params["norm3"]["bias"])
    h = jax.nn.relu(_ref_linear(params["ff1"], x2))
    return x + _ref_linear(params["ff2"], h)


def _ref_topk(scorer, X, mask):
    scores = jnp.dot(X, scorer, precision=_HP) / jnp.linalg.norm(scorer) + mask
    vals, idx = jax.lax.top_k(scores.reshape(-1), F_OUT)
    return X[idx] * jnp.tanh(vals)[:, None]       # == z_topk.T, the decoder e_output


def grcu_forward_ref(params, A_stack, X_stack, M_stack):
    W = params["gcn_w"]
    outs = []
    for t in range(A_stack.shape[0]):
        e = _ref_topk(params["scorer"], X_stack[t], M_stack[t])
        W = _ref_decoder(params, W.T, e).T
        outs.append(jax.nn.relu(
            jnp.dot(A_stack[t], jnp.dot(X_stack[t], W, precision=_HP), precision=_HP)))
    return jnp.stack(outs)


# ------------------------------------------------------------------ params
def init_params(key):
    keys = list(jax.random.split(key, 64))
    it = iter(keys)

    def uni(shape, bound):
        return jax.random.uniform(next(it), shape, jnp.float32, -bound, bound)

    def linear_p(d_in, d_out):
        b = 1.0 / math.sqrt(d_in)
        return {"w": uni((d_in, d_out), b), "b": uni((d_out,), b)}

    def mha_p(d):
        return {"q": linear_p(d, d), "k": linear_p(d, d),
                "v": linear_p(d, d), "o": linear_p(d, d)}

    def norm_p(d):
        return {"alpha": jnp.ones((d,), jnp.float32),
                "bias": jnp.zeros((d,), jnp.float32)}

    return {
        "gcn_w": uni((F_IN, F_OUT), 1.0 / math.sqrt(F_OUT)),   # GCN_init_weights
        "scorer": uni((F_IN, 1), 1.0 / math.sqrt(F_IN)),       # TopK scorer
        "norm1": norm_p(F_IN), "norm2": norm_p(F_IN), "norm3": norm_p(F_IN),
        "attn1": mha_p(F_IN), "attn2": mha_p(F_IN),
        "ff1": linear_p(F_IN, D_FF), "ff2": linear_p(D_FF, F_IN),
    }


# ------------------------------------------------------------------ main
if __name__ == "__main__":
    key = jax.random.PRNGKey(0)
    kp, kdata = jax.random.split(key)
    params = init_params(kp)

    A_l, X_l, M_l = [], [], []
    for _ in range(T_STEPS):
        kdata, k1, k2 = jax.random.split(kdata, 3)
        A = jax.random.uniform(k1, (N_NODES, N_NODES), jnp.float32)
        A = A / jnp.sum(A, axis=-1, keepdims=True)   # row-normalized "Ahat"
        X = jax.random.normal(k2, (N_NODES, F_IN), jnp.float32)
        A_l.append(A)
        X_l.append(X)
        M_l.append(jnp.zeros((N_NODES, 1), jnp.float32))   # all nodes valid (no -inf)
    A_stack, X_stack, M_stack = jnp.stack(A_l), jnp.stack(X_l), jnp.stack(M_l)

    out = jax.jit(grcu_forward)(params, A_stack, X_stack, M_stack)
    out = jax.block_until_ready(out)
    assert out.shape == (T_STEPS, N_NODES, F_OUT)
    assert bool(jnp.all(jnp.isfinite(out)))

    ref = grcu_forward_ref(params, A_stack, X_stack, M_stack)
    assert bool(jnp.allclose(out, ref, rtol=2e-2, atol=2e-2)), (
        "max abs diff vs reference: %f" % float(jnp.max(jnp.abs(out - ref))))

    print("KERNEL_OK")
</pallas_src>

<mosaic_0001>
module attributes {stable_mosaic.version = 11 : i64} {
  func.func @_grcu_fused_kernel(%arg0: i32, %arg1: memref<1x64x64xf32, #tpu.memory_space<vmem>>, %arg2: memref<1x64x32xf32, #tpu.memory_space<vmem>>, %arg3: memref<1x64x1xf32, #tpu.memory_space<vmem>>, %arg4: memref<16x32xf32, #tpu.memory_space<vmem>>, %arg5: memref<1x32xf32, #tpu.memory_space<vmem>>, %arg6: memref<3x1x32xf32, #tpu.memory_space<vmem>>, %arg7: memref<3x1x32xf32, #tpu.memory_space<vmem>>, %arg8: memref<4x32x32xf32, #tpu.memory_space<vmem>>, %arg9: memref<4x1x32xf32, #tpu.memory_space<vmem>>, %arg10: memref<4x32x32xf32, #tpu.memory_space<vmem>>, %arg11: memref<4x1x32xf32, #tpu.memory_space<vmem>>, %arg12: memref<32x2048xf32, #tpu.memory_space<vmem>>, %arg13: memref<1x2048xf32, #tpu.memory_space<vmem>>, %arg14: memref<2048x32xf32, #tpu.memory_space<vmem>>, %arg15: memref<1x32xf32, #tpu.memory_space<vmem>>, %arg16: memref<1x64x16xf32, #tpu.memory_space<vmem>>, %arg17: memref<16x32xf32, #tpu.memory_space<vmem>>) attributes {dimension_semantics = [#tpu.dimension_semantics<arbitrary>], iteration_bounds = array<i64: 3>, scalar_prefetch = 0 : i64, scratch_operands = 1 : i64, tpu.core_type = #tpu.core_type<tc>, window_params = [{transform_indices = @transform_0, window_bounds = array<i64: 1, 64, 64>}, {transform_indices = @transform_1, window_bounds = array<i64: 1, 64, 32>}, {transform_indices = @transform_2, window_bounds = array<i64: 1, 64, 1>}, {pipeline_mode = #tpu.pipeline_mode<synchronous>, transform_indices = @transform_3, window_bounds = array<i64: 16, 32>}, {pipeline_mode = #tpu.pipeline_mode<synchronous>, transform_indices = @transform_4, window_bounds = array<i64: 1, 32>}, {pipeline_mode = #tpu.pipeline_mode<synchronous>, transform_indices = @transform_5, window_bounds = array<i64: 3, 1, 32>}, {pipeline_mode = #tpu.pipeline_mode<synchronous>, transform_indices = @transform_6, window_bounds = array<i64: 3, 1, 32>}, {pipeline_mode = #tpu.pipeline_mode<synchronous>, transform_indices = @transform_7, window_bounds = array<i64: 4, 32, 32>}, {pipeline_mode = #tpu.pipeline_mode<synchronous>, transform_indices = @transform_8, window_bounds = array<i64: 4, 1, 32>}, {pipeline_mode = #tpu.pipeline_mode<synchronous>, transform_indices = @transform_9, window_bounds = array<i64: 4, 32, 32>}, {pipeline_mode = #tpu.pipeline_mode<synchronous>, transform_indices = @transform_10, window_bounds = array<i64: 4, 1, 32>}, {pipeline_mode = #tpu.pipeline_mode<synchronous>, transform_indices = @transform_11, window_bounds = array<i64: 32, 2048>}, {pipeline_mode = #tpu.pipeline_mode<synchronous>, transform_indices = @transform_12, window_bounds = array<i64: 1, 2048>}, {pipeline_mode = #tpu.pipeline_mode<synchronous>, transform_indices = @transform_13, window_bounds = array<i64: 2048, 32>}, {pipeline_mode = #tpu.pipeline_mode<synchronous>, transform_indices = @transform_14, window_bounds = array<i64: 1, 32>}, {transform_indices = @transform_15, window_bounds = array<i64: 1, 64, 16>}]} {
    %c0_i32 = arith.constant 0 : i32
    %0 = arith.cmpi eq, %arg0, %c0_i32 : i32
    %1 = arith.extui %0 : i1 to i32
    %c0_i32_0 = arith.constant 0 : i32
    %2 = arith.cmpi ne, %1, %c0_i32_0 : i32
    scf.if %2 {
      %c0_244 = arith.constant 0 : index
      %c0_245 = arith.constant 0 : index
      %600 = vector.load %arg4[%c0_244, %c0_245] : memref<16x32xf32, #tpu.memory_space<vmem>>, vector<16x32xf32>
      %c0_246 = arith.constant 0 : index
      %c0_247 = arith.constant 0 : index
      %601 = vector.load %arg17[%c0_246, %c0_247] : memref<16x32xf32, #tpu.memory_space<vmem>>, vector<16x32xf32>
      tpu.vector_store %arg17[%c0_246, %c0_247], %600 {strides = array<i32>} : memref<16x32xf32, #tpu.memory_space<vmem>>, vector<16x32xf32>,
    } else {
    }
    %c0 = arith.constant 0 : index
    %c0_1 = arith.constant 0 : index
    %c0_2 = arith.constant 0 : index
    %3 = vector.load %arg2[%c0, %c0_1, %c0_2] : memref<1x64x32xf32, #tpu.memory_space<vmem>>, vector<1x64x32xf32>
    %4 = vector.shape_cast %3 : vector<1x64x32xf32> to vector<64x32xf32>
    %c0_3 = arith.constant 0 : index
    %c0_4 = arith.constant 0 : index
    %c0_5 = arith.constant 0 : index
    %5 = vector.load %arg1[%c0_3, %c0_4, %c0_5] : memref<1x64x64xf32, #tpu.memory_space<vmem>>, vector<1x64x64xf32>
    %6 = vector.shape_cast %5 : vector<1x64x64xf32> to vector<64x64xf32>
    %c0_6 = arith.constant 0 : index
    %c0_7 = arith.constant 0 : index
    %7 = vector.load %arg5[%c0_6, %c0_7] : memref<1x32xf32, #tpu.memory_space<vmem>>, vector<1x32xf32>
    %8 = arith.mulf %7, %7 : vector<1x32xf32>
    %cst = arith.constant dense<0.000000e+00> : vector<1xf32>
    %9 = vector.multi_reduction <add>, %8, %cst [1] : vector<1x32xf32> to vector<1xf32>
    %10 = vector.shape_cast %9 : vector<1xf32> to vector<1x1xf32>
    %11 = math.sqrt %10 : vector<1x1xf32>
    %cst_8 = arith.constant 1.000000e+00 : f32
    %12 = vector.broadcast %cst_8 : f32 to vector<1x1xf32>
    %13 = arith.divf %12, %11 : vector<1x1xf32>
    %14 = vector.broadcast %7 : vector<1x32xf32> to vector<64x32xf32>
    %15 = arith.mulf %4, %14 : vector<64x32xf32>
    %cst_9 = arith.constant dense<0.000000e+00> : vector<64xf32>
    %16 = vector.multi_reduction <add>, %15, %cst_9 [1] : vector<64x32xf32> to vector<64xf32>
    %17 = vector.shape_cast %16 : vector<64xf32> to vector<64x1xf32>
    %18 = vector.broadcast %13 : vector<1x1xf32> to vector<64x1xf32>
    %19 = arith.mulf %17, %18 : vector<64x1xf32>
    %c0_10 = arith.constant 0 : index
    %c0_11 = arith.constant 0 : index
    %c0_12 = arith.constant 0 : index
    %20 = vector.load %arg3[%c0_10, %c0_11, %c0_12] : memref<1x64x1xf32, #tpu.memory_space<vmem>>, vector<1x64x1xf32>
    %21 = vector.shape_cast %20 : vector<1x64x1xf32> to vector<64x1xf32>
    %22 = arith.addf %19, %21 : vector<64x1xf32>
    %23 = tpu.iota {dimensions = array<i32: 0>} : vector<64x1xi32>
    %24 = arith.sitofp %23 : vector<64x1xi32> to vector<64x1xf32>
    %25 = tpu.iota {dimensions = array<i32: 1>} : vector<16x64xi32>
    %26 = arith.sitofp %25 : vector<16x64xi32> to vector<16x64xf32>
    %27 = tpu.iota {dimensions = array<i32: 0>} : vector<16x64xi32>
    %28 = arith.sitofp %27 : vector<16x64xi32> to vector<16x64xf32>
    %29 = tpu.iota {dimensions = array<i32: 0>} : vector<16x1xi32>
    %30 = arith.sitofp %29 : vector<16x1xi32> to vector<16x1xf32>
    %cst_13 = arith.constant 0.000000e+00 : f32
    %31 = vector.broadcast %cst_13 : f32 to vector<16x64xf32>
    %cst_14 = arith.constant 0.000000e+00 : f32
    %32 = vector.broadcast %cst_14 : f32 to vector<16x1xf32>
    %cst_15 = arith.constant dense<0xFF800000> : vector<1xf32>
    %33 = vector.multi_reduction <maximumf>, %22, %cst_15 [0] : vector<64x1xf32> to vector<1xf32>
    %34 = vector.shape_cast %33 : vector<1xf32> to vector<1x1xf32>
    %35 = vector.broadcast %34 : vector<1x1xf32> to vector<64x1xf32>
    %36 = arith.cmpf oeq, %22, %35 : vector<64x1xf32>
    %cst_16 = arith.constant 6.400000e+01 : f32
    %37 = vector.broadcast %cst_16 : f32 to vector<64x1xf32>
    %38 = arith.select %36, %24, %37 : vector<64x1xi1>, vector<64x1xf32>
    %cst_17 = arith.constant dense<0x7F800000> : vector<1xf32>
    %39 = vector.multi_reduction <minimumf>, %38, %cst_17 [0] : vector<64x1xf32> to vector<1xf32>
    %40 = vector.shape_cast %39 : vector<1xf32> to vector<1x1xf32>
    %cst_18 = arith.constant 0.000000e+00 : f32
    %41 = vector.broadcast %cst_18 : f32 to vector<16x64xf32>
    %42 = arith.cmpf oeq, %28, %41 : vector<16x64xf32>
    %43 = vector.broadcast %40 : vector<1x1xf32> to vector<16x64xf32>
    %44 = arith.cmpf oeq, %26, %43 : vector<16x64xf32>
    %45 = arith.andi %42, %44 : vector<16x64xi1>
    %cst_19 = arith.constant 1.000000e+00 : f32
    %46 = vector.broadcast %cst_19 : f32 to vector<16x64xf32>
    %47 = arith.select %45, %46, %31 : vector<16x64xi1>, vector<16x64xf32>
    %cst_20 = arith.constant 0.000000e+00 : f32
    %48 = vector.broadcast %cst_20 : f32 to vector<16x1xf32>
    %49 = arith.cmpf oeq, %30, %48 : vector<16x1xf32>
    %50 = vector.shape_cast %34 : vector<1x1xf32> to vector<1x1xf32>
    %51 = vector.broadcast %50 : vector<1x1xf32> to vector<16x1xf32>
    %52 = arith.select %49, %51, %32 : vector<16x1xi1>, vector<16x1xf32>
    %53 = vector.broadcast %40 : vector<1x1xf32> to vector<64x1xf32>
    %54 = arith.cmpf oeq, %24, %53 : vector<64x1xf32>
    %cst_21 = arith.constant 0xFF800000 : f32
    %55 = vector.broadcast %cst_21 : f32 to vector<64x1xf32>
    %56 = arith.select %54, %55, %22 : vector<64x1xi1>, vector<64x1xf32>
    %cst_22 = arith.constant dense<0xFF800000> : vector<1xf32>
    %57 = vector.multi_reduction <maximumf>, %56, %cst_22 [0] : vector<64x1xf32> to vector<1xf32>
    %58 = vector.shape_cast %57 : vector<1xf32> to vector<1x1xf32>
    %59 = vector.broadcast %58 : vector<1x1xf32> to vector<64x1xf32>
    %60 = arith.cmpf oeq, %56, %59 : vector<64x1xf32>
    %cst_23 = arith.constant 6.400000e+01 : f32
    %61 = vector.broadcast %cst_23 : f32 to vector<64x1xf32>
    %62 = arith.select %60, %24, %61 : vector<64x1xi1>, vector<64x1xf32>
    %cst_24 = arith.constant dense<0x7F800000> : vector<1xf32>
    %63 = vector.multi_reduction <minimumf>, %62, %cst_24 [0] : vector<64x1xf32> to vector<1xf32>
    %64 = vector.shape_cast %63 : vector<1xf32> to vector<1x1xf32>
    %cst_25 = arith.constant 1.000000e+00 : f32
    %65 = vector.broadcast %cst_25 : f32 to vector<16x64xf32>
    %66 = arith.cmpf oeq, %28, %65 : vector<16x64xf32>
    %67 = vector.broadcast %64 : vector<1x1xf32> to vector<16x64xf32>
    %68 = arith.cmpf oeq, %26, %67 : vector<16x64xf32>
    %69 = arith.andi %66, %68 : vector<16x64xi1>
    %cst_26 = arith.constant 1.000000e+00 : f32
    %70 = vector.broadcast %cst_26 : f32 to vector<16x64xf32>
    %71 = arith.select %69, %70, %47 : vector<16x64xi1>, vector<16x64xf32>
    %cst_27 = arith.constant 1.000000e+00 : f32
    %72 = vector.broadcast %cst_27 : f32 to vector<16x1xf32>
    %73 = arith.cmpf oeq, %30, %72 : vector<16x1xf32>
    %74 = vector.shape_cast %58 : vector<1x1xf32> to vector<1x1xf32>
    %75 = vector.broadcast %74 : vector<1x1xf32> to vector<16x1xf32>
    %76 = arith.select %73, %75, %52 : vector<16x1xi1>, vector<16x1xf32>
    %77 = vector.broadcast %64 : vector<1x1xf32> to vector<64x1xf32>
    %78 = arith.cmpf oeq, %24, %77 : vector<64x1xf32>
    %cst_28 = arith.constant 0xFF800000 : f32
    %79 = vector.broadcast %cst_28 : f32 to vector<64x1xf32>
    %80 = arith.select %78, %79, %56 : vector<64x1xi1>, vector<64x1xf32>
    %cst_29 = arith.constant dense<0xFF800000> : vector<1xf32>
    %81 = vector.multi_reduction <maximumf>, %80, %cst_29 [0] : vector<64x1xf32> to vector<1xf32>
    %82 = vector.shape_cast %81 : vector<1xf32> to vector<1x1xf32>
    %83 = vector.broadcast %82 : vector<1x1xf32> to vector<64x1xf32>
    %84 = arith.cmpf oeq, %80, %83 : vector<64x1xf32>
    %cst_30 = arith.constant 6.400000e+01 : f32
    %85 = vector.broadcast %cst_30 : f32 to vector<64x1xf32>
    %86 = arith.select %84, %24, %85 : vector<64x1xi1>, vector<64x1xf32>
    %cst_31 = arith.constant dense<0x7F800000> : vector<1xf32>
    %87 = vector.multi_reduction <minimumf>, %86, %cst_31 [0] : vector<64x1xf32> to vector<1xf32>
    %88 = vector.shape_cast %87 : vector<1xf32> to vector<1x1xf32>
    %cst_32 = arith.constant 2.000000e+00 : f32
    %89 = vector.broadcast %cst_32 : f32 to vector<16x64xf32>
    %90 = arith.cmpf oeq, %28, %89 : vector<16x64xf32>
    %91 = vector.broadcast %88 : vector<1x1xf32> to vector<16x64xf32>
    %92 = arith.cmpf oeq, %26, %91 : vector<16x64xf32>
    %93 = arith.andi %90, %92 : vector<16x64xi1>
    %cst_33 = arith.constant 1.000000e+00 : f32
    %94 = vector.broadcast %cst_33 : f32 to vector<16x64xf32>
    %95 = arith.select %93, %94, %71 : vector<16x64xi1>, vector<16x64xf32>
    %cst_34 = arith.constant 2.000000e+00 : f32
    %96 = vector.broadcast %cst_34 : f32 to vector<16x1xf32>
    %97 = arith.cmpf oeq, %30, %96 : vector<16x1xf32>
    %98 = vector.shape_cast %82 : vector<1x1xf32> to vector<1x1xf32>
    %99 = vector.broadcast %98 : vector<1x1xf32> to vector<16x1xf32>
    %100 = arith.select %97, %99, %76 : vector<16x1xi1>, vector<16x1xf32>
    %101 = vector.broadcast %88 : vector<1x1xf32> to vector<64x1xf32>
    %102 = arith.cmpf oeq, %24, %101 : vector<64x1xf32>
    %cst_35 = arith.constant 0xFF800000 : f32
    %103 = vector.broadcast %cst_35 : f32 to vector<64x1xf32>
    %104 = arith.select %102, %103, %80 : vector<64x1xi1>, vector<64x1xf32>
    %cst_36 = arith.constant dense<0xFF800000> : vector<1xf32>
    %105 = vector.multi_reduction <maximumf>, %104, %cst_36 [0] : vector<64x1xf32> to vector<1xf32>
    %106 = vector.shape_cast %105 : vector<1xf32> to vector<1x1xf32>
    %107 = vector.broadcast %106 : vector<1x1xf32> to vector<64x1xf32>
    %108 = arith.cmpf oeq, %104, %107 : vector<64x1xf32>
    %cst_37 = arith.constant 6.400000e+01 : f32
    %109 = vector.broadcast %cst_37 : f32 to vector<64x1xf32>
    %110 = arith.select %108, %24, %109 : vector<64x1xi1>, vector<64x1xf32>
    %cst_38 = arith.constant dense<0x7F800000> : vector<1xf32>
    %111 = vector.multi_reduction <minimumf>, %110, %cst_38 [0] : vector<64x1xf32> to vector<1xf32>
    %112 = vector.shape_cast %111 : vector<1xf32> to vector<1x1xf32>
    %cst_39 = arith.constant 3.000000e+00 : f32
    %113 = vector.broadcast %cst_39 : f32 to vector<16x64xf32>
    %114 = arith.cmpf oeq, %28, %113 : vector<16x64xf32>
    %115 = vector.broadcast %112 : vector<1x1xf32> to vector<16x64xf32>
    %116 = arith.cmpf oeq, %26, %115 : vector<16x64xf32>
    %117 = arith.andi %114, %116 : vector<16x64xi1>
    %cst_40 = arith.constant 1.000000e+00 : f32
    %118 = vector.broadcast %cst_40 : f32 to vector<16x64xf32>
    %119 = arith.select %117, %118, %95 : vector<16x64xi1>, vector<16x64xf32>
    %cst_41 = arith.constant 3.000000e+00 : f32
    %120 = vector.broadcast %cst_41 : f32 to vector<16x1xf32>
    %121 = arith.cmpf oeq, %30, %120 : vector<16x1xf32>
    %122 = vector.shape_cast %106 : vector<1x1xf32> to vector<1x1xf32>
    %123 = vector.broadcast %122 : vector<1x1xf32> to vector<16x1xf32>
    %124 = arith.select %121, %123, %100 : vector<16x1xi1>, vector<16x1xf32>
    %125 = vector.broadcast %112 : vector<1x1xf32> to vector<64x1xf32>
    %126 = arith.cmpf oeq, %24, %125 : vector<64x1xf32>
    %cst_42 = arith.constant 0xFF800000 : f32
    %127 = vector.broadcast %cst_42 : f32 to vector<64x1xf32>
    %128 = arith.select %126, %127, %104 : vector<64x1xi1>, vector<64x1xf32>
    %cst_43 = arith.constant dense<0xFF800000> : vector<1xf32>
    %129 = vector.multi_reduction <maximumf>, %128, %cst_43 [0] : vector<64x1xf32> to vector<1xf32>
    %130 = vector.shape_cast %129 : vector<1xf32> to vector<1x1xf32>
    %131 = vector.broadcast %130 : vector<1x1xf32> to vector<64x1xf32>
    %132 = arith.cmpf oeq, %128, %131 : vector<64x1xf32>
    %cst_44 = arith.constant 6.400000e+01 : f32
    %133 = vector.broadcast %cst_44 : f32 to vector<64x1xf32>
    %134 = arith.select %132, %24, %133 : vector<64x1xi1>, vector<64x1xf32>
    %cst_45 = arith.constant dense<0x7F800000> : vector<1xf32>
    %135 = vector.multi_reduction <minimumf>, %134, %cst_45 [0] : vector<64x1xf32> to vector<1xf32>
    %136 = vector.shape_cast %135 : vector<1xf32> to vector<1x1xf32>
    %cst_46 = arith.constant 4.000000e+00 : f32
    %137 = vector.broadcast %cst_46 : f32 to vector<16x64xf32>
    %138 = arith.cmpf oeq, %28, %137 : vector<16x64xf32>
    %139 = vector.broadcast %136 : vector<1x1xf32> to vector<16x64xf32>
    %140 = arith.cmpf oeq, %26, %139 : vector<16x64xf32>
    %141 = arith.andi %138, %140 : vector<16x64xi1>
    %cst_47 = arith.constant 1.000000e+00 : f32
    %142 = vector.broadcast %cst_47 : f32 to vector<16x64xf32>
    %143 = arith.select %141, %142, %119 : vector<16x64xi1>, vector<16x64xf32>
    %cst_48 = arith.constant 4.000000e+00 : f32
    %144 = vector.broadcast %cst_48 : f32 to vector<16x1xf32>
    %145 = arith.cmpf oeq, %30, %144 : vector<16x1xf32>
    %146 = vector.shape_cast %130 : vector<1x1xf32> to vector<1x1xf32>
    %147 = vector.broadcast %146 : vector<1x1xf32> to vector<16x1xf32>
    %148 = arith.select %145, %147, %124 : vector<16x1xi1>, vector<16x1xf32>
    %149 = vector.broadcast %136 : vector<1x1xf32> to vector<64x1xf32>
    %150 = arith.cmpf oeq, %24, %149 : vector<64x1xf32>
    %cst_49 = arith.constant 0xFF800000 : f32
    %151 = vector.broadcast %cst_49 : f32 to vector<64x1xf32>
    %152 = arith.select %150, %151, %128 : vector<64x1xi1>, vector<64x1xf32>
    %cst_50 = arith.constant dense<0xFF800000> : vector<1xf32>
    %153 = vector.multi_reduction <maximumf>, %152, %cst_50 [0] : vector<64x1xf32> to vector<1xf32>
    %154 = vector.shape_cast %153 : vector<1xf32> to vector<1x1xf32>
    %155 = vector.broadcast %154 : vector<1x1xf32> to vector<64x1xf32>
    %156 = arith.cmpf oeq, %152, %155 : vector<64x1xf32>
    %cst_51 = arith.constant 6.400000e+01 : f32
    %157 = vector.broadcast %cst_51 : f32 to vector<64x1xf32>
    %158 = arith.select %156, %24, %157 : vector<64x1xi1>, vector<64x1xf32>
    %cst_52 = arith.constant dense<0x7F800000> : vector<1xf32>
    %159 = vector.multi_reduction <minimumf>, %158, %cst_52 [0] : vector<64x1xf32> to vector<1xf32>
    %160 = vector.shape_cast %159 : vector<1xf32> to vector<1x1xf32>
    %cst_53 = arith.constant 5.000000e+00 : f32
    %161 = vector.broadcast %cst_53 : f32 to vector<16x64xf32>
    %162 = arith.cmpf oeq, %28, %161 : vector<16x64xf32>
    %163 = vector.broadcast %160 : vector<1x1xf32> to vector<16x64xf32>
    %164 = arith.cmpf oeq, %26, %163 : vector<16x64xf32>
    %165 = arith.andi %162, %164 : vector<16x64xi1>
    %cst_54 = arith.constant 1.000000e+00 : f32
    %166 = vector.broadcast %cst_54 : f32 to vector<16x64xf32>
    %167 = arith.select %165, %166, %143 : vector<16x64xi1>, vector<16x64xf32>
    %cst_55 = arith.constant 5.000000e+00 : f32
    %168 = vector.broadcast %cst_55 : f32 to vector<16x1xf32>
    %169 = arith.cmpf oeq, %30, %168 : vector<16x1xf32>
    %170 = vector.shape_cast %154 : vector<1x1xf32> to vector<1x1xf32>
    %171 = vector.broadcast %170 : vector<1x1xf32> to vector<16x1xf32>
    %172 = arith.select %169, %171, %148 : vector<16x1xi1>, vector<16x1xf32>
    %173 = vector.broadcast %160 : vector<1x1xf32> to vector<64x1xf32>
    %174 = arith.cmpf oeq, %24, %173 : vector<64x1xf32>
    %cst_56 = arith.constant 0xFF800000 : f32
    %175 = vector.broadcast %cst_56 : f32 to vector<64x1xf32>
    %176 = arith.select %174, %175, %152 : vector<64x1xi1>, vector<64x1xf32>
    %cst_57 = arith.constant dense<0xFF800000> : vector<1xf32>
    %177 = vector.multi_reduction <maximumf>, %176, %cst_57 [0] : vector<64x1xf32> to vector<1xf32>
    %178 = vector.shape_cast %177 : vector<1xf32> to vector<1x1xf32>
    %179 = vector.broadcast %178 : vector<1x1xf32> to vector<64x1xf32>
    %180 = arith.cmpf oeq, %176, %179 : vector<64x1xf32>
    %cst_58 = arith.constant 6.400000e+01 : f32
    %181 = vector.broadcast %cst_58 : f32 to vector<64x1xf32>
    %182 = arith.select %180, %24, %181 : vector<64x1xi1>, vector<64x1xf32>
    %cst_59 = arith.constant dense<0x7F800000> : vector<1xf32>
    %183 = vector.multi_reduction <minimumf>, %182, %cst_59 [0] : vector<64x1xf32> to vector<1xf32>
    %184 = vector.shape_cast %183 : vector<1xf32> to vector<1x1xf32>
    %cst_60 = arith.constant 6.000000e+00 : f32
    %185 = vector.broadcast %cst_60 : f32 to vector<16x64xf32>
    %186 = arith.cmpf oeq, %28, %185 : vector<16x64xf32>
    %187 = vector.broadcast %184 : vector<1x1xf32> to vector<16x64xf32>
    %188 = arith.cmpf oeq, %26, %187 : vector<16x64xf32>
    %189 = arith.andi %186, %188 : vector<16x64xi1>
    %cst_61 = arith.constant 1.000000e+00 : f32
    %190 = vector.broadcast %cst_61 : f32 to vector<16x64xf32>
    %191 = arith.select %189, %190, %167 : vector<16x64xi1>, vector<16x64xf32>
    %cst_62 = arith.constant 6.000000e+00 : f32
    %192 = vector.broadcast %cst_62 : f32 to vector<16x1xf32>
    %193 = arith.cmpf oeq, %30, %192 : vector<16x1xf32>
    %194 = vector.shape_cast %178 : vector<1x1xf32> to vector<1x1xf32>
    %195 = vector.broadcast %194 : vector<1x1xf32> to vector<16x1xf32>
    %196 = arith.select %193, %195, %172 : vector<16x1xi1>, vector<16x1xf32>
    %197 = vector.broadcast %184 : vector<1x1xf32> to vector<64x1xf32>
    %198 = arith.cmpf oeq, %24, %197 : vector<64x1xf32>
    %cst_63 = arith.constant 0xFF800000 : f32
    %199 = vector.broadcast %cst_63 : f32 to vector<64x1xf32>
    %200 = arith.select %198, %199, %176 : vector<64x1xi1>, vector<64x1xf32>
    %cst_64 = arith.constant dense<0xFF800000> : vector<1xf32>
    %201 = vector.multi_reduction <maximumf>, %200, %cst_64 [0] : vector<64x1xf32> to vector<1xf32>
    %202 = vector.shape_cast %201 : vector<1xf32> to vector<1x1xf32>
    %203 = vector.broadcast %202 : vector<1x1xf32> to vector<64x1xf32>
    %204 = arith.cmpf oeq, %200, %203 : vector<64x1xf32>
    %cst_65 = arith.constant 6.400000e+01 : f32
    %205 = vector.broadcast %cst_65 : f32 to vector<64x1xf32>
    %206 = arith.select %204, %24, %205 : vector<64x1xi1>, vector<64x1xf32>
    %cst_66 = arith.constant dense<0x7F800000> : vector<1xf32>
    %207 = vector.multi_reduction <minimumf>, %206, %cst_66 [0] : vector<64x1xf32> to vector<1xf32>
    %208 = vector.shape_cast %207 : vector<1xf32> to vector<1x1xf32>
    %cst_67 = arith.constant 7.000000e+00 : f32
    %209 = vector.broadcast %cst_67 : f32 to vector<16x64xf32>
    %210 = arith.cmpf oeq, %28, %209 : vector<16x64xf32>
    %211 = vector.broadcast %208 : vector<1x1xf32> to vector<16x64xf32>
    %212 = arith.cmpf oeq, %26, %211 : vector<16x64xf32>
    %213 = arith.andi %210, %212 : vector<16x64xi1>
    %cst_68 = arith.constant 1.000000e+00 : f32
    %214 = vector.broadcast %cst_68 : f32 to vector<16x64xf32>
    %215 = arith.select %213, %214, %191 : vector<16x64xi1>, vector<16x64xf32>
    %cst_69 = arith.constant 7.000000e+00 : f32
    %216 = vector.broadcast %cst_69 : f32 to vector<16x1xf32>
    %217 = arith.cmpf oeq, %30, %216 : vector<16x1xf32>
    %218 = vector.shape_cast %202 : vector<1x1xf32> to vector<1x1xf32>
    %219 = vector.broadcast %218 : vector<1x1xf32> to vector<16x1xf32>
    %220 = arith.select %217, %219, %196 : vector<16x1xi1>, vector<16x1xf32>
    %221 = vector.broadcast %208 : vector<1x1xf32> to vector<64x1xf32>
    %222 = arith.cmpf oeq, %24, %221 : vector<64x1xf32>
    %cst_70 = arith.constant 0xFF800000 : f32
    %223 = vector.broadcast %cst_70 : f32 to vector<64x1xf32>
    %224 = arith.select %222, %223, %200 : vector<64x1xi1>, vector<64x1xf32>
    %cst_71 = arith.constant dense<0xFF800000> : vector<1xf32>
    %225 = vector.multi_reduction <maximumf>, %224, %cst_71 [0] : vector<64x1xf32> to vector<1xf32>
    %226 = vector.shape_cast %225 : vector<1xf32> to vector<1x1xf32>
    %227 = vector.broadcast %226 : vector<1x1xf32> to vector<64x1xf32>
    %228 = arith.cmpf oeq, %224, %227 : vector<64x1xf32>
    %cst_72 = arith.constant 6.400000e+01 : f32
    %229 = vector.broadcast %cst_72 : f32 to vector<64x1xf32>
    %230 = arith.select %228, %24, %229 : vector<64x1xi1>, vector<64x1xf32>
    %cst_73 = arith.constant dense<0x7F800000> : vector<1xf32>
    %231 = vector.multi_reduction <minimumf>, %230, %cst_73 [0] : vector<64x1xf32> to vector<1xf32>
    %232 = vector.shape_cast %231 : vector<1xf32> to vector<1x1xf32>
    %cst_74 = arith.constant 8.000000e+00 : f32
    %233 = vector.broadcast %cst_74 : f32 to vector<16x64xf32>
    %234 = arith.cmpf oeq, %28, %233 : vector<16x64xf32>
    %235 = vector.broadcast %232 : vector<1x1xf32> to vector<16x64xf32>
    %236 = arith.cmpf oeq, %26, %235 : vector<16x64xf32>
    %237 = arith.andi %234, %236 : vector<16x64xi1>
    %cst_75 = arith.constant 1.000000e+00 : f32
    %238 = vector.broadcast %cst_75 : f32 to vector<16x64xf32>
    %239 = arith.select %237, %238, %215 : vector<16x64xi1>, vector<16x64xf32>
    %cst_76 = arith.constant 8.000000e+00 : f32
    %240 = vector.broadcast %cst_76 : f32 to vector<16x1xf32>
    %241 = arith.cmpf oeq, %30, %240 : vector<16x1xf32>
    %242 = vector.shape_cast %226 : vector<1x1xf32> to vector<1x1xf32>
    %243 = vector.broadcast %242 : vector<1x1xf32> to vector<16x1xf32>
    %244 = arith.select %241, %243, %220 : vector<16x1xi1>, vector<16x1xf32>
    %245 = vector.broadcast %232 : vector<1x1xf32> to vector<64x1xf32>
    %246 = arith.cmpf oeq, %24, %245 : vector<64x1xf32>
    %cst_77 = arith.constant 0xFF800000 : f32
    %247 = vector.broadcast %cst_77 : f32 to vector<64x1xf32>
    %248 = arith.select %246, %247, %224 : vector<64x1xi1>, vector<64x1xf32>
    %cst_78 = arith.constant dense<0xFF800000> : vector<1xf32>
    %249 = vector.multi_reduction <maximumf>, %248, %cst_78 [0] : vector<64x1xf32> to vector<1xf32>
    %250 = vector.shape_cast %249 : vector<1xf32> to vector<1x1xf32>
    %251 = vector.broadcast %250 : vector<1x1xf32> to vector<64x1xf32>
    %252 = arith.cmpf oeq, %248, %251 : vector<64x1xf32>
    %cst_79 = arith.constant 6.400000e+01 : f32
    %253 = vector.broadcast %cst_79 : f32 to vector<64x1xf32>
    %254 = arith.select %252, %24, %253 : vector<64x1xi1>, vector<64x1xf32>
    %cst_80 = arith.constant dense<0x7F800000> : vector<1xf32>
    %255 = vector.multi_reduction <minimumf>, %254, %cst_80 [0] : vector<64x1xf32> to vector<1xf32>
    %256 = vector.shape_cast %255 : vector<1xf32> to vector<1x1xf32>
    %cst_81 = arith.constant 9.000000e+00 : f32
    %257 = vector.broadcast %cst_81 : f32 to vector<16x64xf32>
    %258 = arith.cmpf oeq, %28, %257 : vector<16x64xf32>
    %259 = vector.broadcast %256 : vector<1x1xf32> to vector<16x64xf32>
    %260 = arith.cmpf oeq, %26, %259 : vector<16x64xf32>
    %261 = arith.andi %258, %260 : vector<16x64xi1>
    %cst_82 = arith.constant 1.000000e+00 : f32
    %262 = vector.broadcast %cst_82 : f32 to vector<16x64xf32>
    %263 = arith.select %261, %262, %239 : vector<16x64xi1>, vector<16x64xf32>
    %cst_83 = arith.constant 9.000000e+00 : f32
    %264 = vector.broadcast %cst_83 : f32 to vector<16x1xf32>
    %265 = arith.cmpf oeq, %30, %264 : vector<16x1xf32>
    %266 = vector.shape_cast %250 : vector<1x1xf32> to vector<1x1xf32>
    %267 = vector.broadcast %266 : vector<1x1xf32> to vector<16x1xf32>
    %268 = arith.select %265, %267, %244 : vector<16x1xi1>, vector<16x1xf32>
    %269 = vector.broadcast %256 : vector<1x1xf32> to vector<64x1xf32>
    %270 = arith.cmpf oeq, %24, %269 : vector<64x1xf32>
    %cst_84 = arith.constant 0xFF800000 : f32
    %271 = vector.broadcast %cst_84 : f32 to vector<64x1xf32>
    %272 = arith.select %270, %271, %248 : vector<64x1xi1>, vector<64x1xf32>
    %cst_85 = arith.constant dense<0xFF800000> : vector<1xf32>
    %273 = vector.multi_reduction <maximumf>, %272, %cst_85 [0] : vector<64x1xf32> to vector<1xf32>
    %274 = vector.shape_cast %273 : vector<1xf32> to vector<1x1xf32>
    %275 = vector.broadcast %274 : vector<1x1xf32> to vector<64x1xf32>
    %276 = arith.cmpf oeq, %272, %275 : vector<64x1xf32>
    %cst_86 = arith.constant 6.400000e+01 : f32
    %277 = vector.broadcast %cst_86 : f32 to vector<64x1xf32>
    %278 = arith.select %276, %24, %277 : vector<64x1xi1>, vector<64x1xf32>
    %cst_87 = arith.constant dense<0x7F800000> : vector<1xf32>
    %279 = vector.multi_reduction <minimumf>, %278, %cst_87 [0] : vector<64x1xf32> to vector<1xf32>
    %280 = vector.shape_cast %279 : vector<1xf32> to vector<1x1xf32>
    %cst_88 = arith.constant 1.000000e+01 : f32
    %281 = vector.broadcast %cst_88 : f32 to vector<16x64xf32>
    %282 = arith.cmpf oeq, %28, %281 : vector<16x64xf32>
    %283 = vector.broadcast %280 : vector<1x1xf32> to vector<16x64xf32>
    %284 = arith.cmpf oeq, %26, %283 : vector<16x64xf32>
    %285 = arith.andi %282, %284 : vector<16x64xi1>
    %cst_89 = arith.constant 1.000000e+00 : f32
    %286 = vector.broadcast %cst_89 : f32 to vector<16x64xf32>
    %287 = arith.select %285, %286, %263 : vector<16x64xi1>, vector<16x64xf32>
    %cst_90 = arith.constant 1.000000e+01 : f32
    %288 = vector.broadcast %cst_90 : f32 to vector<16x1xf32>
    %289 = arith.cmpf oeq, %30, %288 : vector<16x1xf32>
    %290 = vector.shape_cast %274 : vector<1x1xf32> to vector<1x1xf32>
    %291 = vector.broadcast %290 : vector<1x1xf32> to vector<16x1xf32>
    %292 = arith.select %289, %291, %268 : vector<16x1xi1>, vector<16x1xf32>
    %293 = vector.broadcast %280 : vector<1x1xf32> to vector<64x1xf32>
    %294 = arith.cmpf oeq, %24, %293 : vector<64x1xf32>
    %cst_91 = arith.constant 0xFF800000 : f32
    %295 = vector.broadcast %cst_91 : f32 to vector<64x1xf32>
    %296 = arith.select %294, %295, %272 : vector<64x1xi1>, vector<64x1xf32>
    %cst_92 = arith.constant dense<0xFF800000> : vector<1xf32>
    %297 = vector.multi_reduction <maximumf>, %296, %cst_92 [0] : vector<64x1xf32> to vector<1xf32>
    %298 = vector.shape_cast %297 : vector<1xf32> to vector<1x1xf32>
    %299 = vector.broadcast %298 : vector<1x1xf32> to vector<64x1xf32>
    %300 = arith.cmpf oeq, %296, %299 : vector<64x1xf32>
    %cst_93 = arith.constant 6.400000e+01 : f32
    %301 = vector.broadcast %cst_93 : f32 to vector<64x1xf32>
    %302 = arith.select %300, %24, %301 : vector<64x1xi1>, vector<64x1xf32>
    %cst_94 = arith.constant dense<0x7F800000> : vector<1xf32>
    %303 = vector.multi_reduction <minimumf>, %302, %cst_94 [0] : vector<64x1xf32> to vector<1xf32>
    %304 = vector.shape_cast %303 : vector<1xf32> to vector<1x1xf32>
    %cst_95 = arith.constant 1.100000e+01 : f32
    %305 = vector.broadcast %cst_95 : f32 to vector<16x64xf32>
    %306 = arith.cmpf oeq, %28, %305 : vector<16x64xf32>
    %307 = vector.broadcast %304 : vector<1x1xf32> to vector<16x64xf32>
    %308 = arith.cmpf oeq, %26, %307 : vector<16x64xf32>
    %309 = arith.andi %306, %308 : vector<16x64xi1>
    %cst_96 = arith.constant 1.000000e+00 : f32
    %310 = vector.broadcast %cst_96 : f32 to vector<16x64xf32>
    %311 = arith.select %309, %310, %287 : vector<16x64xi1>, vector<16x64xf32>
    %cst_97 = arith.constant 1.100000e+01 : f32
    %312 = vector.broadcast %cst_97 : f32 to vector<16x1xf32>
    %313 = arith.cmpf oeq, %30, %312 : vector<16x1xf32>
    %314 = vector.shape_cast %298 : vector<1x1xf32> to vector<1x1xf32>
    %315 = vector.broadcast %314 : vector<1x1xf32> to vector<16x1xf32>
    %316 = arith.select %313, %315, %292 : vector<16x1xi1>, vector<16x1xf32>
    %317 = vector.broadcast %304 : vector<1x1xf32> to vector<64x1xf32>
    %318 = arith.cmpf oeq, %24, %317 : vector<64x1xf32>
    %cst_98 = arith.constant 0xFF800000 : f32
    %319 = vector.broadcast %cst_98 : f32 to vector<64x1xf32>
    %320 = arith.select %318, %319, %296 : vector<64x1xi1>, vector<64x1xf32>
    %cst_99 = arith.constant dense<0xFF800000> : vector<1xf32>
    %321 = vector.multi_reduction <maximumf>, %320, %cst_99 [0] : vector<64x1xf32> to vector<1xf32>
    %322 = vector.shape_cast %321 : vector<1xf32> to vector<1x1xf32>
    %323 = vector.broadcast %322 : vector<1x1xf32> to vector<64x1xf32>
    %324 = arith.cmpf oeq, %320, %323 : vector<64x1xf32>
    %cst_100 = arith.constant 6.400000e+01 : f32
    %325 = vector.broadcast %cst_100 : f32 to vector<64x1xf32>
    %326 = arith.select %324, %24, %325 : vector<64x1xi1>, vector<64x1xf32>
    %cst_101 = arith.constant dense<0x7F800000> : vector<1xf32>
    %327 = vector.multi_reduction <minimumf>, %326, %cst_101 [0] : vector<64x1xf32> to vector<1xf32>
    %328 = vector.shape_cast %327 : vector<1xf32> to vector<1x1xf32>
    %cst_102 = arith.constant 1.200000e+01 : f32
    %329 = vector.broadcast %cst_102 : f32 to vector<16x64xf32>
    %330 = arith.cmpf oeq, %28, %329 : vector<16x64xf32>
    %331 = vector.broadcast %328 : vector<1x1xf32> to vector<16x64xf32>
    %332 = arith.cmpf oeq, %26, %331 : vector<16x64xf32>
    %333 = arith.andi %330, %332 : vector<16x64xi1>
    %cst_103 = arith.constant 1.000000e+00 : f32
    %334 = vector.broadcast %cst_103 : f32 to vector<16x64xf32>
    %335 = arith.select %333, %334, %311 : vector<16x64xi1>, vector<16x64xf32>
    %cst_104 = arith.constant 1.200000e+01 : f32
    %336 = vector.broadcast %cst_104 : f32 to vector<16x1xf32>
    %337 = arith.cmpf oeq, %30, %336 : vector<16x1xf32>
    %338 = vector.shape_cast %322 : vector<1x1xf32> to vector<1x1xf32>
    %339 = vector.broadcast %338 : vector<1x1xf32> to vector<16x1xf32>
    %340 = arith.select %337, %339, %316 : vector<16x1xi1>, vector<16x1xf32>
    %341 = vector.broadcast %328 : vector<1x1xf32> to vector<64x1xf32>
    %342 = arith.cmpf oeq, %24, %341 : vector<64x1xf32>
    %cst_105 = arith.constant 0xFF800000 : f32
    %343 = vector.broadcast %cst_105 : f32 to vector<64x1xf32>
    %344 = arith.select %342, %343, %320 : vector<64x1xi1>, vector<64x1xf32>
    %cst_106 = arith.constant dense<0xFF800000> : vector<1xf32>
    %345 = vector.multi_reduction <maximumf>, %344, %cst_106 [0] : vector<64x1xf32> to vector<1xf32>
    %346 = vector.shape_cast %345 : vector<1xf32> to vector<1x1xf32>
    %347 = vector.broadcast %346 : vector<1x1xf32> to vector<64x1xf32>
    %348 = arith.cmpf oeq, %344, %347 : vector<64x1xf32>
    %cst_107 = arith.constant 6.400000e+01 : f32
    %349 = vector.broadcast %cst_107 : f32 to vector<64x1xf32>
    %350 = arith.select %348, %24, %349 : vector<64x1xi1>, vector<64x1xf32>
    %cst_108 = arith.constant dense<0x7F800000> : vector<1xf32>
    %351 = vector.multi_reduction <minimumf>, %350, %cst_108 [0] : vector<64x1xf32> to vector<1xf32>
    %352 = vector.shape_cast %351 : vector<1xf32> to vector<1x1xf32>
    %cst_109 = arith.constant 1.300000e+01 : f32
    %353 = vector.broadcast %cst_109 : f32 to vector<16x64xf32>
    %354 = arith.cmpf oeq, %28, %353 : vector<16x64xf32>
    %355 = vector.broadcast %352 : vector<1x1xf32> to vector<16x64xf32>
    %356 = arith.cmpf oeq, %26, %355 : vector<16x64xf32>
    %357 = arith.andi %354, %356 : vector<16x64xi1>
    %cst_110 = arith.constant 1.000000e+00 : f32
    %358 = vector.broadcast %cst_110 : f32 to vector<16x64xf32>
    %359 = arith.select %357, %358, %335 : vector<16x64xi1>, vector<16x64xf32>
    %cst_111 = arith.constant 1.300000e+01 : f32
    %360 = vector.broadcast %cst_111 : f32 to vector<16x1xf32>
    %361 = arith.cmpf oeq, %30, %360 : vector<16x1xf32>
    %362 = vector.shape_cast %346 : vector<1x1xf32> to vector<1x1xf32>
    %363 = vector.broadcast %362 : vector<1x1xf32> to vector<16x1xf32>
    %364 = arith.select %361, %363, %340 : vector<16x1xi1>, vector<16x1xf32>
    %365 = vector.broadcast %352 : vector<1x1xf32> to vector<64x1xf32>
    %366 = arith.cmpf oeq, %24, %365 : vector<64x1xf32>
    %cst_112 = arith.constant 0xFF800000 : f32
    %367 = vector.broadcast %cst_112 : f32 to vector<64x1xf32>
    %368 = arith.select %366, %367, %344 : vector<64x1xi1>, vector<64x1xf32>
    %cst_113 = arith.constant dense<0xFF800000> : vector<1xf32>
    %369 = vector.multi_reduction <maximumf>, %368, %cst_113 [0] : vector<64x1xf32> to vector<1xf32>
    %370 = vector.shape_cast %369 : vector<1xf32> to vector<1x1xf32>
    %371 = vector.broadcast %370 : vector<1x1xf32> to vector<64x1xf32>
    %372 = arith.cmpf oeq, %368, %371 : vector<64x1xf32>
    %cst_114 = arith.constant 6.400000e+01 : f32
    %373 = vector.broadcast %cst_114 : f32 to vector<64x1xf32>
    %374 = arith.select %372, %24, %373 : vector<64x1xi1>, vector<64x1xf32>
    %cst_115 = arith.constant dense<0x7F800000> : vector<1xf32>
    %375 = vector.multi_reduction <minimumf>, %374, %cst_115 [0] : vector<64x1xf32> to vector<1xf32>
    %376 = vector.shape_cast %375 : vector<1xf32> to vector<1x1xf32>
    %cst_116 = arith.constant 1.400000e+01 : f32
    %377 = vector.broadcast %cst_116 : f32 to vector<16x64xf32>
    %378 = arith.cmpf oeq, %28, %377 : vector<16x64xf32>
    %379 = vector.broadcast %376 : vector<1x1xf32> to vector<16x64xf32>
    %380 = arith.cmpf oeq, %26, %379 : vector<16x64xf32>
    %381 = arith.andi %378, %380 : vector<16x64xi1>
    %cst_117 = arith.constant 1.000000e+00 : f32
    %382 = vector.broadcast %cst_117 : f32 to vector<16x64xf32>
    %383 = arith.select %381, %382, %359 : vector<16x64xi1>, vector<16x64xf32>
    %cst_118 = arith.constant 1.400000e+01 : f32
    %384 = vector.broadcast %cst_118 : f32 to vector<16x1xf32>
    %385 = arith.cmpf oeq, %30, %384 : vector<16x1xf32>
    %386 = vector.shape_cast %370 : vector<1x1xf32> to vector<1x1xf32>
    %387 = vector.broadcast %386 : vector<1x1xf32> to vector<16x1xf32>
    %388 = arith.select %385, %387, %364 : vector<16x1xi1>, vector<16x1xf32>
    %389 = vector.broadcast %376 : vector<1x1xf32> to vector<64x1xf32>
    %390 = arith.cmpf oeq, %24, %389 : vector<64x1xf32>
    %cst_119 = arith.constant 0xFF800000 : f32
    %391 = vector.broadcast %cst_119 : f32 to vector<64x1xf32>
    %392 = arith.select %390, %391, %368 : vector<64x1xi1>, vector<64x1xf32>
    %cst_120 = arith.constant dense<0xFF800000> : vector<1xf32>
    %393 = vector.multi_reduction <maximumf>, %392, %cst_120 [0] : vector<64x1xf32> to vector<1xf32>
    %394 = vector.shape_cast %393 : vector<1xf32> to vector<1x1xf32>
    %395 = vector.broadcast %394 : vector<1x1xf32> to vector<64x1xf32>
    %396 = arith.cmpf oeq, %392, %395 : vector<64x1xf32>
    %cst_121 = arith.constant 6.400000e+01 : f32
    %397 = vector.broadcast %cst_121 : f32 to vector<64x1xf32>
    %398 = arith.select %396, %24, %397 : vector<64x1xi1>, vector<64x1xf32>
    %cst_122 = arith.constant dense<0x7F800000> : vector<1xf32>
    %399 = vector.multi_reduction <minimumf>, %398, %cst_122 [0] : vector<64x1xf32> to vector<1xf32>
    %400 = vector.shape_cast %399 : vector<1xf32> to vector<1x1xf32>
    %cst_123 = arith.constant 1.500000e+01 : f32
    %401 = vector.broadcast %cst_123 : f32 to vector<16x64xf32>
    %402 = arith.cmpf oeq, %28, %401 : vector<16x64xf32>
    %403 = vector.broadcast %400 : vector<1x1xf32> to vector<16x64xf32>
    %404 = arith.cmpf oeq, %26, %403 : vector<16x64xf32>
    %405 = arith.andi %402, %404 : vector<16x64xi1>
    %cst_124 = arith.constant 1.000000e+00 : f32
    %406 = vector.broadcast %cst_124 : f32 to vector<16x64xf32>
    %407 = arith.select %405, %406, %383 : vector<16x64xi1>, vector<16x64xf32>
    %cst_125 = arith.constant 1.500000e+01 : f32
    %408 = vector.broadcast %cst_125 : f32 to vector<16x1xf32>
    %409 = arith.cmpf oeq, %30, %408 : vector<16x1xf32>
    %410 = vector.shape_cast %394 : vector<1x1xf32> to vector<1x1xf32>
    %411 = vector.broadcast %410 : vector<1x1xf32> to vector<16x1xf32>
    %412 = arith.select %409, %411, %388 : vector<16x1xi1>, vector<16x1xf32>
    %cst_126 = arith.constant dense<0.000000e+00> : vector<16x32xf32>
    %413 = tpu.matmul %407, %4, %cst_126 {dimension_numbers = #tpu.dot_dimension_numbers<[1], [0], [0], [1], [0, 0, 1, 1], [], []>} : vector<16x64xf32>, vector<64x32xf32>, vector<16x32xf32> -> vector<16x32xf32>
    %414 = math.tanh %412 : vector<16x1xf32>
    %415 = vector.broadcast %414 : vector<16x1xf32> to vector<16x32xf32>
    %416 = arith.mulf %413, %415 : vector<16x32xf32>
    %c0_127 = arith.constant 0 : index
    %c0_128 = arith.constant 0 : index
    %417 = vector.load %arg17[%c0_127, %c0_128] : memref<16x32xf32, #tpu.memory_space<vmem>>, vector<16x32xf32>
    %c0_129 = arith.constant 0 : index
    %c0_130 = arith.constant 0 : index
    %c0_131 = arith.constant 0 : index
    %418 = vector.load %arg6[%c0_129, %c0_130, %c0_131] : memref<3x1x32xf32, #tpu.memory_space<vmem>>, vector<1x1x32xf32>
    %419 = vector.shape_cast %418 : vector<1x1x32xf32> to vector<1x32xf32>
    %c0_132 = arith.constant 0 : index
    %c0_133 = arith.constant 0 : index
    %c0_134 = arith.constant 0 : index
    %420 = vector.load %arg7[%c0_132, %c0_133, %c0_134] : memref<3x1x32xf32, #tpu.memory_space<vmem>>, vector<1x1x32xf32>
    %421 = vector.shape_cast %420 : vector<1x1x32xf32> to vector<1x32xf32>
    %cst_135 = arith.constant dense<0.000000e+00> : vector<16xf32>
    %422 = vector.multi_reduction <add>, %417, %cst_135 [1] : vector<16x32xf32> to vector<16xf32>
    %423 = vector.shape_cast %422 : vector<16xf32> to vector<16x1xf32>
    %cst_136 = arith.constant 3.200000e+01 : f32
    %424 = vector.broadcast %cst_136 : f32 to vector<16x1xf32>
    %425 = arith.divf %423, %424 : vector<16x1xf32>
    %426 = vector.broadcast %425 : vector<16x1xf32> to vector<16x32xf32>
    %427 = arith.subf %417, %426 : vector<16x32xf32>
    %428 = arith.mulf %427, %427 : vector<16x32xf32>
    %cst_137 = arith.constant dense<0.000000e+00> : vector<16xf32>
    %429 = vector.multi_reduction <add>, %428, %cst_137 [1] : vector<16x32xf32> to vector<16xf32>
    %430 = vector.shape_cast %429 : vector<16xf32> to vector<16x1xf32>
    %cst_138 = arith.constant 0.0322580636 : f32
    %431 = vector.broadcast %cst_138 : f32 to vector<16x1xf32>
    %432 = arith.mulf %430, %431 : vector<16x1xf32>
    %433 = math.sqrt %432 : vector<16x1xf32>
    %434 = vector.broadcast %419 : vector<1x32xf32> to vector<16x32xf32>
    %435 = arith.mulf %434, %427 : vector<16x32xf32>
    %cst_139 = arith.constant 9.99999997E-7 : f32
    %436 = vector.broadcast %cst_139 : f32 to vector<16x1xf32>
    %437 = arith.addf %433, %436 : vector<16x1xf32>
    %438 = vector.broadcast %437 : vector<16x1xf32> to vector<16x32xf32>
    %439 = arith.divf %435, %438 : vector<16x32xf32>
    %440 = vector.broadcast %421 : vector<1x32xf32> to vector<16x32xf32>
    %441 = arith.addf %439, %440 : vector<16x32xf32>
    %c0_140 = arith.constant 0 : index
    %c0_141 = arith.constant 0 : index
    %c0_142 = arith.constant 0 : index
    %442 = vector.load %arg8[%c0_140, %c0_141, %c0_142] : memref<4x32x32xf32, #tpu.memory_space<vmem>>, vector<1x32x32xf32>
    %443 = vector.shape_cast %442 : vector<1x32x32xf32> to vector<32x32xf32>
    %cst_143 = arith.constant dense<0.000000e+00> : vector<16x32xf32>
    %444 = tpu.matmul %441, %443, %cst_143 {dimension_numbers = #tpu.dot_dimension_numbers<[1], [0], [0], [1], [0, 0, 1, 1], [], []>} : vector<16x32xf32>, vector<32x32xf32>, vector<16x32xf32> -> vector<16x32xf32>
    %c0_144 = arith.constant 0 : index
    %c0_145 = arith.constant 0 : index
    %c0_146 = arith.constant 0 : index
    %445 = vector.load %arg9[%c0_144, %c0_145, %c0_146] : memref<4x1x32xf32, #tpu.memory_space<vmem>>, vector<1x1x32xf32>
    %446 = vector.shape_cast %445 : vector<1x1x32xf32> to vector<1x32xf32>
    %447 = vector.broadcast %446 : vector<1x32xf32> to vector<16x32xf32>
    %448 = arith.addf %444, %447 : vector<16x32xf32>
    %c1 = arith.constant 1 : index
    %c0_147 = arith.constant 0 : index
    %c0_148 = arith.constant 0 : index
    %449 = vector.load %arg8[%c1, %c0_147, %c0_148] : memref<4x32x32xf32, #tpu.memory_space<vmem>>, vector<1x32x32xf32>
    %450 = vector.shape_cast %449 : vector<1x32x32xf32> to vector<32x32xf32>
    %cst_149 = arith.constant dense<0.000000e+00> : vector<16x32xf32>
    %451 = tpu.matmul %441, %450, %cst_149 {dimension_numbers = #tpu.dot_dimension_numbers<[1], [0], [0], [1], [0, 0, 1, 1], [], []>} : vector<16x32xf32>, vector<32x32xf32>, vector<16x32xf32> -> vector<16x32xf32>
    %c1_150 = arith.constant 1 : index
    %c0_151 = arith.constant 0 : index
    %c0_152 = arith.constant 0 : index
    %452 = vector.load %arg9[%c1_150, %c0_151, %c0_152] : memref<4x1x32xf32, #tpu.memory_space<vmem>>, vector<1x1x32xf32>
    %453 = vector.shape_cast %452 : vector<1x1x32xf32> to vector<1x32xf32>
    %454 = vector.broadcast %453 : vector<1x32xf32> to vector<16x32xf32>
    %455 = arith.addf %451, %454 : vector<16x32xf32>
    %c2 = arith.constant 2 : index
    %c0_153 = arith.constant 0 : index
    %c0_154 = arith.constant 0 : index
    %456 = vector.load %arg8[%c2, %c0_153, %c0_154] : memref<4x32x32xf32, #tpu.memory_space<vmem>>, vector<1x32x32xf32>
    %457 = vector.shape_cast %456 : vector<1x32x32xf32> to vector<32x32xf32>
    %cst_155 = arith.constant dense<0.000000e+00> : vector<16x32xf32>
    %458 = tpu.matmul %441, %457, %cst_155 {dimension_numbers = #tpu.dot_dimension_numbers<[1], [0], [0], [1], [0, 0, 1, 1], [], []>} : vector<16x32xf32>, vector<32x32xf32>, vector<16x32xf32> -> vector<16x32xf32>
    %c2_156 = arith.constant 2 : index
    %c0_157 = arith.constant 0 : index
    %c0_158 = arith.constant 0 : index
    %459 = vector.load %arg9[%c2_156, %c0_157, %c0_158] : memref<4x1x32xf32, #tpu.memory_space<vmem>>, vector<1x1x32xf32>
    %460 = vector.shape_cast %459 : vector<1x1x32xf32> to vector<1x32xf32>
    %461 = vector.broadcast %460 : vector<1x32xf32> to vector<16x32xf32>
    %462 = arith.addf %458, %461 : vector<16x32xf32>
    %463 = tpu.transpose %455, [1, 0] : vector<16x32xf32> -> vector<32x16xf32>
    %cst_159 = arith.constant dense<0.000000e+00> : vector<16x16xf32>
    %464 = tpu.matmul %448, %463, %cst_159 {dimension_numbers = #tpu.dot_dimension_numbers<[1], [0], [0], [1], [0, 0, 1, 1], [], []>} : vector<16x32xf32>, vector<32x16xf32>, vector<16x16xf32> -> vector<16x16xf32>
    %cst_160 = arith.constant 0.176776692 : f32
    %465 = vector.broadcast %cst_160 : f32 to vector<16x16xf32>
    %466 = arith.mulf %464, %465 : vector<16x16xf32>
    %cst_161 = arith.constant dense<0xFF800000> : vector<16xf32>
    %467 = vector.multi_reduction <maximumf>, %466, %cst_161 [1] : vector<16x16xf32> to vector<16xf32>
    %468 = vector.shape_cast %467 : vector<16xf32> to vector<16x1xf32>
    %469 = vector.broadcast %468 : vector<16x1xf32> to vector<16x16xf32>
    %470 = arith.subf %466, %469 : vector<16x16xf32>
    %471 = math.exp %470 : vector<16x16xf32>
    %cst_162 = arith.constant dense<0.000000e+00> : vector<16xf32>
    %472 = vector.multi_reduction <add>, %471, %cst_162 [1] : vector<16x16xf32> to vector<16xf32>
    %473 = vector.shape_cast %472 : vector<16xf32> to vector<16x1xf32>
    %474 = tpu.reciprocal %473 {approx = true} : vector<16x1xf32> -> vector<16x1xf32>
    %475 = vector.broadcast %474 : vector<16x1xf32> to vector<16x16xf32>
    %476 = arith.mulf %471, %475 : vector<16x16xf32>
    %cst_163 = arith.constant dense<0.000000e+00> : vector<16x32xf32>
    %477 = tpu.matmul %476, %462, %cst_163 {dimension_numbers = #tpu.dot_dimension_numbers<[1], [0], [0], [1], [0, 0, 1, 1], [], []>} : vector<16x16xf32>, vector<16x32xf32>, vector<16x32xf32> -> vector<16x32xf32>
    %c3 = arith.constant 3 : index
    %c0_164 = arith.constant 0 : index
    %c0_165 = arith.constant 0 : index
    %478 = vector.load %arg8[%c3, %c0_164, %c0_165] : memref<4x32x32xf32, #tpu.memory_space<vmem>>, vector<1x32x32xf32>
    %479 = vector.shape_cast %478 : vector<1x32x32xf32> to vector<32x32xf32>
    %cst_166 = arith.constant dense<0.000000e+00> : vector<16x32xf32>
    %480 = tpu.matmul %477, %479, %cst_166 {dimension_numbers = #tpu.dot_dimension_numbers<[1], [0], [0], [1], [0, 0, 1, 1], [], []>} : vector<16x32xf32>, vector<32x32xf32>, vector<16x32xf32> -> vector<16x32xf32>
    %c3_167 = arith.constant 3 : index
    %c0_168 = arith.constant 0 : index
    %c0_169 = arith.constant 0 : index
    %481 = vector.load %arg9[%c3_167, %c0_168, %c0_169] : memref<4x1x32xf32, #tpu.memory_space<vmem>>, vector<1x1x32xf32>
    %482 = vector.shape_cast %481 : vector<1x1x32xf32> to vector<1x32xf32>
    %483 = vector.broadcast %482 : vector<1x32xf32> to vector<16x32xf32>
    %484 = arith.addf %480, %483 : vector<16x32xf32>
    %485 = arith.addf %417, %484 : vector<16x32xf32>
    %c1_170 = arith.constant 1 : index
    %c0_171 = arith.constant 0 : index
    %c0_172 = arith.constant 0 : index
    %486 = vector.load %arg6[%c1_170, %c0_171, %c0_172] : memref<3x1x32xf32, #tpu.memory_space<vmem>>, vector<1x1x32xf32>
    %487 = vector.shape_cast %486 : vector<1x1x32xf32> to vector<1x32xf32>
    %c1_173 = arith.constant 1 : index
    %c0_174 = arith.constant 0 : index
    %c0_175 = arith.constant 0 : index
    %488 = vector.load %arg7[%c1_173, %c0_174, %c0_175] : memref<3x1x32xf32, #tpu.memory_space<vmem>>, vector<1x1x32xf32>
    %489 = vector.shape_cast %488 : vector<1x1x32xf32> to vector<1x32xf32>
    %cst_176 = arith.constant dense<0.000000e+00> : vector<16xf32>
    %490 = vector.multi_reduction <add>, %485, %cst_176 [1] : vector<16x32xf32> to vector<16xf32>
    %491 = vector.shape_cast %490 : vector<16xf32> to vector<16x1xf32>
    %cst_177 = arith.constant 3.200000e+01 : f32
    %492 = vector.broadcast %cst_177 : f32 to vector<16x1xf32>
    %493 = arith.divf %491, %492 : vector<16x1xf32>
    %494 = vector.broadcast %493 : vector<16x1xf32> to vector<16x32xf32>
    %495 = arith.subf %485, %494 : vector<16x32xf32>
    %496 = arith.mulf %495, %495 : vector<16x32xf32>
    %cst_178 = arith.constant dense<0.000000e+00> : vector<16xf32>
    %497 = vector.multi_reduction <add>, %496, %cst_178 [1] : vector<16x32xf32> to vector<16xf32>
    %498 = vector.shape_cast %497 : vector<16xf32> to vector<16x1xf32>
    %cst_179 = arith.constant 0.0322580636 : f32
    %499 = vector.broadcast %cst_179 : f32 to vector<16x1xf32>
    %500 = arith.mulf %498, %499 : vector<16x1xf32>
    %501 = math.sqrt %500 : vector<16x1xf32>
    %502 = vector.broadcast %487 : vector<1x32xf32> to vector<16x32xf32>
    %503 = arith.mulf %502, %495 : vector<16x32xf32>
    %cst_180 = arith.constant 9.99999997E-7 : f32
    %504 = vector.broadcast %cst_180 : f32 to vector<16x1xf32>
    %505 = arith.addf %501, %504 : vector<16x1xf32>
    %506 = vector.broadcast %505 : vector<16x1xf32> to vector<16x32xf32>
    %507 = arith.divf %503, %506 : vector<16x32xf32>
    %508 = vector.broadcast %489 : vector<1x32xf32> to vector<16x32xf32>
    %509 = arith.addf %507, %508 : vector<16x32xf32>
    %c0_181 = arith.constant 0 : index
    %c0_182 = arith.constant 0 : index
    %c0_183 = arith.constant 0 : index
    %510 = vector.load %arg10[%c0_181, %c0_182, %c0_183] : memref<4x32x32xf32, #tpu.memory_space<vmem>>, vector<1x32x32xf32>
    %511 = vector.shape_cast %510 : vector<1x32x32xf32> to vector<32x32xf32>
    %cst_184 = arith.constant dense<0.000000e+00> : vector<16x32xf32>
    %512 = tpu.matmul %509, %511, %cst_184 {dimension_numbers = #tpu.dot_dimension_numbers<[1], [0], [0], [1], [0, 0, 1, 1], [], []>} : vector<16x32xf32>, vector<32x32xf32>, vector<16x32xf32> -> vector<16x32xf32>
    %c0_185 = arith.constant 0 : index
    %c0_186 = arith.constant 0 : index
    %c0_187 = arith.constant 0 : index
    %513 = vector.load %arg11[%c0_185, %c0_186, %c0_187] : memref<4x1x32xf32, #tpu.memory_space<vmem>>, vector<1x1x32xf32>
    %514 = vector.shape_cast %513 : vector<1x1x32xf32> to vector<1x32xf32>
    %515 = vector.broadcast %514 : vector<1x32xf32> to vector<16x32xf32>
    %516 = arith.addf %512, %515 : vector<16x32xf32>
    %c1_188 = arith.constant 1 : index
    %c0_189 = arith.constant 0 : index
    %c0_190 = arith.constant 0 : index
    %517 = vector.load %arg10[%c1_188, %c0_189, %c0_190] : memref<4x32x32xf32, #tpu.memory_space<vmem>>, vector<1x32x32xf32>
    %518 = vector.shape_cast %517 : vector<1x32x32xf32> to vector<32x32xf32>
    %cst_191 = arith.constant dense<0.000000e+00> : vector<16x32xf32>
    %519 = tpu.matmul %416, %518, %cst_191 {dimension_numbers = #tpu.dot_dimension_numbers<[1], [0], [0], [1], [0, 0, 1, 1], [], []>} : vector<16x32xf32>, vector<32x32xf32>, vector<16x32xf32> -> vector<16x32xf32>
    %c1_192 = arith.constant 1 : index
    %c0_193 = arith.constant 0 : index
    %c0_194 = arith.constant 0 : index
    %520 = vector.load %arg11[%c1_192, %c0_193, %c0_194] : memref<4x1x32xf32, #tpu.memory_space<vmem>>, vector<1x1x32xf32>
    %521 = vector.shape_cast %520 : vector<1x1x32xf32> to vector<1x32xf32>
    %522 = vector.broadcast %521 : vector<1x32xf32> to vector<16x32xf32>
    %523 = arith.addf %519, %522 : vector<16x32xf32>
    %c2_195 = arith.constant 2 : index
    %c0_196 = arith.constant 0 : index
    %c0_197 = arith.constant 0 : index
    %524 = vector.load %arg10[%c2_195, %c0_196, %c0_197] : memref<4x32x32xf32, #tpu.memory_space<vmem>>, vector<1x32x32xf32>
    %525 = vector.shape_cast %524 : vector<1x32x32xf32> to vector<32x32xf32>
    %cst_198 = arith.constant dense<0.000000e+00> : vector<16x32xf32>
    %526 = tpu.matmul %416, %525, %cst_198 {dimension_numbers = #tpu.dot_dimension_numbers<[1], [0], [0], [1], [0, 0, 1, 1], [], []>} : vector<16x32xf32>, vector<32x32xf32>, vector<16x32xf32> -> vector<16x32xf32>
    %c2_199 = arith.constant 2 : index
    %c0_200 = arith.constant 0 : index
    %c0_201 = arith.constant 0 : index
    %527 = vector.load %arg11[%c2_199, %c0_200, %c0_201] : memref<4x1x32xf32, #tpu.memory_space<vmem>>, vector<1x1x32xf32>
    %528 = vector.shape_cast %527 : vector<1x1x32xf32> to vector<1x32xf32>
    %529 = vector.broadcast %528 : vector<1x32xf32> to vector<16x32xf32>
    %530 = arith.addf %526, %529 : vector<16x32xf32>
    %531 = tpu.transpose %523, [1, 0] : vector<16x32xf32> -> vector<32x16xf32>
    %cst_202 = arith.constant dense<0.000000e+00> : vector<16x16xf32>
    %532 = tpu.matmul %516, %531, %cst_202 {dimension_numbers = #tpu.dot_dimension_numbers<[1], [0], [0], [1], [0, 0, 1, 1], [], []>} : vector<16x32xf32>, vector<32x16xf32>, vector<16x16xf32> -> vector<16x16xf32>
    %cst_203 = arith.constant 0.176776692 : f32
    %533 = vector.broadcast %cst_203 : f32 to vector<16x16xf32>
    %534 = arith.mulf %532, %533 : vector<16x16xf32>
    %cst_204 = arith.constant dense<0xFF800000> : vector<16xf32>
    %535 = vector.multi_reduction <maximumf>, %534, %cst_204 [1] : vector<16x16xf32> to vector<16xf32>
    %536 = vector.shape_cast %535 : vector<16xf32> to vector<16x1xf32>
    %537 = vector.broadcast %536 : vector<16x1xf32> to vector<16x16xf32>
    %538 = arith.subf %534, %537 : vector<16x16xf32>
    %539 = math.exp %538 : vector<16x16xf32>
    %cst_205 = arith.constant dense<0.000000e+00> : vector<16xf32>
    %540 = vector.multi_reduction <add>, %539, %cst_205 [1] : vector<16x16xf32> to vector<16xf32>
    %541 = vector.shape_cast %540 : vector<16xf32> to vector<16x1xf32>
    %542 = tpu.reciprocal %541 {approx = true} : vector<16x1xf32> -> vector<16x1xf32>
    %543 = vector.broadcast %542 : vector<16x1xf32> to vector<16x16xf32>
    %544 = arith.mulf %539, %543 : vector<16x16xf32>
    %cst_206 = arith.constant dense<0.000000e+00> : vector<16x32xf32>
    %545 = tpu.matmul %544, %530, %cst_206 {dimension_numbers = #tpu.dot_dimension_numbers<[1], [0], [0], [1], [0, 0, 1, 1], [], []>} : vector<16x16xf32>, vector<16x32xf32>, vector<16x32xf32> -> vector<16x32xf32>
    %c3_207 = arith.constant 3 : index
    %c0_208 = arith.constant 0 : index
    %c0_209 = arith.constant 0 : index
    %546 = vector.load %arg10[%c3_207, %c0_208, %c0_209] : memref<4x32x32xf32, #tpu.memory_space<vmem>>, vector<1x32x32xf32>
    %547 = vector.shape_cast %546 : vector<1x32x32xf32> to vector<32x32xf32>
    %cst_210 = arith.constant dense<0.000000e+00> : vector<16x32xf32>
    %548 = tpu.matmul %545, %547, %cst_210 {dimension_numbers = #tpu.dot_dimension_numbers<[1], [0], [0], [1], [0, 0, 1, 1], [], []>} : vector<16x32xf32>, vector<32x32xf32>, vector<16x32xf32> -> vector<16x32xf32>
    %c3_211 = arith.constant 3 : index
    %c0_212 = arith.constant 0 : index
    %c0_213 = arith.constant 0 : index
    %549 = vector.load %arg11[%c3_211, %c0_212, %c0_213] : memref<4x1x32xf32, #tpu.memory_space<vmem>>, vector<1x1x32xf32>
    %550 = vector.shape_cast %549 : vector<1x1x32xf32> to vector<1x32xf32>
    %551 = vector.broadcast %550 : vector<1x32xf32> to vector<16x32xf32>
    %552 = arith.addf %548, %551 : vector<16x32xf32>
    %553 = arith.addf %485, %552 : vector<16x32xf32>
    %c2_214 = arith.constant 2 : index
    %c0_215 = arith.constant 0 : index
    %c0_216 = arith.constant 0 : index
    %554 = vector.load %arg6[%c2_214, %c0_215, %c0_216] : memref<3x1x32xf32, #tpu.memory_space<vmem>>, vector<1x1x32xf32>
    %555 = vector.shape_cast %554 : vector<1x1x32xf32> to vector<1x32xf32>
    %c2_217 = arith.constant 2 : index
    %c0_218 = arith.constant 0 : index
    %c0_219 = arith.constant 0 : index
    %556 = vector.load %arg7[%c2_217, %c0_218, %c0_219] : memref<3x1x32xf32, #tpu.memory_space<vmem>>, vector<1x1x32xf32>
    %557 = vector.shape_cast %556 : vector<1x1x32xf32> to vector<1x32xf32>
    %cst_220 = arith.constant dense<0.000000e+00> : vector<16xf32>
    %558 = vector.multi_reduction <add>, %553, %cst_220 [1] : vector<16x32xf32> to vector<16xf32>
    %559 = vector.shape_cast %558 : vector<16xf32> to vector<16x1xf32>
    %cst_221 = arith.constant 3.200000e+01 : f32
    %560 = vector.broadcast %cst_221 : f32 to vector<16x1xf32>
    %561 = arith.divf %559, %560 : vector<16x1xf32>
    %562 = vector.broadcast %561 : vector<16x1xf32> to vector<16x32xf32>
    %563 = arith.subf %553, %562 : vector<16x32xf32>
    %564 = arith.mulf %563, %563 : vector<16x32xf32>
    %cst_222 = arith.constant dense<0.000000e+00> : vector<16xf32>
    %565 = vector.multi_reduction <add>, %564, %cst_222 [1] : vector<16x32xf32> to vector<16xf32>
    %566 = vector.shape_cast %565 : vector<16xf32> to vector<16x1xf32>
    %cst_223 = arith.constant 0.0322580636 : f32
    %567 = vector.broadcast %cst_223 : f32 to vector<16x1xf32>
    %568 = arith.mulf %566, %567 : vector<16x1xf32>
    %569 = math.sqrt %568 : vector<16x1xf32>
    %570 = vector.broadcast %555 : vector<1x32xf32> to vector<16x32xf32>
    %571 = arith.mulf %570, %563 : vector<16x32xf32>
    %cst_224 = arith.constant 9.99999997E-7 : f32
    %572 = vector.broadcast %cst_224 : f32 to vector<16x1xf32>
    %573 = arith.addf %569, %572 : vector<16x1xf32>
    %574 = vector.broadcast %573 : vector<16x1xf32> to vector<16x32xf32>
    %575 = arith.divf %571, %574 : vector<16x32xf32>
    %576 = vector.broadcast %557 : vector<1x32xf32> to vector<16x32xf32>
    %577 = arith.addf %575, %576 : vector<16x32xf32>
    %c0_225 = arith.constant 0 : index
    %c0_226 = arith.constant 0 : index
    %578 = vector.load %arg12[%c0_225, %c0_226] : memref<32x2048xf32, #tpu.memory_space<vmem>>, vector<32x2048xf32>
    %cst_227 = arith.constant dense<0.000000e+00> : vector<16x2048xf32>
    %579 = tpu.matmul %577, %578, %cst_227 {dimension_numbers = #tpu.dot_dimension_numbers<[1], [0], [0], [1], [0, 0, 1, 1], [], []>} : vector<16x32xf32>, vector<32x2048xf32>, vector<16x2048xf32> -> vector<16x2048xf32>
    %c0_228 = arith.constant 0 : index
    %c0_229 = arith.constant 0 : index
    %580 = vector.load %arg13[%c0_228, %c0_229] : memref<1x2048xf32, #tpu.memory_space<vmem>>, vector<1x2048xf32>
    %581 = vector.broadcast %580 : vector<1x2048xf32> to vector<16x2048xf32>
    %582 = arith.addf %579, %581 : vector<16x2048xf32>
    %cst_230 = arith.constant 0.000000e+00 : f32
    %583 = vector.broadcast %cst_230 : f32 to vector<16x2048xf32>
    %584 = arith.maximumf %582, %583 : vector<16x2048xf32>
    %c0_231 = arith.constant 0 : index
    %c0_232 = arith.constant 0 : index
    %585 = vector.load %arg14[%c0_231, %c0_232] : memref<2048x32xf32, #tpu.memory_space<vmem>>, vector<2048x32xf32>
    %cst_233 = arith.constant dense<0.000000e+00> : vector<16x32xf32>
    %586 = tpu.matmul %584, %585, %cst_233 {dimension_numbers = #tpu.dot_dimension_numbers<[1], [0], [0], [1], [0, 0, 1, 1], [], []>} : vector<16x2048xf32>, vector<2048x32xf32>, vector<16x32xf32> -> vector<16x32xf32>
    %587 = arith.addf %553, %586 : vector<16x32xf32>
    %c0_234 = arith.constant 0 : index
    %c0_235 = arith.constant 0 : index
    %588 = vector.load %arg15[%c0_234, %c0_235] : memref<1x32xf32, #tpu.memory_space<vmem>>, vector<1x32xf32>
    %589 = vector.broadcast %588 : vector<1x32xf32> to vector<16x32xf32>
    %590 = arith.addf %587, %589 : vector<16x32xf32>
    %c0_236 = arith.constant 0 : index
    %c0_237 = arith.constant 0 : index
    %591 = vector.load %arg17[%c0_236, %c0_237] : memref<16x32xf32, #tpu.memory_space<vmem>>, vector<16x32xf32>
    tpu.vector_store %arg17[%c0_236, %c0_237], %590 {strides = array<i32>} : memref<16x32xf32, #tpu.memory_space<vmem>>, vector<16x32xf32>,
    %592 = tpu.transpose %590, [1, 0] : vector<16x32xf32> -> vector<32x16xf32>
    %cst_238 = arith.constant dense<0.000000e+00> : vector<64x16xf32>
    %593 = tpu.matmul %4, %592, %cst_238 {dimension_numbers = #tpu.dot_dimension_numbers<[1], [0], [0], [1], [0, 0, 1, 1], [], []>} : vector<64x32xf32>, vector<32x16xf32>, vector<64x16xf32> -> vector<64x16xf32>
    %cst_239 = arith.constant dense<0.000000e+00> : vector<64x16xf32>
    %594 = tpu.matmul %6, %593, %cst_239 {dimension_numbers = #tpu.dot_dimension_numbers<[1], [0], [0], [1], [0, 0, 1, 1], [], []>} : vector<64x64xf32>, vector<64x16xf32>, vector<64x16xf32> -> vector<64x16xf32>
    %cst_240 = arith.constant 0.000000e+00 : f32
    %595 = vector.broadcast %cst_240 : f32 to vector<64x16xf32>
    %596 = arith.maximumf %594, %595 : vector<64x16xf32>
    %c0_241 = arith.constant 0 : index
    %c0_242 = arith.constant 0 : index
    %c0_243 = arith.constant 0 : index
    %597 = vector.load %arg16[%c0_241, %c0_242, %c0_243] : memref<1x64x16xf32, #tpu.memory_space<vmem>>, vector<1x64x16xf32>
    %598 = vector.shape_cast %597 : vector<1x64x16xf32> to vector<64x16xf32>
    %599 = vector.shape_cast %596 : vector<64x16xf32> to vector<1x64x16xf32>
    tpu.vector_store %arg16[%c0_241, %c0_242, %c0_243], %599 {strides = array<i32>} : memref<1x64x16xf32, #tpu.memory_space<vmem>>, vector<1x64x16xf32>,
    return
  }
  func.func @transform_0(%arg0: i32) -> (i32, i32, i32) {
    %c0_i32 = arith.constant 0 : i32
    %c0_i32_0 = arith.constant 0 : i32
    %c0_i32_1 = arith.constant 0 : i32
    return %arg0, %c0_i32, %c0_i32_0 : i32, i32, i32
  }
  func.func @transform_1(%arg0: i32) -> (i32, i32, i32) {
    %c0_i32 = arith.constant 0 : i32
    %c0_i32_0 = arith.constant 0 : i32
    %c0_i32_1 = arith.constant 0 : i32
    return %arg0, %c0_i32, %c0_i32_0 : i32, i32, i32
  }
  func.func @transform_2(%arg0: i32) -> (i32, i32, i32) {
    %c0_i32 = arith.constant 0 : i32
    %c0_i32_0 = arith.constant 0 : i32
    %c0_i32_1 = arith.constant 0 : i32
    return %arg0, %c0_i32, %c0_i32_0 : i32, i32, i32
  }
  func.func @transform_3(%arg0: i32) -> (i32, i32) {
    %c0_i32 = arith.constant 0 : i32
    %c0_i32_0 = arith.constant 0 : i32
    %c0_i32_1 = arith.constant 0 : i32
    return %c0_i32, %c0_i32_0 : i32, i32
  }
  func.func @transform_4(%arg0: i32) -> (i32, i32) {
    %c0_i32 = arith.constant 0 : i32
    %c0_i32_0 = arith.constant 0 : i32
    %c0_i32_1 = arith.constant 0 : i32
    return %c0_i32, %c0_i32_0 : i32, i32
  }
  func.func @transform_5(%arg0: i32) -> (i32, i32, i32) {
    %c0_i32 = arith.constant 0 : i32
    %c0_i32_0 = arith.constant 0 : i32
    %c0_i32_1 = arith.constant 0 : i32
    %c0_i32_2 = arith.constant 0 : i32
    return %c0_i32, %c0_i32_0, %c0_i32_1 : i32, i32, i32
  }
  func.func @transform_6(%arg0: i32) -> (i32, i32, i32) {
    %c0_i32 = arith.constant 0 : i32
    %c0_i32_0 = arith.constant 0 : i32
    %c0_i32_1 = arith.constant 0 : i32
    %c0_i32_2 = arith.constant 0 : i32
    return %c0_i32, %c0_i32_0, %c0_i32_1 : i32, i32, i32
  }
  func.func @transform_7(%arg0: i32) -> (i32, i32, i32) {
    %c0_i32 = arith.constant 0 : i32
    %c0_i32_0 = arith.constant 0 : i32
    %c0_i32_1 = arith.constant 0 : i32
    %c0_i32_2 = arith.constant 0 : i32
    return %c0_i32, %c0_i32_0, %c0_i32_1 : i32, i32, i32
  }
  func.func @transform_8(%arg0: i32) -> (i32, i32, i32) {
    %c0_i32 = arith.constant 0 : i32
    %c0_i32_0 = arith.constant 0 : i32
    %c0_i32_1 = arith.constant 0 : i32
    %c0_i32_2 = arith.constant 0 : i32
    return %c0_i32, %c0_i32_0, %c0_i32_1 : i32, i32, i32
  }
  func.func @transform_9(%arg0: i32) -> (i32, i32, i32) {
    %c0_i32 = arith.constant 0 : i32
    %c0_i32_0 = arith.constant 0 : i32
    %c0_i32_1 = arith.constant 0 : i32
    %c0_i32_2 = arith.constant 0 : i32
    return %c0_i32, %c0_i32_0, %c0_i32_1 : i32, i32, i32
  }
  func.func @transform_10(%arg0: i32) -> (i32, i32, i32) {
    %c0_i32 = arith.constant 0 : i32
    %c0_i32_0 = arith.constant 0 : i32
    %c0_i32_1 = arith.constant 0 : i32
    %c0_i32_2 = arith.constant 0 : i32
    return %c0_i32, %c0_i32_0, %c0_i32_1 : i32, i32, i32
  }
  func.func @transform_11(%arg0: i32) -> (i32, i32) {
    %c0_i32 = arith.constant 0 : i32
    %c0_i32_0 = arith.constant 0 : i32
    %c0_i32_1 = arith.constant 0 : i32
    return %c0_i32, %c0_i32_0 : i32, i32
  }
  func.func @transform_12(%arg0: i32) -> (i32, i32) {
    %c0_i32 = arith.constant 0 : i32
    %c0_i32_0 = arith.constant 0 : i32
    %c0_i32_1 = arith.constant 0 : i32
    return %c0_i32, %c0_i32_0 : i32, i32
  }
  func.func @transform_13(%arg0: i32) -> (i32, i32) {
    %c0_i32 = arith.constant 0 : i32
    %c0_i32_0 = arith.constant 0 : i32
    %c0_i32_1 = arith.constant 0 : i32
    return %c0_i32, %c0_i32_0 : i32, i32
  }
  func.func @transform_14(%arg0: i32) -> (i32, i32) {
    %c0_i32 = arith.constant 0 : i32
    %c0_i32_0 = arith.constant 0 : i32
    %c0_i32_1 = arith.constant 0 : i32
    return %c0_i32, %c0_i32_0 : i32, i32
  }
  func.func @transform_15(%arg0: i32) -> (i32, i32, i32) {
    %c0_i32 = arith.constant 0 : i32
    %c0_i32_0 = arith.constant 0 : i32
    %c0_i32_1 = arith.constant 0 : i32
    return %arg0, %c0_i32, %c0_i32_0 : i32, i32, i32
  }
}

</mosaic_0001>

<bundles_post_ra>
// kernel: grcu_forward.1
= control target key start
LH: loop header
LB: loop body
LE: loop exit
PB: predicated region body
PF: predicated region fallthrough
CT: control target
= control target key end

     0   :  { %s6807_s18 = smov 0   ;;  %s9913_s0 = inlined_call_operand.vmem [shape: f32[3,64,64], index: 0, kind: input, shape index: {}]   ;;  %s9914_s1 = inlined_call_operand.vmem [shape: f32[3,64,32], index: 1, kind: input, shape index: {}]   ;;  %s9915_s2 = inlined_call_operand.vmem [shape: f32[3,64,1], index: 2, kind: input, shape index: {}]   ;;  %s9916_s3 = inlined_call_operand.vmem [shape: f32[16,32], index: 3, kind: input, shape index: {}]   ;;  %s9917_s4 = inlined_call_operand.vmem [shape: f32[1,32], index: 4, kind: input, shape index: {}]   ;;  %s9918_s5 = inlined_call_operand.vmem [shape: f32[3,1,32], index: 5, kind: input, shape index: {}]   ;;  %s9919_s6 = inlined_call_operand.vmem [shape: f32[3,1,32], index: 6, kind: input, shape index: {}]   ;;  %s9920_s7 = inlined_call_operand.vmem [shape: f32[4,32,32], index: 7, kind: input, shape index: {}]   ;;  %s9921_s8 = inlined_call_operand.vmem [shape: f32[4,1,32], index: 8, kind: input, shape index: {}]   ;;  %s9922_s9 = inlined_call_operand.vmem [shape: f32[4,32,32], index: 9, kind: input, shape index: {}]   ;;  %s9923_s10 = inlined_call_operand.vmem [shape: f32[4,1,32], index: 10, kind: input, shape index: {}]   ;;  %s9924_s11 = inlined_call_operand.vmem [shape: f32[32,2048], index: 11, kind: input, shape index: {}]   ;;  %s9925_s12 = inlined_call_operand.vmem [shape: f32[1,2048], index: 12, kind: input, shape index: {}]   ;;  %s9926_s13 = inlined_call_operand.vmem [shape: f32[2048,32], index: 13, kind: input, shape index: {}]   ;;  %s9927_s14 = inlined_call_operand.vmem [shape: f32[1,32], index: 14, kind: input, shape index: {}]   ;;  %s9928_s15 = inlined_call_operand.vmem [shape: f32[3,64,16], index: 15, kind: output, shape index: {}]  }
   0x1 LB: > { %9960 = sst [smem:[#allocation3_spill]] %s6723_s18  ;;  %s5481_s19 = sadd.s32 4294967295, %s6723_s18   ;;  %s6723_s18 = sphi %s6807_s18, %s25_s18  }
   0x2   : > { %p5485_p0 = scmp.ge.s32.totalorder %s6723_s18, 1  ;;  %p457_p1 = scmp.lt.s32.totalorder %s6723_s18, 4 }
   0x4   : > { %p458_p2 = pnand %p5485_p0, %p457_p1 }
   0x5   : > { %p515_p3 = scmp.lt.s32.totalorder (!%p458_p2), %s5481_s19, 2  ;;  %p5494_p4 = scmp.ne.s32.totalorder (!%p458_p2), %s5481_s19, 0 }
   0x6   : > { %461 = sbr.rel (%p458_p2) target bundleno = 4431 (0x114f), region = 80 }
   0xd   : > { %s516_s20 = scalar_select %p515_p3, %s5481_s19, 2 }
   0xe   : > { %538 = sbr.rel (%p5494_p4) target bundleno = 21 (0x15), region = 84  ;;  %v539_v0 = vld [vmem:[%s9916_s3] sm:$0xff] (!%p5494_p4)  ;;  %vm541_vm0 = vcmask (!%p5494_p4), 261120   ;;  %v540_v1 = vld [vmem:[%s9916_s3 + $0x8] sm:$0xff] (!%p5494_p4) }
   0xf   : > { %s5610_s21 = sshll.u32 %s516_s20, 6  ;;  %542 = vst.msk [vmem:[#allocation2] sm:$0xff] (!%p5494_p4), %vm541_vm0, %v539_v0  ;;  %543 = vst.msk [vmem:[#allocation2 + $0x8] sm:$0xff] (!%p5494_p4), %vm541_vm0, %v540_v1 }
  0x10   : > { %s6818_s24 = scalar_lea.vmem %s9913_s0, %s5610_s21  ;;  %s6823_s27 = scalar_lea.vmem %s9914_s1, %s5610_s21 }
  0x11   : > { %s6828_s30 = scalar_lea.vmem %s9915_s2, %s5610_s21  ;;  %s6833_s18 = scalar_lea.vmem %s9928_s15, %s5610_s21 }
  0x15 PF: > { %v560_v2 = vld [vmem:[%s9917_s4] sm:$0x1]  ;;  %vm562_vm1 = vcmask 253952   ;;  %v576_v3 = vlaneseq  ;;  %v545_v8 = vld [vmem:[%s6823_s27 + $0x8] sm:$0xff]  ;;  %v546_v10 = vld [vmem:[%s6823_s27 + $0x10] sm:$0xff]  ;;  %vm9942_vm2 = vcmask 261120  }
  0x16   : > { %v561_v4 = vmul.f32 %v560_v2, %v560_v2  ;;  %v544_v9 = vld [vmem:[%s6823_s27] sm:$0xff]  ;;  %v547_v11 = vld [vmem:[%s6823_s27 + $0x18] sm:$0xff]  ;;  %v549_v18 = vld [vmem:[%s6823_s27 + $0x28] sm:$0xff]  ;;  %v6725_v58 = vmov 0   ;;  %vm662_vm5 = vcmask 7168  }
  0x17   : > { %v6845_v5 = vshrl.u32 %v576_v3, 7  ;;  %v548_v17 = vld [vmem:[%s6823_s27 + $0x20] sm:$0xff]  ;;  %v550_v25 = vld [vmem:[%s6823_s27 + $0x30] sm:$0xff]  ;;  %v551_v26 = vld [vmem:[%s6823_s27 + $0x38] sm:$0xff]  ;;  %6649 = vset.pattern.permute.xlu1 %v6725_v58  ;;  %6650 = vset.pattern.permute.xlu0 %v6725_v58 }
  0x18   : > { %v563_v6 = vsel %vm562_vm1, %v561_v4, 0.0  ;;  %v2151_v33 = vld [vmem:[#allocation2] sm:$0xff]  ;;  %v2152_v34 = vld [vmem:[#allocation2 + $0x8] sm:$0xff]  ;;  %v628_v62 = vld [vmem:[%s6828_s30 + $0x10] sm:$0xff] }
  0x19   : > { %v6848_v7 = vsub.s32 0, %v6845_v5  ;;  %564 = vadd.xlane.f32.xlu0 %v563_v6  ;;  %v2155_v35 = vsel %vm9942_vm2, %v2151_v33, 0.0  ;;  %v2158_v36 = vsel %vm9942_vm2, %v2152_v34, 0.0  ;;  %v627_v60 = vld [vmem:[%s6828_s30 + $0x8] sm:$0xff]  ;;  %v626_v61 = vld [vmem:[%s6828_s30] sm:$0xff]  ;;  %v629_v63 = vld [vmem:[%s6828_s30 + $0x18] sm:$0xff] }
  0x1a   : > { %v630_v0 = vld [vmem:[%s6828_s30 + $0x20] sm:$0xff] }
  0x1b   : > { %v579_v12 = vrot.slane %v560_v2, %v6848_v7 }
  0x1d   : > { %v582_v13 = vmul.f32 %v579_v12, %v545_v8  ;;  %v581_v14 = vmul.f32 %v579_v12, %v544_v9  ;;  %v583_v15 = vmul.f32 %v579_v12, %v546_v10  ;;  %v584_v16 = vmul.f32 %v579_v12, %v547_v11  ;;  %v631_v10 = vld [vmem:[%s6828_s30 + $0x28] sm:$0xff]  ;;  %v632_v11 = vld [vmem:[%s6828_s30 + $0x30] sm:$0xff] }
  0x1e   : > { %v585_v23 = vmul.f32 %v579_v12, %v548_v17  ;;  %v586_v24 = vmul.f32 %v579_v12, %v549_v18  ;;  %v587_v29 = vmul.f32 %v579_v12, %v550_v25  ;;  %v588_v30 = vmul.f32 %v579_v12, %v551_v26  ;;  %v633_v12 = vld [vmem:[%s6828_s30 + $0x38] sm:$0xff] }
  0x1f   : > { %v593_v19 = vsel %vm9942_vm2, %v582_v13, 0.0  ;;  %v590_v20 = vsel %vm9942_vm2, %v581_v14, 0.0  ;;  %v596_v21 = vsel %vm9942_vm2, %v583_v15, 0.0  ;;  %v599_v22 = vsel %vm9942_vm2, %v584_v16, 0.0 }
  0x20   : > { %594 = vadd.xlane.f32.xlu1 %v593_v19  ;;  %591 = vadd.xlane.f32.xlu0 %v590_v20  ;;  %v602_v27 = vsel %vm9942_vm2, %v585_v23, 0.0  ;;  %v605_v28 = vsel %vm9942_vm2, %v586_v24, 0.0  ;;  %v608_v31 = vsel %vm9942_vm2, %v587_v29, 0.0  ;;  %v611_v32 = vsel %vm9942_vm2, %v588_v30, 0.0 }
  0x24   : > { %597 = vadd.xlane.f32.xlu1 %v596_v21  ;;  %600 = vadd.xlane.f32.xlu0 %v599_v22 }
  0x28   : > { %603 = vadd.xlane.f32.xlu1 %v602_v27  ;;  %606 = vadd.xlane.f32.xlu0 %v605_v28 }
  0x2c   : > { %609 = vadd.xlane.f32.xlu1 %v608_v31  ;;  %612 = vadd.xlane.f32.xlu0 %v611_v32 }
  0x30   : > { %2156 = vadd.xlane.f32.xlu1 %v2155_v35  ;;  %2159 = vadd.xlane.f32.xlu0 %v2158_v36 }
  0xa6   : > { %v565_v37 = vpop.xlane.xlu0 %564 }
  0xa7   : > { %6651 = vrsqrt.f32 %v565_v37  ;;  %vm568_vm3 = vcmp.eq.f32.partialorder %v565_v37, inf  ;;  %v571_v44 = vand.u32 2147483648, %v565_v37  ;;  %vm570_vm4 = vcmp.eq.f32.partialorder %v565_v37, 0.0 }
  0xad   : > { %v595_v38 = vpop.xlane.xlu1 %594  ;;  %v592_v39 = vpop.xlane.xlu0 %591 }
  0xb1   : > { %v6652_v40 = vpop.eup %6651  ;;  %v598_v41 = vpop.xlane.xlu1 %597 }
  0xb2   : > { %v601_v42 = vpop.xlane.xlu0 %600  ;;  %v567_v43 = vmul.f32 %v6652_v40, %v565_v37 }
  0xb4   : > { %v569_v45 = vsel %vm568_vm3, %v565_v37, %v567_v43 }
  0xb5   : > { %v572_v46 = vsel %vm570_vm4, %v571_v44, %v569_v45  ;;  %v604_v47 = vpop.xlane.xlu1 %603  ;;  %v644_v45 = vadd.s32 8, %v6845_v5 }
  0xb6   : > { %v607_v48 = vpop.xlane.xlu0 %606  ;;  %6653 = vrcp.f32 %v572_v46  ;;  %v645_v46 = vadd.s32 16, %v6845_v5 }
  0xb8   : > { %v6932_v58 = vcvt.s32.f32 %v645_v46 }
  0xb9   : > { %v610_v49 = vpop.xlane.xlu1 %609 }
  0xba   : > { %v613_v50 = vpop.xlane.xlu0 %612 }
  0xbd   : > { %v2157_v51 = vpop.xlane.xlu1 %2156 }
  0xbe   : > { %v2160_v52 = vpop.xlane.xlu0 %2159  ;;  %v2162_v53 = vmul.f32 0.03125, %v2157_v51  ;;  %v649_v51 = vadd.s32 48, %v6845_v5 }
  0xbf   : > { %v2163_v54 = vmul.f32 0.03125, %v2160_v52  ;;  %v650_v52 = vadd.s32 56, %v6845_v5 }
  0xc0   : > { %v6654_v55 = vpop.eup %6653  ;;  %v6869_v56 = vsub.f32 %v2151_v33, %v2162_v53 }
  0xc1   : > { %v6871_v57 = vsub.f32 %v2152_v34, %v2163_v54  ;;  %v617_v59 = vrot.slane %v6654_v55, %v6848_v7  ;;  %v6928_v54 = vcvt.s32.f32 %v6845_v5  ;;  %v6930_v55 = vcvt.s32.f32 %v644_v45 }
  0xc2   : > { %v2166_v1 = vmul.f32 %v6869_v56, %v6869_v56 }
  0xc3   : > { %v2167_v2 = vmul.f32 %v6871_v57, %v6871_v57  ;;  %v619_v4 = vmul.f32 %v617_v59, %v595_v38  ;;  %v618_v6 = vmul.f32 %v617_v59, %v592_v39  ;;  %v620_v8 = vmul.f32 %v617_v59, %v598_v41 }
  0xc4   : > { %v621_v9 = vmul.f32 %v617_v59, %v601_v42  ;;  %v622_v13 = vmul.f32 %v617_v59, %v604_v47  ;;  %v623_v14 = vmul.f32 %v617_v59, %v607_v48  ;;  %v624_v15 = vmul.f32 %v617_v59, %v610_v49 }
  0xc5   : > { %v625_v16 = vmul.f32 %v617_v59, %v613_v50  ;;  %v6886_v17 = vadd.f32 %v627_v60, %v619_v4  ;;  %v6888_v18 = vadd.f32 %v626_v61, %v618_v6  ;;  %v6890_v19 = vadd.f32 %v628_v62, %v620_v8 }
  0xc6   : > { %v6892_v20 = vadd.f32 %v629_v63, %v621_v9  ;;  %v6894_v21 = vadd.f32 %v630_v0, %v622_v13  ;;  %v6896_v22 = vadd.f32 %v631_v10, %v623_v14  ;;  %v6898_v23 = vadd.f32 %v632_v11, %v624_v15 }
  0xc7   : > { %v6900_v24 = vadd.f32 %v633_v12, %v625_v16  ;;  %v664_v25 = vsel %vm662_vm5, %v6886_v17, -inf  ;;  %v663_v26 = vsel %vm662_vm5, %v6888_v18, -inf  ;;  %v665_v27 = vsel %vm662_vm5, %v6890_v19, -inf }
  0xc8   : > { %v666_v28 = vsel %vm662_vm5, %v6892_v20, -inf  ;;  %v667_v29 = vsel %vm662_vm5, %v6894_v21, -inf  ;;  %v669_v30 = vsel %vm662_vm5, %v6896_v22, -inf  ;;  %v671_v31 = vsel %vm662_vm5, %v6898_v23, -inf }
  0xc9   : > { %v673_v32 = vsel %vm662_vm5, %v6900_v24, -inf  ;;  %v668_v33 = vmax.f32 %v663_v26, %v667_v29  ;;  %v670_v34 = vmax.f32 %v664_v25, %v669_v30  ;;  %v672_v35 = vmax.f32 %v665_v27, %v671_v31 }
  0xca   : > { %v674_v36 = vmax.f32 %v666_v28, %v673_v32  ;;  %v2168_v37 = vsel %vm9942_vm2, %v2166_v1, 0.0  ;;  %v2171_v38 = vsel %vm9942_vm2, %v2167_v2, 0.0  ;;  %v646_v47 = vadd.s32 24, %v6845_v5 }
  0xcb   : > { %v675_v39 = vmax.f32 %v668_v33, %v670_v34  ;;  %2169 = vadd.xlane.f32.xlu1 %v2168_v37  ;;  %2172 = vadd.xlane.f32.xlu0 %v2171_v38  ;;  %v647_v49 = vadd.s32 32, %v6845_v5  ;;  %v648_v50 = vadd.s32 40, %v6845_v5  ;;  %v6942_v63 = vcvt.s32.f32 %v649_v51 }
  0xcc   : > { %v676_v40 = vmax.f32 %v672_v35, %v674_v36  ;;  %v6934_v59 = vcvt.s32.f32 %v646_v47  ;;  %v6944_v0 = vcvt.s32.f32 %v650_v52 }
  0xcd   : > { %v6938_v61 = vcvt.s32.f32 %v647_v49  ;;  %v6940_v62 = vcvt.s32.f32 %v648_v50 }
  0xce   : > { %v677_v41 = vmax.f32 %v675_v39, %v676_v40 }
  0xd0   : > { %v678_v42 = vrot.slane %v677_v41, 4 }
  0xd2   : > { %v679_v43 = vmax.f32 %v677_v41, %v678_v42 }
  0xd4   : > { %v680_v44 = vrot.slane %v679_v43, 2 }
  0xd6   : > { %v681_v48 = vmax.f32 %v679_v43, %v680_v44 }
  0xd8   : > { %v682_v53 = vrot.slane %v681_v48, 1 }
  0xda   : > { %v6936_v60 = vmax.f32 %v681_v48, %v682_v53 }
  0xdc   : > { %vm684_vm6 = vcmp.eq.f32.partialorder %v6888_v18, %v6936_v60  ;;  %vm685_vm7 = vcmp.eq.f32.partialorder %v6886_v17, %v6936_v60  ;;  %vm686_vm8 = vcmp.eq.f32.partialorder %v6890_v19, %v6936_v60  ;;  %vm687_vm9 = vcmp.eq.f32.partialorder %v6892_v20, %v6936_v60 }
  0xdd   : > { %vm688_vm10 = vcmp.eq.f32.partialorder %v6894_v21, %v6936_v60  ;;  %vm689_vm11 = vcmp.eq.f32.partialorder %v6896_v22, %v6936_v60  ;;  %vm690_vm12 = vcmp.eq.f32.partialorder %v6898_v23, %v6936_v60  ;;  %vm691_vm13 = vcmp.eq.f32.partialorder %v6900_v24, %v6936_v60 }
  0xde   : > { %v692_v1 = vsel %vm684_vm6, %v6928_v54, 64.0  ;;  %v693_v2 = vsel %vm685_vm7, %v6930_v55, 64.0  ;;  %v694_v4 = vsel %vm686_vm8, %v6932_v58, 64.0  ;;  %v695_v6 = vsel %vm687_vm9, %v6934_v59, 64.0 }
  0xdf   : > { %v696_v8 = vsel %vm688_vm10, %v6938_v61, 64.0  ;;  %v697_v9 = vsel %vm689_vm11, %v6940_v62, 64.0  ;;  %v698_v10 = vsel %vm690_vm12, %v6942_v63, 64.0  ;;  %v699_v11 = vsel %vm691_vm13, %v6944_v0, 64.0 }
  0xe0   : > { %v700_v12 = vsel %vm662_vm5, %v692_v1, inf  ;;  %v701_v13 = vsel %vm662_vm5, %v693_v2, inf  ;;  %v702_v14 = vsel %vm662_vm5, %v694_v4, inf  ;;  %v703_v15 = vsel %vm662_vm5, %v695_v6, inf }
  0xe1   : > { %v704_v16 = vsel %vm662_vm5, %v696_v8, inf  ;;  %v706_v25 = vsel %vm662_vm5, %v697_v9, inf  ;;  %v708_v26 = vsel %vm662_vm5, %v698_v10, inf  ;;  %v710_v27 = vsel %vm662_vm5, %v699_v11, inf }
  0xe2   : > { %v705_v28 = vmin.f32 %v700_v12, %v704_v16  ;;  %v707_v29 = vmin.f32 %v701_v13, %v706_v25  ;;  %v709_v30 = vmin.f32 %v702_v14, %v708_v26  ;;  %v711_v31 = vmin.f32 %v703_v15, %v710_v27 }
  0xe3   : > { %vm721_vm8 = vcmp.eq.f32.partialorder %v6928_v54, 0.0  ;;  %vm9934_vm9 = vcmp.eq.f32.partialorder %v6930_v55, 0.0  ;;  %vm9931_vm10 = vcmp.eq.f32.partialorder %v6928_v54, 1.0  ;;  %vm9930_vm11 = vcmp.eq.f32.partialorder %v6930_v55, 1.0 }
  0xe4   : > { %v712_v32 = vmin.f32 %v705_v28, %v707_v29  ;;  %v713_v33 = vmin.f32 %v709_v30, %v711_v31  ;;  %v733_v12 = vsel %vm721_vm8, %v6936_v60, 0.0  ;;  %v734_v13 = vsel %vm9934_vm9, %v6936_v60, 0.0 }
  0xe6   : > { %v714_v34 = vmin.f32 %v712_v32, %v713_v33 }
  0xe8   : > { %v715_v35 = vrot.slane %v714_v34, 4 }
  0xea   : > { %v716_v36 = vmin.f32 %v714_v34, %v715_v35 }
  0xec   : > { %v717_v37 = vrot.slane %v716_v36, 2 }
  0xee   : > { %v718_v38 = vmin.f32 %v716_v36, %v717_v37 }
  0xf0   : > { %v719_v39 = vrot.slane %v718_v38, 1 }
  0xf2   : > { %v720_v40 = vmin.f32 %v718_v38, %v719_v39 }
  0xf4   : > { %vm735_vm14 = vcmp.eq.f32.partialorder %v6928_v54, %v720_v40  ;;  %vm736_vm15 = vcmp.eq.f32.partialorder %v6930_v55, %v720_v40  ;;  %vm737_vm0 = vcmp.eq.f32.partialorder %v6932_v58, %v720_v40  ;;  %vm738_vm1 = vcmp.eq.f32.partialorder %v6934_v59, %v720_v40  ;;  %725 = vperm.xlu1 %6649, %v720_v40  }
  0xf5   : > { %vm739_vm3 = vcmp.eq.f32.partialorder %v6938_v61, %v720_v40  ;;  %vm740_vm4 = vcmp.eq.f32.partialorder %v6940_v62, %v720_v40  ;;  %vm741_vm6 = vcmp.eq.f32.partialorder %v6942_v63, %v720_v40  ;;  %vm742_vm7 = vcmp.eq.f32.partialorder %v6944_v0, %v720_v40 }
  0xf6   : > { %v6987_v41 = vsel %vm735_vm14, -inf, %v6888_v18  ;;  %v6990_v42 = vsel %vm736_vm15, -inf, %v6886_v17  ;;  %v6993_v43 = vsel %vm737_vm0, -inf, %v6890_v19  ;;  %v6996_v44 = vsel %vm738_vm1, -inf, %v6892_v20 }
  0xf7   : > { %v6999_v45 = vsel %vm739_vm3, -inf, %v6894_v21  ;;  %v7002_v46 = vsel %vm740_vm4, -inf, %v6896_v22  ;;  %v7005_v47 = vsel %vm741_vm6, -inf, %v6898_v23  ;;  %v7008_v18 = vsel %vm742_vm7, -inf, %v6900_v24 }
  0xf8   : > { %v751_v17 = vsel %vm662_vm5, %v6987_v41, -inf  ;;  %v752_v19 = vsel %vm662_vm5, %v6990_v42, -inf  ;;  %v753_v20 = vsel %vm662_vm5, %v6993_v43, -inf  ;;  %v754_v21 = vsel %vm662_vm5, %v6996_v44, -inf }
  0xf9   : > { %v755_v22 = vsel %vm662_vm5, %v6999_v45, -inf  ;;  %v757_v23 = vsel %vm662_vm5, %v7002_v46, -inf  ;;  %v759_v24 = vsel %vm662_vm5, %v7005_v47, -inf  ;;  %v761_v48 = vsel %vm662_vm5, %v7008_v18, -inf }
  0xfa   : > { %v756_v49 = vmax.f32 %v751_v17, %v755_v22  ;;  %v758_v50 = vmax.f32 %v752_v19, %v757_v23  ;;  %v760_v51 = vmax.f32 %v753_v20, %v759_v24  ;;  %v762_v52 = vmax.f32 %v754_v21, %v761_v48 }
  0xfc   : > { %v763_v53 = vmax.f32 %v756_v49, %v758_v50  ;;  %v764_v1 = vmax.f32 %v760_v51, %v762_v52 }
  0xfe   : > { %v765_v2 = vmax.f32 %v763_v53, %v764_v1 }
 0x100   : > { %v766_v4 = vrot.slane %v765_v2, 4 }
 0x102   : > { %v767_v6 = vmax.f32 %v765_v2, %v766_v4 }
 0x104   : > { %v768_v8 = vrot.slane %v767_v6, 2 }
 0x106   : > { %v769_v9 = vmax.f32 %v767_v6, %v768_v8 }
 0x108   : > { %v770_v10 = vrot.slane %v769_v9, 1 }
 0x10a   : > { %v771_v11 = vmax.f32 %v769_v9, %v770_v10 }
 0x10c   : > { %vm772_vm12 = vcmp.eq.f32.partialorder %v6987_v41, %v771_v11  ;;  %vm773_vm13 = vcmp.eq.f32.partialorder %v6990_v42, %v771_v11  ;;  %vm774_vm14 = vcmp.eq.f32.partialorder %v6993_v43, %v771_v11  ;;  %vm775_vm15 = vcmp.eq.f32.partialorder %v6996_v44, %v771_v11 }
 0x10d   : > { %vm776_vm0 = vcmp.eq.f32.partialorder %v6999_v45, %v771_v11  ;;  %vm777_vm1 = vcmp.eq.f32.partialorder %v7002_v46, %v771_v11  ;;  %vm778_vm3 = vcmp.eq.f32.partialorder %v7005_v47, %v771_v11  ;;  %vm779_vm4 = vcmp.eq.f32.partialorder %v7008_v18, %v771_v11 }
 0x10e   : > { %v780_v60 = vsel %vm772_vm12, %v6928_v54, 64.0  ;;  %v781_v14 = vsel %vm773_vm13, %v6930_v55, 64.0  ;;  %v782_v15 = vsel %vm774_vm14, %v6932_v58, 64.0  ;;  %v783_v16 = vsel %vm775_vm15, %v6934_v59, 64.0 }
 0x10f   : > { %v784_v25 = vsel %vm776_vm0, %v6938_v61, 64.0  ;;  %v785_v26 = vsel %vm777_vm1, %v6940_v62, 64.0  ;;  %v786_v27 = vsel %vm778_vm3, %v6942_v63, 64.0  ;;  %v787_v28 = vsel %vm779_vm4, %v6944_v0, 64.0 }
 0x110   : > { %v788_v29 = vsel %vm662_vm5, %v780_v60, inf  ;;  %v789_v30 = vsel %vm662_vm5, %v781_v14, inf  ;;  %v790_v31 = vsel %vm662_vm5, %v782_v15, inf  ;;  %v791_v32 = vsel %vm662_vm5, %v783_v16, inf }
 0x111   : > { %v792_v33 = vsel %vm662_vm5, %v784_v25, inf  ;;  %v794_v34 = vsel %vm662_vm5, %v785_v26, inf  ;;  %v796_v35 = vsel %vm662_vm5, %v786_v27, inf  ;;  %v798_v36 = vsel %vm662_vm5, %v787_v28, inf }
 0x112   : > { %v793_v37 = vmin.f32 %v788_v29, %v792_v33  ;;  %v795_v38 = vmin.f32 %v789_v30, %v794_v34  ;;  %v797_v39 = vmin.f32 %v790_v31, %v796_v35  ;;  %v799_v40 = vmin.f32 %v791_v32, %v798_v36 }
 0x113   : > { %v7062_v17 = vsel %vm9931_vm10, %v771_v11, %v733_v12  ;;  %v7066_v19 = vsel %vm9930_vm11, %v771_v11, %v734_v13  ;;  %vm9933_vm3 = vcmp.eq.f32.partialorder %v6928_v54, 2.0  ;;  %vm9932_vm4 = vcmp.eq.f32.partialorder %v6930_v55, 2.0 }
 0x114   : > { %v800_v20 = vmin.f32 %v793_v37, %v795_v38  ;;  %v801_v21 = vmin.f32 %v797_v39, %v799_v40 }
 0x116   : > { %v802_v22 = vmin.f32 %v800_v20, %v801_v21  ;;  %v2212_v21 = vld [vmem:[%s9920_s7] sm:$0xff] }
 0x118   : > { %v803_v23 = vrot.slane %v802_v22, 4 }
 0x11a   : > { %v804_v24 = vmin.f32 %v802_v22, %v803_v23  ;;  %v2213_v22 = vld [vmem:[%s9920_s7 + $0x8] sm:$0xff] }
 0x11c   : > { %v805_v48 = vrot.slane %v804_v24, 2 }
 0x11e   : > { %v806_v49 = vmin.f32 %v804_v24, %v805_v48 }
 0x120   : > { %v807_v50 = vrot.slane %v806_v49, 1 }
 0x122   : > { %v7068_v51 = vmin.f32 %v806_v49, %v807_v50  ;;  %v2214_v50 = vld [vmem:[%s9920_s7 + $0x10] sm:$0xff] }
 0x124   : > { %vm823_vm6 = vcmp.eq.f32.partialorder %v6928_v54, %v7068_v51  ;;  %vm824_vm7 = vcmp.eq.f32.partialorder %v6930_v55, %v7068_v51  ;;  %vm825_vm12 = vcmp.eq.f32.partialorder %v6932_v58, %v7068_v51  ;;  %vm826_vm13 = vcmp.eq.f32.partialorder %v6934_v59, %v7068_v51 }
 0x125   : > { %vm827_vm14 = vcmp.eq.f32.partialorder %v6938_v61, %v7068_v51  ;;  %vm828_vm15 = vcmp.eq.f32.partialorder %v6940_v62, %v7068_v51  ;;  %vm829_vm0 = vcmp.eq.f32.partialorder %v6942_v63, %v7068_v51  ;;  %vm830_vm1 = vcmp.eq.f32.partialorder %v6944_v0, %v7068_v51 }
 0x126   : > { %v7087_v52 = vsel %vm823_vm6, -inf, %v6987_v41  ;;  %v7090_v53 = vsel %vm824_vm7, -inf, %v6990_v42  ;;  %v7093_v1 = vsel %vm825_vm12, -inf, %v6993_v43  ;;  %v7096_v2 = vsel %vm826_vm13, -inf, %v6996_v44 }
 0x127   : > { %v7099_v4 = vsel %vm827_vm14, -inf, %v6999_v45  ;;  %v7102_v6 = vsel %vm828_vm15, -inf, %v7002_v46  ;;  %v7105_v8 = vsel %vm829_vm0, -inf, %v7005_v47  ;;  %v7108_v41 = vsel %vm830_vm1, -inf, %v7008_v18 }
 0x128   : > { %v839_v42 = vsel %vm662_vm5, %v7087_v52, -inf  ;;  %v840_v43 = vsel %vm662_vm5, %v7090_v53, -inf  ;;  %v841_v44 = vsel %vm662_vm5, %v7093_v1, -inf  ;;  %v842_v45 = vsel %vm662_vm5, %v7096_v2, -inf }
 0x129   : > { %v843_v46 = vsel %vm662_vm5, %v7099_v4, -inf  ;;  %v845_v47 = vsel %vm662_vm5, %v7102_v6, -inf  ;;  %v847_v18 = vsel %vm662_vm5, %v7105_v8, -inf  ;;  %v849_v9 = vsel %vm662_vm5, %v7108_v41, -inf }
 0x12a   : > { %v844_v10 = vmax.f32 %v839_v42, %v843_v46  ;;  %v846_v11 = vmax.f32 %v840_v43, %v845_v47  ;;  %v848_v12 = vmax.f32 %v841_v44, %v847_v18  ;;  %v850_v13 = vmax.f32 %v842_v45, %v849_v9  ;;  %v2215_v42 = vld [vmem:[%s9920_s7 + $0x18] sm:$0xff] }
 0x12b   : > { %v6213_v47 = vpack.c.bf16 %v2213_v22, %v2212_v21  ;;  %v6217_v18 = vpack.c.bf16 %v2215_v42, %v2214_v50 }
 0x12c   : > { %v851_v60 = vmax.f32 %v844_v10, %v846_v11  ;;  %v852_v14 = vmax.f32 %v848_v12, %v850_v13  ;;  %v5502_v13 = vld [vmem:[%s9920_s7 + $0x20] sm:$0xff] }
 0x12d   : > { %6214 = vmatprep.subr.bf16.mxu1 %v6213_v47 }
 0x12e   : > { %v853_v15 = vmax.f32 %v851_v60, %v852_v14  ;;  %v5503_v60 = vld [vmem:[%s9920_s7 + $0x28] sm:$0xff]  ;;  %6216 = vmatpush3.bf16.msra.mxu1 %v6213_v47 }
 0x12f   : > { %6218 = vmatprep.subr.bf16.mxu1 %v6217_v18 }
 0x130   : > { %v854_v16 = vrot.slane %v853_v15, 4 }
 0x132   : > { %v855_v25 = vmax.f32 %v853_v15, %v854_v16  ;;  %v7180_v15 = vpack.c.bf16 %v5503_v60, %v5502_v13  ;;  %6220 = vmatpush3.bf16.msra.mxu1 %v6217_v18 }
 0x134   : > { %v856_v26 = vrot.slane %v855_v25, 2  ;;  %6222 = vmatprep.subr.bf16.mxu1 %v7180_v15 }
 0x136   : > { %v857_v27 = vmax.f32 %v855_v25, %v856_v26 }
 0x138   : > { %v858_v28 = vrot.slane %v857_v27, 1 }
 0x13a   : > { %v859_v29 = vmax.f32 %v857_v27, %v858_v28 }
 0x13c   : > { %vm860_vm6 = vcmp.eq.f32.partialorder %v7087_v52, %v859_v29  ;;  %vm861_vm7 = vcmp.eq.f32.partialorder %v7090_v53, %v859_v29  ;;  %vm862_vm12 = vcmp.eq.f32.partialorder %v7093_v1, %v859_v29  ;;  %vm863_vm13 = vcmp.eq.f32.partialorder %v7096_v2, %v859_v29 }
 0x13d   : > { %vm864_vm14 = vcmp.eq.f32.partialorder %v7099_v4, %v859_v29  ;;  %vm865_vm15 = vcmp.eq.f32.partialorder %v7102_v6, %v859_v29  ;;  %vm866_vm0 = vcmp.eq.f32.partialorder %v7105_v8, %v859_v29  ;;  %vm867_vm1 = vcmp.eq.f32.partialorder %v7108_v41, %v859_v29 }
 0x13e   : > { %v868_v30 = vsel %vm860_vm6, %v6928_v54, 64.0  ;;  %v869_v31 = vsel %vm861_vm7, %v6930_v55, 64.0  ;;  %v870_v32 = vsel %vm862_vm12, %v6932_v58, 64.0  ;;  %v871_v33 = vsel %vm863_vm13, %v6934_v59, 64.0 }
 0x13f   : > { %v872_v34 = vsel %vm864_vm14, %v6938_v61, 64.0  ;;  %v873_v35 = vsel %vm865_vm15, %v6940_v62, 64.0  ;;  %v874_v36 = vsel %vm866_vm0, %v6942_v63, 64.0  ;;  %v875_v37 = vsel %vm867_vm1, %v6944_v0, 64.0 }
 0x140   : > { %v876_v38 = vsel %vm662_vm5, %v868_v30, inf  ;;  %v877_v39 = vsel %vm662_vm5, %v869_v31, inf  ;;  %v878_v40 = vsel %vm662_vm5, %v870_v32, inf  ;;  %v879_v20 = vsel %vm662_vm5, %v871_v33, inf }
 0x141   : > { %v880_v23 = vsel %vm662_vm5, %v872_v34, inf  ;;  %v882_v24 = vsel %vm662_vm5, %v873_v35, inf  ;;  %v884_v48 = vsel %vm662_vm5, %v874_v36, inf  ;;  %v886_v49 = vsel %vm662_vm5, %v875_v37, inf }
 0x142   : > { %v881_v43 = vmin.f32 %v876_v38, %v880_v23  ;;  %v883_v44 = vmin.f32 %v877_v39, %v882_v24  ;;  %v885_v45 = vmin.f32 %v878_v40, %v884_v48  ;;  %v887_v46 = vmin.f32 %v879_v20, %v886_v49 }
 0x143   : > { %v7167_v11 = vsel %vm9933_vm3, %v859_v29, %v7062_v17  ;;  %v7172_v12 = vsel %vm9932_vm4, %v859_v29, %v7066_v19 }
 0x144   : > { %v888_v9 = vmin.f32 %v881_v43, %v883_v44  ;;  %v889_v10 = vmin.f32 %v885_v45, %v887_v46 }
 0x146   : > { %v890_v14 = vmin.f32 %v888_v9, %v889_v10 }
 0x148   : > { %v891_v17 = vrot.slane %v890_v14, 4 }
 0x14a   : > { %v892_v16 = vmin.f32 %v890_v14, %v891_v17 }
 0x14c   : > { %v893_v19 = vrot.slane %v892_v16, 2 }
 0x14e   : > { %v894_v25 = vmin.f32 %v892_v16, %v893_v19 }
 0x150   : > { %v895_v26 = vrot.slane %v894_v25, 1 }
 0x152   : > { %v896_v27 = vmin.f32 %v894_v25, %v895_v26 }
 0x154   : > { %vm911_vm6 = vcmp.eq.f32.partialorder %v6928_v54, %v896_v27  ;;  %vm912_vm7 = vcmp.eq.f32.partialorder %v6930_v55, %v896_v27  ;;  %vm913_vm12 = vcmp.eq.f32.partialorder %v6932_v58, %v896_v27  ;;  %vm914_vm13 = vcmp.eq.f32.partialorder %v6934_v59, %v896_v27  ;;  %901 = vperm.xlu1 %6649, %v896_v27  }
 0x155   : > { %vm915_vm14 = vcmp.eq.f32.partialorder %v6938_v61, %v896_v27  ;;  %vm916_vm15 = vcmp.eq.f32.partialorder %v6940_v62, %v896_v27  ;;  %vm917_vm0 = vcmp.eq.f32.partialorder %v6942_v63, %v896_v27  ;;  %vm918_vm1 = vcmp.eq.f32.partialorder %v6944_v0, %v896_v27 }
 0x156   : > { %v7192_v28 = vsel %vm911_vm6, -inf, %v7087_v52  ;;  %v7195_v29 = vsel %vm912_vm7, -inf, %v7090_v53  ;;  %v7198_v30 = vsel %vm913_vm12, -inf, %v7093_v1  ;;  %v7201_v31 = vsel %vm914_vm13, -inf, %v7096_v2 }
 0x157   : > { %v7204_v32 = vsel %vm915_vm14, -inf, %v7099_v4  ;;  %v7207_v33 = vsel %vm916_vm15, -inf, %v7102_v6  ;;  %v7210_v34 = vsel %vm917_vm0, -inf, %v7105_v8  ;;  %v7213_v52 = vsel %vm918_vm1, -inf, %v7108_v41 }
 0x158   : > { %v927_v53 = vsel %vm662_vm5, %v7192_v28, -inf  ;;  %v928_v1 = vsel %vm662_vm5, %v7195_v29, -inf  ;;  %v929_v2 = vsel %vm662_vm5, %v7198_v30, -inf  ;;  %v930_v4 = vsel %vm662_vm5, %v7201_v31, -inf  ;;  %v2170_v36 = vpop.xlane.xlu1 %2169  ;;  %v2173_v37 = vpop.xlane.xlu0 %2172 }
 0x159   : > { %v931_v6 = vsel %vm662_vm5, %v7204_v32, -inf  ;;  %v933_v8 = vsel %vm662_vm5, %v7207_v33, -inf  ;;  %v935_v41 = vsel %vm662_vm5, %v7210_v34, -inf  ;;  %v937_v35 = vsel %vm662_vm5, %v7213_v52, -inf }
 0x15a   : > { %v932_v38 = vmax.f32 %v927_v53, %v931_v6  ;;  %v934_v39 = vmax.f32 %v928_v1, %v933_v8  ;;  %v936_v40 = vmax.f32 %v929_v2, %v935_v41  ;;  %v938_v20 = vmax.f32 %v930_v4, %v937_v35 }
 0x15b   : > { %v2174_v21 = vmul.f32 0.032258064, %v2170_v36  ;;  %v2175_v22 = vmul.f32 0.032258064, %v2173_v37  ;;  %vm9937_vm6 = vcmp.eq.f32.partialorder %v6928_v54, 3.0  ;;  %vm9935_vm12 = vcmp.eq.f32.partialorder %v6930_v55, 3.0 }
 0x15c   : > { %v939_v23 = vmax.f32 %v932_v38, %v934_v39  ;;  %v940_v24 = vmax.f32 %v936_v40, %v938_v20 }
 0x15d   : > { %6655 = vrsqrt.f32 %v2174_v21  ;;  %vm2178_vm7 = vcmp.eq.f32.partialorder %v2174_v21, inf  ;;  %v2181_v18 = vand.u32 2147483648, %v2174_v21  ;;  %vm2180_vm13 = vcmp.eq.f32.partialorder %v2174_v21, 0.0 }
 0x15e   : > { %v941_v48 = vmax.f32 %v939_v23, %v940_v24  ;;  %6657 = vrsqrt.f32 %v2175_v22  ;;  %vm2185_vm14 = vcmp.eq.f32.partialorder %v2175_v22, inf  ;;  %vm2187_vm15 = vcmp.eq.f32.partialorder %v2175_v22, 0.0 }
 0x15f   : > { %v2188_v14 = vand.u32 2147483648, %v2175_v22 }
 0x160   : > { %v942_v49 = vrot.slane %v941_v48, 4 }
 0x162   : > { %v943_v50 = vmax.f32 %v941_v48, %v942_v49 }
 0x164   : > { %v944_v42 = vrot.slane %v943_v50, 2 }
 0x166   : > { %v945_v43 = vmax.f32 %v943_v50, %v944_v42 }
 0x167   : > { %v6656_v44 = vpop.eup %6655 }
 0x168   : > { %v6658_v45 = vpop.eup %6657  ;;  %v946_v46 = vrot.slane %v945_v43, 1  ;;  %v2177_v47 = vmul.f32 %v6656_v44, %v2174_v21 }
 0x169   : > { %v2184_v9 = vmul.f32 %v6658_v45, %v2175_v22 }
 0x16a   : > { %v947_v10 = vmax.f32 %v945_v43, %v946_v46  ;;  %v2179_v13 = vsel %vm2178_vm7, %v2174_v21, %v2177_v47  ;;  %v5497_v46 = vld [vmem:[%s9918_s5] ss:$0 sm:$0xff] }
 0x16b   : > { %v2186_v60 = vsel %vm2185_vm14, %v2175_v22, %v2184_v9  ;;  %v2182_v17 = vsel %vm2180_vm13, %v2181_v18, %v2179_v13  ;;  %v2196_v18 = vmul.f32 %v5497_v46, %v6869_v56  ;;  %v5504_v13 = vld [vmem:[%s9920_s7 + $0x30] sm:$0xff]  ;;  %v5510_v56 = vld [vmem:[%s9920_s7 + $0x40] sm:$0xff] }
 0x16c   : > { %vm948_vm0 = vcmp.eq.f32.partialorder %v7192_v28, %v947_v10  ;;  %vm949_vm1 = vcmp.eq.f32.partialorder %v7195_v29, %v947_v10  ;;  %vm950_vm11 = vcmp.eq.f32.partialorder %v7198_v30, %v947_v10  ;;  %vm951_vm10 = vcmp.eq.f32.partialorder %v7201_v31, %v947_v10 }
 0x16d   : > { %vm952_vm4 = vcmp.eq.f32.partialorder %v7204_v32, %v947_v10  ;;  %vm953_vm3 = vcmp.eq.f32.partialorder %v7207_v33, %v947_v10  ;;  %vm954_vm7 = vcmp.eq.f32.partialorder %v7210_v34, %v947_v10  ;;  %vm955_vm9 = vcmp.eq.f32.partialorder %v7213_v52, %v947_v10 }
 0x16e   : > { %v956_v16 = vsel %vm948_vm0, %v6928_v54, 64.0  ;;  %v957_v19 = vsel %vm949_vm1, %v6930_v55, 64.0  ;;  %v958_v25 = vsel %vm950_vm11, %v6932_v58, 64.0  ;;  %v959_v26 = vsel %vm951_vm10, %v6934_v59, 64.0 }
 0x16f   : > { %v960_v27 = vsel %vm952_vm4, %v6938_v61, 64.0  ;;  %v961_v53 = vsel %vm953_vm3, %v6940_v62, 64.0  ;;  %v962_v1 = vsel %vm954_vm7, %v6942_v63, 64.0  ;;  %v963_v2 = vsel %vm955_vm9, %v6944_v0, 64.0 }
 0x170   : > { %v964_v4 = vsel %vm662_vm5, %v956_v16, inf  ;;  %v965_v6 = vsel %vm662_vm5, %v957_v19, inf  ;;  %v966_v8 = vsel %vm662_vm5, %v958_v25, inf  ;;  %v967_v41 = vsel %vm662_vm5, %v959_v26, inf  ;;  %v5505_v16 = vld [vmem:[%s9920_s7 + $0x38] sm:$0xff] }
 0x171   : > { %v968_v35 = vsel %vm662_vm5, %v960_v27, inf  ;;  %v970_v36 = vsel %vm662_vm5, %v961_v53, inf  ;;  %v972_v37 = vsel %vm662_vm5, %v962_v1, inf  ;;  %v974_v38 = vsel %vm662_vm5, %v963_v2, inf }
 0x172   : > { %v969_v39 = vmin.f32 %v964_v4, %v968_v35  ;;  %v971_v40 = vmin.f32 %v965_v6, %v970_v36  ;;  %v973_v20 = vmin.f32 %v966_v8, %v972_v37  ;;  %v975_v21 = vmin.f32 %v967_v41, %v974_v38 }
 0x173   : > { %v2189_v23 = vsel %vm2187_vm15, %v2188_v14, %v2186_v60  ;;  %v2198_v24 = vadd.f32 1e-06, %v2182_v17  ;;  %v7261_v48 = vsel %vm9937_vm6, %v947_v10, %v7167_v11  ;;  %v7266_v49 = vsel %vm9935_vm12, %v947_v10, %v7172_v12  ;;  %v5498_v10 = vld [vmem:[%s9919_s6] ss:$0 sm:$0xff] }
 0x174   : > { %v976_v50 = vmin.f32 %v969_v39, %v971_v40  ;;  %v977_v42 = vmin.f32 %v973_v20, %v975_v21  ;;  %v2199_v43 = vadd.f32 1e-06, %v2189_v23  ;;  %v2197_v12 = vmul.f32 %v5497_v46, %v6871_v57  ;;  %v5511_v57 = vld [vmem:[%s9920_s7 + $0x48] sm:$0xff] }
 0x175   : > { %6659 = vrcp.f32 %v2198_v24  ;;  %v6225_v53 = vpack.c.bf16 %v5505_v16, %v5504_v13  ;;  %v6229_v1 = vpack.c.bf16 %v5511_v57, %v5510_v56  ;;  %vm1073_vm0 = vcmp.eq.f32.partialorder %v6928_v54, 4.0 }
 0x176   : > { %v978_v44 = vmin.f32 %v976_v50, %v977_v42  ;;  %6661 = vrcp.f32 %v2199_v43  ;;  %vm1074_vm1 = vcmp.eq.f32.partialorder %v6930_v55, 4.0 }
 0x178   : > { %v979_v45 = vrot.slane %v978_v44, 4 }
 0x17a   : > { %v980_v22 = vmin.f32 %v978_v44, %v979_v45 }
 0x17c   : > { %v981_v47 = vrot.slane %v980_v22, 2 }
 0x17e   : > { %v982_v11 = vmin.f32 %v980_v22, %v981_v47 }
 0x17f   : > { %v6660_v9 = vpop.eup %6659 }
 0x180   : > { %v6662_v60 = vpop.eup %6661  ;;  %v983_v14 = vrot.slane %v982_v11, 1  ;;  %v2201_v17 = vmul.f32 %v6660_v9, %v2196_v18 }
 0x181   : > { %v2203_v19 = vmul.f32 %v6662_v60, %v2197_v12 }
 0x182   : > { %v7288_v25 = vmin.f32 %v982_v11, %v983_v14  ;;  %v2210_v26 = vadd.f32 %v5498_v10, %v2201_v17 }
 0x183   : > { %v2211_v27 = vadd.f32 %v5498_v10, %v2203_v19 }
 0x184   : > { %vm999_vm9 = vcmp.eq.f32.partialorder %v6928_v54, %v7288_v25  ;;  %vm1000_vm10 = vcmp.eq.f32.partialorder %v6930_v55, %v7288_v25  ;;  %vm1001_vm11 = vcmp.eq.f32.partialorder %v6932_v58, %v7288_v25  ;;  %vm1002_vm3 = vcmp.eq.f32.partialorder %v6934_v59, %v7288_v25  ;;  %6045 = vmatprep.mubr.msk.f32.mxu1 %vm9942_vm2, %v2210_v26 }
 0x185   : > { %vm1003_vm4 = vcmp.eq.f32.partialorder %v6938_v61, %v7288_v25  ;;  %vm1004_vm13 = vcmp.eq.f32.partialorder %v6940_v62, %v7288_v25  ;;  %vm1005_vm14 = vcmp.eq.f32.partialorder %v6942_v63, %v7288_v25  ;;  %vm1006_vm15 = vcmp.eq.f32.partialorder %v6944_v0, %v7288_v25  ;;  %6046 = vmatmul.mubr.msk.f32.vlgmr.msra.gmra.mrb[0].mxu1 %vm9942_vm2, %v2211_v27 }
 0x186   : > { %v7309_v2 = vsel %vm999_vm9, -inf, %v7192_v28  ;;  %v7312_v4 = vsel %vm1000_vm10, -inf, %v7195_v29  ;;  %v7315_v6 = vsel %vm1001_vm11, -inf, %v7198_v30  ;;  %v7318_v8 = vsel %vm1002_vm3, -inf, %v7201_v31  ;;  %6224 = vmatpush3.bf16.msra.mxu1 %v7180_v15  ;;  %6056 = vmatprep.mubr.msk.f32.mxu1 %vm9942_vm2, %v2210_v26 }
 0x187   : > { %v7323_v41 = vsel %vm1003_vm4, -inf, %v7204_v32  ;;  %v7326_v35 = vsel %vm1004_vm13, -inf, %v7207_v33  ;;  %v7329_v28 = vsel %vm1005_vm14, -inf, %v7210_v34  ;;  %v7332_v29 = vsel %vm1006_vm15, -inf, %v7213_v52  ;;  %6226 = vmatprep.subr.bf16.mxu1 %v6225_v53  ;;  %v5512_v33 = vld [vmem:[%s9920_s7 + $0x50] sm:$0xff]  ;;  %v5513_v34 = vld [vmem:[%s9920_s7 + $0x58] sm:$0xff] }
 0x188   : > { %v1015_v30 = vsel %vm662_vm5, %v7309_v2, -inf  ;;  %v1016_v15 = vsel %vm662_vm5, %v7312_v4, -inf  ;;  %v1017_v31 = vsel %vm662_vm5, %v7315_v6, -inf  ;;  %v1018_v32 = vsel %vm662_vm5, %v7318_v8, -inf }
 0x189   : > { %v1019_v52 = vsel %vm662_vm5, %v7323_v41, -inf  ;;  %v1021_v36 = vsel %vm662_vm5, %v7326_v35, -inf  ;;  %v1023_v37 = vsel %vm662_vm5, %v7329_v28, -inf  ;;  %v1025_v38 = vsel %vm662_vm5, %v7332_v29, -inf }
 0x18a   : > { %v1020_v39 = vmax.f32 %v1015_v30, %v1019_v52  ;;  %v1022_v40 = vmax.f32 %v1016_v15, %v1021_v36  ;;  %v1024_v20 = vmax.f32 %v1017_v31, %v1023_v37  ;;  %v1026_v21 = vmax.f32 %v1018_v32, %v1025_v38  ;;  %6228 = vmatpush3.bf16.msra.mxu1 %v6225_v53 }
 0x18b   : > { %6230 = vmatprep.subr.bf16.mxu1 %v6229_v1  ;;  %v6233_v23 = vpack.c.bf16 %v5513_v34, %v5512_v33 }
 0x18c   : > { %v1027_v24 = vmax.f32 %v1020_v39, %v1022_v40  ;;  %v1028_v50 = vmax.f32 %v1024_v20, %v1026_v21 }
 0x18d   : > { %6057 = vmatmul.mubr.msk.f32.vlgmr.msra.gmra.mrb[2].mxu1 %vm9942_vm2, %v2211_v27 }
 0x18e   : > { %v1029_v42 = vmax.f32 %v1027_v24, %v1028_v50  ;;  %6232 = vmatpush3.bf16.msra.mxu1 %v6229_v1  ;;  %6067 = vmatprep.mubr.msk.f32.mxu1 %vm9942_vm2, %v2210_v26 }
 0x18f   : > { %6234 = vmatprep.subr.bf16.mxu1 %v6233_v23 }
 0x190   : > { %v1030_v43 = vrot.slane %v1029_v42, 4 }
 0x192   : > { %v1031_v44 = vmax.f32 %v1029_v42, %v1030_v43  ;;  %6236 = vmatpush3.bf16.msra.mxu1 %v6233_v23 }
 0x194   : > { %v1032_v45 = vrot.slane %v1031_v44, 2 }
 0x195   : > { %6068 = vmatmul.mubr.msk.f32.vlgmr.msra.gmra.mrb[4].mxu1 %vm9942_vm2, %v2211_v27 }
 0x196   : > { %v1033_v22 = vmax.f32 %v1031_v44, %v1032_v45 }
 0x198   : > { %v1034_v46 = vrot.slane %v1033_v22, 1 }
 0x19a   : > { %v1035_v47 = vmax.f32 %v1033_v22, %v1034_v46 }
 0x19c   : > { %vm1036_vm7 = vcmp.eq.f32.partialorder %v7309_v2, %v1035_v47  ;;  %vm1037_vm9 = vcmp.eq.f32.partialorder %v7312_v4, %v1035_v47  ;;  %vm1038_vm10 = vcmp.eq.f32.partialorder %v7315_v6, %v1035_v47  ;;  %vm1039_vm11 = vcmp.eq.f32.partialorder %v7318_v8, %v1035_v47 }
 0x19d   : > { %vm1040_vm3 = vcmp.eq.f32.partialorder %v7323_v41, %v1035_v47  ;;  %vm1041_vm4 = vcmp.eq.f32.partialorder %v7326_v35, %v1035_v47  ;;  %vm1042_vm13 = vcmp.eq.f32.partialorder %v7329_v28, %v1035_v47  ;;  %vm1043_vm14 = vcmp.eq.f32.partialorder %v7332_v29, %v1035_v47 }
 0x19e   : > { %v1044_v11 = vsel %vm1036_vm7, %v6928_v54, 64.0  ;;  %v1045_v18 = vsel %vm1037_vm9, %v6930_v55, 64.0  ;;  %v1046_v9 = vsel %vm1038_vm10, %v6932_v58, 64.0  ;;  %v1047_v12 = vsel %vm1039_vm11, %v6934_v59, 64.0 }
 0x19f   : > { %v1048_v10 = vsel %vm1040_vm3, %v6938_v61, 64.0  ;;  %v1049_v13 = vsel %vm1041_vm4, %v6940_v62, 64.0  ;;  %v1050_v60 = vsel %vm1042_vm13, %v6942_v63, 64.0  ;;  %v1051_v14 = vsel %vm1043_vm14, %v6944_v0, 64.0 }
 0x1a0   : > { %v1052_v17 = vsel %vm662_vm5, %v1044_v11, inf  ;;  %v1053_v16 = vsel %vm662_vm5, %v1045_v18, inf  ;;  %v1054_v56 = vsel %vm662_vm5, %v1046_v9, inf  ;;  %v1055_v57 = vsel %vm662_vm5, %v1047_v12, inf }
 0x1a1   : > { %v1056_v19 = vsel %vm662_vm5, %v1048_v10, inf  ;;  %v1058_v26 = vsel %vm662_vm5, %v1049_v13, inf  ;;  %v1060_v27 = vsel %vm662_vm5, %v1050_v60, inf  ;;  %v1062_v53 = vsel %vm662_vm5, %v1051_v14, inf }
 0x1a2   : > { %v1057_v1 = vmin.f32 %v1052_v17, %v1056_v19  ;;  %v1059_v30 = vmin.f32 %v1053_v16, %v1058_v26  ;;  %v1061_v15 = vmin.f32 %v1054_v56, %v1060_v27  ;;  %v1063_v31 = vmin.f32 %v1055_v57, %v1062_v53 }
 0x1a3   : > { %v7388_v32 = vsel %vm1073_vm0, %v1035_v47, %v7261_v48  ;;  %v7393_v33 = vsel %vm1074_vm1, %v1035_v47, %v7266_v49  ;;  %vm1161_vm14 = vcmp.eq.f32.partialorder %v6928_v54, 5.0 }
 0x1a4   : > { %v1064_v34 = vmin.f32 %v1057_v1, %v1059_v30  ;;  %v1065_v52 = vmin.f32 %v1061_v15, %v1063_v31 }
 0x1a6   : > { %v1066_v36 = vmin.f32 %v1064_v34, %v1065_v52 }
 0x1a8   : > { %v1067_v37 = vrot.slane %v1066_v36, 4 }
 0x1aa   : > { %v1068_v38 = vmin.f32 %v1066_v36, %v1067_v37 }
 0x1ac   : > { %v1069_v39 = vrot.slane %v1068_v38, 2 }
 0x1ae   : > { %v1070_v40 = vmin.f32 %v1068_v38, %v1069_v39 }
 0x1b0   : > { %v1071_v20 = vrot.slane %v1070_v40, 1 }
 0x1b2   : > { %v1072_v21 = vmin.f32 %v1070_v40, %v1071_v20 }
 0x1b4   : > { %vm1087_vm15 = vcmp.eq.f32.partialorder %v6928_v54, %v1072_v21  ;;  %vm1088_vm7 = vcmp.eq.f32.partialorder %v6930_v55, %v1072_v21  ;;  %vm1089_vm9 = vcmp.eq.f32.partialorder %v6932_v58, %v1072_v21  ;;  %vm1090_vm10 = vcmp.eq.f32.partialorder %v6934_v59, %v1072_v21  ;;  %1077 = vperm.xlu1 %6649, %v1072_v21  }
 0x1b5   : > { %vm1091_vm11 = vcmp.eq.f32.partialorder %v6938_v61, %v1072_v21  ;;  %vm1092_vm3 = vcmp.eq.f32.partialorder %v6940_v62, %v1072_v21  ;;  %vm1093_vm4 = vcmp.eq.f32.partialorder %v6942_v63, %v1072_v21  ;;  %vm1094_vm13 = vcmp.eq.f32.partialorder %v6944_v0, %v1072_v21 }
 0x1b6   : > { %v7404_v48 = vsel %vm1087_vm15, -inf, %v7309_v2  ;;  %v7407_v49 = vsel %vm1088_vm7, -inf, %v7312_v4  ;;  %v7410_v23 = vsel %vm1089_vm9, -inf, %v7315_v6  ;;  %v7413_v24 = vsel %vm1090_vm10, -inf, %v7318_v8 }
 0x1b7   : > { %v7416_v50 = vsel %vm1091_vm11, -inf, %v7323_v41  ;;  %v7419_v42 = vsel %vm1092_vm3, -inf, %v7326_v35  ;;  %v7422_v43 = vsel %vm1093_vm4, -inf, %v7329_v28  ;;  %v7425_v2 = vsel %vm1094_vm13, -inf, %v7332_v29 }
 0x1b8   : > { %v1103_v4 = vsel %vm662_vm5, %v7404_v48, -inf  ;;  %v1104_v6 = vsel %vm662_vm5, %v7407_v49, -inf  ;;  %v1105_v8 = vsel %vm662_vm5, %v7410_v23, -inf  ;;  %v1106_v41 = vsel %vm662_vm5, %v7413_v24, -inf }
 0x1b9   : > { %v1107_v35 = vsel %vm662_vm5, %v7416_v50, -inf  ;;  %v1109_v28 = vsel %vm662_vm5, %v7419_v42, -inf  ;;  %v1111_v29 = vsel %vm662_vm5, %v7422_v43, -inf  ;;  %v1113_v44 = vsel %vm662_vm5, %v7425_v2, -inf }
 0x1ba   : > { %v1108_v45 = vmax.f32 %v1103_v4, %v1107_v35  ;;  %v1110_v22 = vmax.f32 %v1104_v6, %v1109_v28  ;;  %v1112_v46 = vmax.f32 %v1105_v8, %v1111_v29  ;;  %v1114_v47 = vmax.f32 %v1106_v41, %v1113_v44 }
 0x1bb   : > { %vm9936_vm15 = vcmp.eq.f32.partialorder %v6930_v55, 5.0 }
 0x1bc   : > { %v1115_v11 = vmax.f32 %v1108_v45, %v1110_v22  ;;  %v1116_v18 = vmax.f32 %v1112_v46, %v1114_v47 }
 0x1be   : > { %v1117_v9 = vmax.f32 %v1115_v11, %v1116_v18 }
 0x1c0   : > { %v1118_v12 = vrot.slane %v1117_v9, 4 }
 0x1c2   : > { %v1119_v10 = vmax.f32 %v1117_v9, %v1118_v12 }
 0x1c4   : > { %v1120_v13 = vrot.slane %v1119_v10, 2 }
 0x1c6   : > { %v1121_v60 = vmax.f32 %v1119_v10, %v1120_v13 }
 0x1c8   : > { %v1122_v14 = vrot.slane %v1121_v60, 1 }
 0x1ca   : > { %v1123_v17 = vmax.f32 %v1121_v60, %v1122_v14 }
 0x1cc   : > { %vm1124_vm7 = vcmp.eq.f32.partialorder %v7404_v48, %v1123_v17  ;;  %vm1125_vm9 = vcmp.eq.f32.partialorder %v7407_v49, %v1123_v17  ;;  %vm1126_vm10 = vcmp.eq.f32.partialorder %v7410_v23, %v1123_v17  ;;  %vm1127_vm11 = vcmp.eq.f32.partialorder %v7413_v24, %v1123_v17 }
 0x1cd   : > { %vm1128_vm3 = vcmp.eq.f32.partialorder %v7416_v50, %v1123_v17  ;;  %vm1129_vm4 = vcmp.eq.f32.partialorder %v7419_v42, %v1123_v17  ;;  %vm1130_vm13 = vcmp.eq.f32.partialorder %v7422_v43, %v1123_v17  ;;  %vm1131_vm12 = vcmp.eq.f32.partialorder %v7425_v2, %v1123_v17 }
 0x1ce   : > { %v1132_v16 = vsel %vm1124_vm7, %v6928_v54, 64.0  ;;  %v1133_v56 = vsel %vm1125_vm9, %v6930_v55, 64.0  ;;  %v1134_v57 = vsel %vm1126_vm10, %v6932_v58, 64.0  ;;  %v1135_v19 = vsel %vm1127_vm11, %v6934_v59, 64.0 }
 0x1cf   : > { %v1136_v26 = vsel %vm1128_vm3, %v6938_v61, 64.0  ;;  %v1137_v27 = vsel %vm1129_vm4, %v6940_v62, 64.0  ;;  %v1138_v53 = vsel %vm1130_vm13, %v6942_v63, 64.0  ;;  %v1139_v1 = vsel %vm1131_vm12, %v6944_v0, 64.0 }
 0x1d0   : > { %v1140_v30 = vsel %vm662_vm5, %v1132_v16, inf  ;;  %v1141_v15 = vsel %vm662_vm5, %v1133_v56, inf  ;;  %v1142_v31 = vsel %vm662_vm5, %v1134_v57, inf  ;;  %v1143_v34 = vsel %vm662_vm5, %v1135_v19, inf }
 0x1d1   : > { %v1144_v52 = vsel %vm662_vm5, %v1136_v26, inf  ;;  %v1146_v36 = vsel %vm662_vm5, %v1137_v27, inf  ;;  %v1148_v37 = vsel %vm662_vm5, %v1138_v53, inf  ;;  %v1150_v38 = vsel %vm662_vm5, %v1139_v1, inf }
 0x1d2   : > { %v1145_v39 = vmin.f32 %v1140_v30, %v1144_v52  ;;  %v1147_v40 = vmin.f32 %v1141_v15, %v1146_v36  ;;  %v1149_v20 = vmin.f32 %v1142_v31, %v1148_v37  ;;  %v1151_v21 = vmin.f32 %v1143_v34, %v1150_v38 }
 0x1d3   : > { %v7472_v4 = vsel %vm1161_vm14, %v1123_v17, %v7388_v32  ;;  %v7477_v6 = vsel %vm9936_vm15, %v1123_v17, %v7393_v33 }
 0x1d4   : > { %v1152_v8 = vmin.f32 %v1145_v39, %v1147_v40  ;;  %v1153_v41 = vmin.f32 %v1149_v20, %v1151_v21 }
 0x1d6   : > { %v1154_v35 = vmin.f32 %v1152_v8, %v1153_v41 }
 0x1d8   : > { %v1155_v28 = vrot.slane %v1154_v35, 4 }
 0x1da   : > { %v1156_v29 = vmin.f32 %v1154_v35, %v1155_v28 }
 0x1dc   : > { %v1157_v44 = vrot.slane %v1156_v29, 2 }
 0x1de   : > { %v1158_v45 = vmin.f32 %v1156_v29, %v1157_v44 }
 0x1e0   : > { %v1159_v22 = vrot.slane %v1158_v45, 1 }
 0x1e2   : > { %v1160_v46 = vmin.f32 %v1158_v45, %v1159_v22 }
 0x1e4   : > { %vm1175_vm12 = vcmp.eq.f32.partialorder %v6928_v54, %v1160_v46  ;;  %vm1176_vm7 = vcmp.eq.f32.partialorder %v6930_v55, %v1160_v46  ;;  %vm1177_vm9 = vcmp.eq.f32.partialorder %v6932_v58, %v1160_v46  ;;  %vm1178_vm10 = vcmp.eq.f32.partialorder %v6934_v59, %v1160_v46  ;;  %1165 = vperm.xlu1 %6649, %v1160_v46  }
 0x1e5   : > { %vm1179_vm11 = vcmp.eq.f32.partialorder %v6938_v61, %v1160_v46  ;;  %vm1180_vm3 = vcmp.eq.f32.partialorder %v6940_v62, %v1160_v46  ;;  %vm1181_vm4 = vcmp.eq.f32.partialorder %v6942_v63, %v1160_v46  ;;  %vm1182_vm13 = vcmp.eq.f32.partialorder %v6944_v0, %v1160_v46 }
 0x1e6   : > { %v7488_v32 = vsel %vm1175_vm12, -inf, %v7404_v48  ;;  %v7491_v33 = vsel %vm1176_vm7, -inf, %v7407_v49  ;;  %v7494_v47 = vsel %vm1177_vm9, -inf, %v7410_v23  ;;  %v7497_v11 = vsel %vm1178_vm10, -inf, %v7413_v24 }
 0x1e7   : > { %v7500_v18 = vsel %vm1179_vm11, -inf, %v7416_v50  ;;  %v7503_v9 = vsel %vm1180_vm3, -inf, %v7419_v42  ;;  %v7506_v12 = vsel %vm1181_vm4, -inf, %v7422_v43  ;;  %v7509_v48 = vsel %vm1182_vm13, -inf, %v7425_v2 }
 0x1e8   : > { %v1191_v49 = vsel %vm662_vm5, %v7488_v32, -inf  ;;  %v1192_v23 = vsel %vm662_vm5, %v7491_v33, -inf  ;;  %v1193_v24 = vsel %vm662_vm5, %v7494_v47, -inf  ;;  %v1194_v50 = vsel %vm662_vm5, %v7497_v11, -inf }
 0x1e9   : > { %v1195_v42 = vsel %vm662_vm5, %v7500_v18, -inf  ;;  %v1197_v43 = vsel %vm662_vm5, %v7503_v9, -inf  ;;  %v1199_v2 = vsel %vm662_vm5, %v7506_v12, -inf  ;;  %v1201_v10 = vsel %vm662_vm5, %v7509_v48, -inf }
 0x1ea   : > { %v1196_v13 = vmax.f32 %v1191_v49, %v1195_v42  ;;  %v1198_v60 = vmax.f32 %v1192_v23, %v1197_v43  ;;  %v1200_v14 = vmax.f32 %v1193_v24, %v1199_v2  ;;  %v1202_v17 = vmax.f32 %v1194_v50, %v1201_v10 }
 0x1eb   : > { %vm9939_vm12 = vcmp.eq.f32.partialorder %v6928_v54, 6.0  ;;  %vm9938_vm7 = vcmp.eq.f32.partialorder %v6930_v55, 6.0 }
 0x1ec   : > { %v1203_v16 = vmax.f32 %v1196_v13, %v1198_v60  ;;  %v1204_v56 = vmax.f32 %v1200_v14, %v1202_v17 }
 0x1ee   : > { %v1205_v57 = vmax.f32 %v1203_v16, %v1204_v56 }
 0x1f0   : > { %v1206_v19 = vrot.slane %v1205_v57, 4 }
 0x1f2   : > { %v1207_v26 = vmax.f32 %v1205_v57, %v1206_v19 }
 0x1f4   : > { %v1208_v27 = vrot.slane %v1207_v26, 2 }
 0x1f6   : > { %v1209_v53 = vmax.f32 %v1207_v26, %v1208_v27 }
 0x1f8   : > { %v1210_v1 = vrot.slane %v1209_v53, 1 }
 0x1fa   : > { %v1211_v30 = vmax.f32 %v1209_v53, %v1210_v1 }
 0x1fc   : > { %vm1212_vm9 = vcmp.eq.f32.partialorder %v7488_v32, %v1211_v30  ;;  %vm1213_vm10 = vcmp.eq.f32.partialorder %v7491_v33, %v1211_v30  ;;  %vm1214_vm11 = vcmp.eq.f32.partialorder %v7494_v47, %v1211_v30  ;;  %vm1215_vm3 = vcmp.eq.f32.partialorder %v7497_v11, %v1211_v30 }
 0x1fd   : > { %vm1216_vm4 = vcmp.eq.f32.partialorder %v7500_v18, %v1211_v30  ;;  %vm1217_vm13 = vcmp.eq.f32.partialorder %v7503_v9, %v1211_v30  ;;  %vm1218_vm15 = vcmp.eq.f32.partialorder %v7506_v12, %v1211_v30  ;;  %vm1219_vm6 = vcmp.eq.f32.partialorder %v7509_v48, %v1211_v30 }
 0x1fe   : > { %v1220_v15 = vsel %vm1212_vm9, %v6928_v54, 64.0  ;;  %v1221_v31 = vsel %vm1213_vm10, %v6930_v55, 64.0  ;;  %v1222_v34 = vsel %vm1214_vm11, %v6932_v58, 64.0  ;;  %v1223_v52 = vsel %vm1215_vm3, %v6934_v59, 64.0 }
 0x1ff   : > { %v1224_v36 = vsel %vm1216_vm4, %v6938_v61, 64.0  ;;  %v1225_v37 = vsel %vm1217_vm13, %v6940_v62, 64.0  ;;  %v1226_v38 = vsel %vm1218_vm15, %v6942_v63, 64.0  ;;  %v1227_v39 = vsel %vm1219_vm6, %v6944_v0, 64.0 }
 0x200   : > { %v1228_v40 = vsel %vm662_vm5, %v1220_v15, inf  ;;  %v1229_v20 = vsel %vm662_vm5, %v1221_v31, inf  ;;  %v1230_v21 = vsel %vm662_vm5, %v1222_v34, inf  ;;  %v1231_v8 = vsel %vm662_vm5, %v1223_v52, inf }
 0x201   : > { %v1232_v41 = vsel %vm662_vm5, %v1224_v36, inf  ;;  %v1234_v35 = vsel %vm662_vm5, %v1225_v37, inf  ;;  %v1236_v28 = vsel %vm662_vm5, %v1226_v38, inf  ;;  %v1238_v29 = vsel %vm662_vm5, %v1227_v39, inf  ;;  %v6699_v36 = vld [vmem:[%s6823_s27 + $0x8] sm:$0xff]  ;;  %v6700_v37 = vld [vmem:[%s6823_s27] sm:$0xff] }
 0x202   : > { %v1233_v44 = vmin.f32 %v1228_v40, %v1232_v41  ;;  %v1235_v45 = vmin.f32 %v1229_v20, %v1234_v35  ;;  %v1237_v22 = vmin.f32 %v1230_v21, %v1236_v28  ;;  %v1239_v46 = vmin.f32 %v1231_v8, %v1238_v29  ;;  %v6701_v20 = vld [vmem:[%s6823_s27 + $0x10] sm:$0xff]  ;;  %v6702_v21 = vld [vmem:[%s6823_s27 + $0x18] sm:$0xff]  ;;  %v6703_v28 = vld [vmem:[%s6823_s27 + $0x20] sm:$0xff] }
 0x203   : > { %v7556_v49 = vsel %vm9939_vm12, %v1211_v30, %v7472_v4  ;;  %v7561_v23 = vsel %vm9938_vm7, %v1211_v30, %v7477_v6  ;;  %v6197_v38 = vpack.c.bf16 %v6699_v36, %v6700_v37  ;;  %v6201_v8 = vpack.c.bf16 %v6702_v21, %v6701_v20  ;;  %v6704_v29 = vld [vmem:[%s6823_s27 + $0x28] sm:$0xff] }
 0x204   : > { %v1240_v24 = vmin.f32 %v1233_v44, %v1235_v45  ;;  %v1241_v50 = vmin.f32 %v1237_v22, %v1239_v46  ;;  %v6205_v44 = vpack.c.bf16 %v6704_v29, %v6703_v28 }
 0x205   : > { %6198 = vmatprep.subr.bf16.mxu0 %v6197_v38 }
 0x206   : > { %v1242_v42 = vmin.f32 %v1240_v24, %v1241_v50  ;;  %6200 = vmatpush3.bf16.msra.mxu0 %v6197_v38 }
 0x207   : > { %6202 = vmatprep.subr.bf16.mxu0 %v6201_v8 }
 0x208   : > { %v1243_v43 = vrot.slane %v1242_v42, 4 }
 0x20a   : > { %v1244_v2 = vmin.f32 %v1242_v42, %v1243_v43  ;;  %6204 = vmatpush3.bf16.msra.mxu0 %v6201_v8 }
 0x20b   : > { %6206 = vmatprep.subr.bf16.mxu0 %v6205_v44 }
 0x20c   : > { %v1245_v10 = vrot.slane %v1244_v2, 2 }
 0x20e   : > { %v1246_v13 = vmin.f32 %v1244_v2, %v1245_v10  ;;  %6208 = vmatpush3.bf16.msra.mxu0 %v6205_v44 }
 0x210   : > { %v1247_v60 = vrot.slane %v1246_v13, 1 }
 0x212   : > { %v1248_v14 = vmin.f32 %v1246_v13, %v1247_v60 }
 0x214   : > { %vm1263_vm6 = vcmp.eq.f32.partialorder %v6928_v54, %v1248_v14  ;;  %vm1264_vm15 = vcmp.eq.f32.partialorder %v6930_v55, %v1248_v14  ;;  %vm1265_vm9 = vcmp.eq.f32.partialorder %v6932_v58, %v1248_v14  ;;  %vm1266_vm10 = vcmp.eq.f32.partialorder %v6934_v59, %v1248_v14  ;;  %1253 = vperm.xlu1 %6649, %v1248_v14  }
 0x215   : > { %vm1267_vm11 = vcmp.eq.f32.partialorder %v6938_v61, %v1248_v14  ;;  %vm1268_vm3 = vcmp.eq.f32.partialorder %v6940_v62, %v1248_v14  ;;  %vm1269_vm4 = vcmp.eq.f32.partialorder %v6942_v63, %v1248_v14  ;;  %vm1270_vm13 = vcmp.eq.f32.partialorder %v6944_v0, %v1248_v14 }
 0x216   : > { %v7572_v4 = vsel %vm1263_vm6, -inf, %v7488_v32  ;;  %v7575_v6 = vsel %vm1264_vm15, -inf, %v7491_v33  ;;  %v7578_v17 = vsel %vm1265_vm9, -inf, %v7494_v47  ;;  %v7581_v16 = vsel %vm1266_vm10, -inf, %v7497_v11 }
 0x217   : > { %v7584_v56 = vsel %vm1267_vm11, -inf, %v7500_v18  ;;  %v7587_v57 = vsel %vm1268_vm3, -inf, %v7503_v9  ;;  %v7590_v19 = vsel %vm1269_vm4, -inf, %v7506_v12  ;;  %v7593_v32 = vsel %vm1270_vm13, -inf, %v7509_v48 }
 0x218   : > { %v1279_v33 = vsel %vm662_vm5, %v7572_v4, -inf  ;;  %v1280_v47 = vsel %vm662_vm5, %v7575_v6, -inf  ;;  %v1281_v11 = vsel %vm662_vm5, %v7578_v17, -inf  ;;  %v1282_v18 = vsel %vm662_vm5, %v7581_v16, -inf }
 0x219   : > { %v1283_v9 = vsel %vm662_vm5, %v7584_v56, -inf  ;;  %v1285_v12 = vsel %vm662_vm5, %v7587_v57, -inf  ;;  %v1287_v48 = vsel %vm662_vm5, %v7590_v19, -inf  ;;  %v1289_v26 = vsel %vm662_vm5, %v7593_v32, -inf }
 0x21a   : > { %v1284_v27 = vmax.f32 %v1279_v33, %v1283_v9  ;;  %v1286_v53 = vmax.f32 %v1280_v47, %v1285_v12  ;;  %v1288_v1 = vmax.f32 %v1281_v11, %v1287_v48  ;;  %v1290_v30 = vmax.f32 %v1282_v18, %v1289_v26 }
 0x21b   : > { %vm9941_vm6 = vcmp.eq.f32.partialorder %v6928_v54, 7.0  ;;  %vm9940_vm15 = vcmp.eq.f32.partialorder %v6930_v55, 7.0 }
 0x21c   : > { %v1291_v15 = vmax.f32 %v1284_v27, %v1286_v53  ;;  %v1292_v31 = vmax.f32 %v1288_v1, %v1290_v30  ;;  %v6705_v53 = vld [vmem:[%s6823_s27 + $0x30] sm:$0xff]  ;;  %v6706_v1 = vld [vmem:[%s6823_s27 + $0x38] sm:$0xff] }
 0x21d   : > { %v6209_v30 = vpack.c.bf16 %v6706_v1, %v6705_v53 }
 0x21e   : > { %v1293_v34 = vmax.f32 %v1291_v15, %v1292_v31 }
 0x21f   : > { %6210 = vmatprep.subr.bf16.mxu0 %v6209_v30 }
 0x220   : > { %v1294_v52 = vrot.slane %v1293_v34, 4  ;;  %6212 = vmatpush3.bf16.msra.mxu0 %v6209_v30 }
 0x222   : > { %v1295_v39 = vmax.f32 %v1293_v34, %v1294_v52 }
 0x224   : > { %v1296_v40 = vrot.slane %v1295_v39, 2 }
 0x226   : > { %v1297_v41 = vmax.f32 %v1295_v39, %v1296_v40 }
 0x228   : > { %v1298_v35 = vrot.slane %v1297_v41, 1 }
 0x22a   : > { %v1299_v45 = vmax.f32 %v1297_v41, %v1298_v35 }
 0x22c   : > { %vm1300_vm9 = vcmp.eq.f32.partialorder %v7572_v4, %v1299_v45  ;;  %vm1301_vm10 = vcmp.eq.f32.partialorder %v7575_v6, %v1299_v45  ;;  %vm1302_vm11 = vcmp.eq.f32.partialorder %v7578_v17, %v1299_v45  ;;  %vm1303_vm3 = vcmp.eq.f32.partialorder %v7581_v16, %v1299_v45 }
 0x22d   : > { %vm1304_vm4 = vcmp.eq.f32.partialorder %v7584_v56, %v1299_v45  ;;  %vm1305_vm13 = vcmp.eq.f32.partialorder %v7587_v57, %v1299_v45  ;;  %vm1306_vm7 = vcmp.eq.f32.partialorder %v7590_v19, %v1299_v45  ;;  %vm1307_vm12 = vcmp.eq.f32.partialorder %v7593_v32, %v1299_v45 }
 0x22e   : > { %v1308_v22 = vsel %vm1300_vm9, %v6928_v54, 64.0  ;;  %v1309_v46 = vsel %vm1301_vm10, %v6930_v55, 64.0  ;;  %v1310_v24 = vsel %vm1302_vm11, %v6932_v58, 64.0  ;;  %v1311_v50 = vsel %vm1303_vm3, %v6934_v59, 64.0 }
 0x22f   : > { %v1312_v42 = vsel %vm1304_vm4, %v6938_v61, 64.0  ;;  %v1313_v43 = vsel %vm1305_vm13, %v6940_v62, 64.0  ;;  %v1314_v2 = vsel %vm1306_vm7, %v6942_v63, 64.0  ;;  %v1315_v10 = vsel %vm1307_vm12, %v6944_v0, 64.0 }
 0x230   : > { %v1316_v13 = vsel %vm662_vm5, %v1308_v22, inf  ;;  %v1317_v60 = vsel %vm662_vm5, %v1309_v46, inf  ;;  %v1318_v14 = vsel %vm662_vm5, %v1310_v24, inf  ;;  %v1319_v33 = vsel %vm662_vm5, %v1311_v50, inf }
 0x231   : > { %v1320_v47 = vsel %vm662_vm5, %v1312_v42, inf  ;;  %v1322_v11 = vsel %vm662_vm5, %v1313_v43, inf  ;;  %v1324_v18 = vsel %vm662_vm5, %v1314_v2, inf  ;;  %v1326_v9 = vsel %vm662_vm5, %v1315_v10, inf }
 0x232   : > { %v1321_v12 = vmin.f32 %v1316_v13, %v1320_v47  ;;  %v1323_v48 = vmin.f32 %v1317_v60, %v1322_v11  ;;  %v1325_v26 = vmin.f32 %v1318_v14, %v1324_v18  ;;  %v1327_v27 = vmin.f32 %v1319_v33, %v1326_v9  ;;  %v5499_v14 = vld [vmem:[%s9921_s8] ss:$0 sm:$0xff] }
 0x233   : > { %v7648_v15 = vsel %vm9941_vm6, %v1299_v45, %v7556_v49  ;;  %v7653_v31 = vsel %vm9940_vm15, %v1299_v45, %v7561_v23 }
 0x234   : > { %v1328_v34 = vmin.f32 %v1321_v12, %v1323_v48  ;;  %v1329_v52 = vmin.f32 %v1325_v26, %v1327_v27 }
 0x236   : > { %v1330_v36 = vmin.f32 %v1328_v34, %v1329_v52  ;;  %v5507_v52 = vld [vmem:[%s9921_s8 + $0x1] ss:$0 sm:$0xff] }
 0x238   : > { %v1331_v37 = vrot.slane %v1330_v36, 4 }
 0x23a   : > { %v1332_v38 = vmin.f32 %v1330_v36, %v1331_v37 }
 0x23c   : > { %v1333_v39 = vrot.slane %v1332_v38, 2 }
 0x23e   : > { %v1334_v40 = vmin.f32 %v1332_v38, %v1333_v39 }
 0x240   : > { %v1335_v20 = vrot.slane %v1334_v40, 1 }
 0x242   : > { %v1336_v21 = vmin.f32 %v1334_v40, %v1335_v20 }
 0x244   : > { %vm1351_vm12 = vcmp.eq.f32.partialorder %v6928_v54, %v1336_v21  ;;  %vm1352_vm7 = vcmp.eq.f32.partialorder %v6930_v55, %v1336_v21  ;;  %vm1353_vm9 = vcmp.eq.f32.partialorder %v6932_v58, %v1336_v21  ;;  %vm1354_vm10 = vcmp.eq.f32.partialorder %v6934_v59, %v1336_v21  ;;  %1341 = vperm.xlu1 %6649, %v1336_v21  }
 0x245   : > { %vm1355_vm11 = vcmp.eq.f32.partialorder %v6938_v61, %v1336_v21  ;;  %vm1356_vm3 = vcmp.eq.f32.partialorder %v6940_v62, %v1336_v21  ;;  %vm1357_vm4 = vcmp.eq.f32.partialorder %v6942_v63, %v1336_v21  ;;  %vm1358_vm13 = vcmp.eq.f32.partialorder %v6944_v0, %v1336_v21 }
 0x246   : > { %v7664_v49 = vsel %vm1351_vm12, -inf, %v7572_v4  ;;  %v7667_v23 = vsel %vm1352_vm7, -inf, %v7575_v6  ;;  %v7670_v8 = vsel %vm1353_vm9, -inf, %v7578_v17  ;;  %v7673_v41 = vsel %vm1354_vm10, -inf, %v7581_v16 }
 0x247   : > { %v7676_v35 = vsel %vm1355_vm11, -inf, %v7584_v56  ;;  %v7679_v28 = vsel %vm1356_vm3, -inf, %v7587_v57  ;;  %v7682_v29 = vsel %vm1357_vm4, -inf, %v7590_v19  ;;  %v7685_v4 = vsel %vm1358_vm13, -inf, %v7593_v32 }
 0x248   : > { %v1367_v6 = vsel %vm662_vm5, %v7664_v49, -inf  ;;  %v1368_v17 = vsel %vm662_vm5, %v7667_v23, -inf  ;;  %v1369_v16 = vsel %vm662_vm5, %v7670_v8, -inf  ;;  %v1370_v56 = vsel %vm662_vm5, %v7673_v41, -inf }
 0x249   : > { %v1371_v57 = vsel %vm662_vm5, %v7676_v35, -inf  ;;  %v1373_v19 = vsel %vm662_vm5, %v7679_v28, -inf  ;;  %v1375_v32 = vsel %vm662_vm5, %v7682_v29, -inf  ;;  %v1377_v44 = vsel %vm662_vm5, %v7685_v4, -inf }
 0x24a   : > { %v1372_v45 = vmax.f32 %v1367_v6, %v1371_v57  ;;  %v1374_v22 = vmax.f32 %v1368_v17, %v1373_v19  ;;  %v1376_v46 = vmax.f32 %v1369_v16, %v1375_v32  ;;  %v1378_v24 = vmax.f32 %v1370_v56, %v1377_v44 }
 0x24b   : > { %vm9944_vm12 = vcmp.eq.f32.partialorder %v6928_v54, 8.0  ;;  %vm9943_vm7 = vcmp.eq.f32.partialorder %v6930_v55, 8.0 }
 0x24c   : > { %v1379_v50 = vmax.f32 %v1372_v45, %v1374_v22  ;;  %v1380_v42 = vmax.f32 %v1376_v46, %v1378_v24 }
 0x24e   : > { %v1381_v43 = vmax.f32 %v1379_v50, %v1380_v42  ;;  %v6716_v42 = vld [vmem:[%s6823_s27 + $0x38] sm:$0xff] }
 0x250   : > { %v1382_v2 = vrot.slane %v1381_v43, 4 }
 0x252   : > { %v1383_v10 = vmax.f32 %v1381_v43, %v1382_v2 }
 0x254   : > { %v1384_v13 = vrot.slane %v1383_v10, 2 }
 0x256   : > { %v1385_v60 = vmax.f32 %v1383_v10, %v1384_v13 }
 0x258   : > { %v1386_v33 = vrot.slane %v1385_v60, 1  ;;  %v6047_v47 = vpop.f32.mrb[0].mxu1 }
 0x259   : > { %v2295_v11 = vpop.f32.mrb[1].mxu1 }
 0x25a   : > { %v1387_v18 = vmax.f32 %v1385_v60, %v1386_v33  ;;  %v2296_v9 = vadd.f32 %v5499_v14, %v2295_v11 }
 0x25c   : > { %vm1388_vm9 = vcmp.eq.f32.partialorder %v7664_v49, %v1387_v18  ;;  %vm1389_vm10 = vcmp.eq.f32.partialorder %v7667_v23, %v1387_v18  ;;  %vm1390_vm11 = vcmp.eq.f32.partialorder %v7670_v8, %v1387_v18  ;;  %vm1391_vm3 = vcmp.eq.f32.partialorder %v7673_v41, %v1387_v18  ;;  %6074 = vmatprep.mubr.msk.f32.mxu1 %vm9942_vm2, %v2296_v9 }
 0x25d   : > { %vm1392_vm4 = vcmp.eq.f32.partialorder %v7676_v35, %v1387_v18  ;;  %vm1393_vm13 = vcmp.eq.f32.partialorder %v7679_v28, %v1387_v18  ;;  %vm1394_vm15 = vcmp.eq.f32.partialorder %v7682_v29, %v1387_v18  ;;  %vm1395_vm6 = vcmp.eq.f32.partialorder %v7685_v4, %v1387_v18 }
 0x25e   : > { %v1396_v12 = vsel %vm1388_vm9, %v6928_v54, 64.0  ;;  %v1397_v48 = vsel %vm1389_vm10, %v6930_v55, 64.0  ;;  %v1398_v26 = vsel %vm1390_vm11, %v6932_v58, 64.0  ;;  %v1399_v27 = vsel %vm1391_vm3, %v6934_v59, 64.0 }
 0x25f   : > { %v1400_v53 = vsel %vm1392_vm4, %v6938_v61, 64.0  ;;  %v1401_v1 = vsel %vm1393_vm13, %v6940_v62, 64.0  ;;  %v1402_v30 = vsel %vm1394_vm15, %v6942_v63, 64.0  ;;  %v1403_v34 = vsel %vm1395_vm6, %v6944_v0, 64.0  ;;  %vm7748_vm6 = vmpackc.low %vm9942_vm2, %vm9942_vm2 }
 0x260   : > { %v1404_v36 = vsel %vm662_vm5, %v1396_v12, inf  ;;  %v1405_v37 = vsel %vm662_vm5, %v1397_v48, inf  ;;  %v1406_v38 = vsel %vm662_vm5, %v1398_v26, inf  ;;  %v1407_v39 = vsel %vm662_vm5, %v1399_v27, inf  ;;  %v6058_v40 = vpop.f32.mrb[2].mxu1 }
 0x261   : > { %v1408_v20 = vsel %vm662_vm5, %v1400_v53, inf  ;;  %v1410_v21 = vsel %vm662_vm5, %v1401_v1, inf  ;;  %v1412_v6 = vsel %vm662_vm5, %v1402_v30, inf  ;;  %v1414_v17 = vsel %vm662_vm5, %v1403_v34, inf  ;;  %v2383_v16 = vpop.f32.mrb[3].mxu1 }
 0x262   : > { %v1409_v56 = vmin.f32 %v1404_v36, %v1408_v20  ;;  %v1411_v57 = vmin.f32 %v1405_v37, %v1410_v21  ;;  %v1413_v19 = vmin.f32 %v1406_v38, %v1412_v6  ;;  %v1415_v32 = vmin.f32 %v1407_v39, %v1414_v17 }
 0x263   : > { %v2389_v44 = vadd.f32 %v6058_v40, %v5507_v52  ;;  %v2384_v45 = vadd.f32 %v5507_v52, %v2383_v16  ;;  %v7739_v22 = vsel %vm9944_vm12, %v1387_v18, %v7648_v15  ;;  %v7744_v46 = vsel %vm9943_vm7, %v1387_v18, %v7653_v31  ;;  %v5515_v15 = vld [vmem:[%s9921_s8 + $0x2] ss:$0 sm:$0xff] }
 0x264   : > { %v1416_v24 = vmin.f32 %v1409_v56, %v1411_v57  ;;  %v1417_v50 = vmin.f32 %v1413_v19, %v1415_v32  ;;  %v2301_v12 = vadd.f32 %v6047_v47, %v5499_v14 }
 0x265   : > { %v6237_v43 = vpack.c.bf16 %v2389_v44, %v2384_v45 }
 0x266   : > { %v1418_v2 = vmin.f32 %v1416_v24, %v1417_v50 }
 0x267   : > { %6239 = vmatprep.subr.msk.bf16.mxu1 %vm7748_vm6, %v6237_v43 }
 0x268   : > { %v1419_v10 = vrot.slane %v1418_v2, 4  ;;  %6242 = vmatpush3.bf16.xpose.msk.msra.mxu1 %vm7748_vm6, %v6237_v43  ;;  %v6069_v31 = vpop.f32.mrb[4].mxu1 }
 0x269   : > { %v2477_v13 = vadd.f32 %v6069_v31, %v5515_v15  ;;  %v2471_v60 = vpop.f32.mrb[5].mxu1 }
 0x26a   : > { %v1420_v33 = vmin.f32 %v1418_v2, %v1419_v10  ;;  %v2472_v11 = vadd.f32 %v5515_v15, %v2471_v60 }
 0x26c   : > { %v1421_v18 = vrot.slane %v1420_v33, 2  ;;  %v7759_v9 = vpack.c.bf16 %v2477_v13, %v2472_v11 }
 0x26e   : > { %v1422_v48 = vmin.f32 %v1420_v33, %v1421_v18  ;;  %6244 = vmatprep.subr.bf16.mxu0 %v7759_v9 }
 0x26f   : > { %6075 = vmatmul.mubr.msk.f32.vlgmr.msra.gmra.mrb[6].mxu1 %vm9942_vm2, %v2301_v12 }
 0x270   : > { %v1423_v26 = vrot.slane %v1422_v48, 1 }
 0x272   : > { %v7763_v27 = vmin.f32 %v1422_v48, %v1423_v26 }
 0x274   : > { %vm1439_vm15 = vcmp.eq.f32.partialorder %v6928_v54, %v7763_v27  ;;  %vm1440_vm9 = vcmp.eq.f32.partialorder %v6930_v55, %v7763_v27  ;;  %vm1441_vm10 = vcmp.eq.f32.partialorder %v6932_v58, %v7763_v27  ;;  %vm1442_vm11 = vcmp.eq.f32.partialorder %v6934_v59, %v7763_v27 }
 0x275   : > { %vm1443_vm3 = vcmp.eq.f32.partialorder %v6938_v61, %v7763_v27  ;;  %vm1444_vm4 = vcmp.eq.f32.partialorder %v6940_v62, %v7763_v27  ;;  %vm1445_vm13 = vcmp.eq.f32.partialorder %v6942_v63, %v7763_v27  ;;  %vm1446_vm2 = vcmp.eq.f32.partialorder %v6944_v0, %v7763_v27 }
 0x276   : > { %v7782_v14 = vsel %vm1439_vm15, -inf, %v7664_v49  ;;  %v7785_v47 = vsel %vm1440_vm9, -inf, %v7667_v23  ;;  %v7788_v53 = vsel %vm1441_vm10, -inf, %v7670_v8  ;;  %v7791_v1 = vsel %vm1442_vm11, -inf, %v7673_v41 }
 0x277   : > { %v7794_v30 = vsel %vm1443_vm3, -inf, %v7676_v35  ;;  %v7797_v34 = vsel %vm1444_vm4, -inf, %v7679_v28  ;;  %v7800_v52 = vsel %vm1445_vm13, -inf, %v7682_v29  ;;  %v7803_v49 = vsel %vm1446_vm2, -inf, %v7685_v4 }
 0x278   : > { %v1455_v23 = vsel %vm662_vm5, %v7782_v14, -inf  ;;  %v1456_v8 = vsel %vm662_vm5, %v7785_v47, -inf  ;;  %v1457_v41 = vsel %vm662_vm5, %v7788_v53, -inf  ;;  %v1458_v35 = vsel %vm662_vm5, %v7791_v1, -inf }
 0x279   : > { %v1459_v28 = vsel %vm662_vm5, %v7794_v30, -inf  ;;  %v1461_v29 = vsel %vm662_vm5, %v7797_v34, -inf  ;;  %v1463_v4 = vsel %vm662_vm5, %v7800_v52, -inf  ;;  %v1465_v36 = vsel %vm662_vm5, %v7803_v49, -inf }
 0x27a   : > { %v1460_v37 = vmax.f32 %v1455_v23, %v1459_v28  ;;  %v1462_v38 = vmax.f32 %v1456_v8, %v1461_v29  ;;  %v1464_v39 = vmax.f32 %v1457_v41, %v1463_v4  ;;  %v1466_v40 = vmax.f32 %v1458_v35, %v1465_v36 }
 0x27b   : > { %vm9946_vm2 = vcmp.eq.f32.partialorder %v6928_v54, 9.0  ;;  %vm9945_vm15 = vcmp.eq.f32.partialorder %v6930_v55, 9.0 }
 0x27c   : > { %v1467_v20 = vmax.f32 %v1460_v37, %v1462_v38  ;;  %v1468_v21 = vmax.f32 %v1464_v39, %v1466_v40 }
 0x27e   : > { %v1469_v6 = vmax.f32 %v1467_v20, %v1468_v21 }
 0x280   : > { %v1470_v17 = vrot.slane %v1469_v6, 4 }
 0x282   : > { %v1471_v16 = vmax.f32 %v1469_v6, %v1470_v17 }
 0x284   : > { %v1472_v56 = vrot.slane %v1471_v16, 2 }
 0x286   : > { %v1473_v57 = vmax.f32 %v1471_v16, %v1472_v56 }
 0x288   : > { %v1474_v19 = vrot.slane %v1473_v57, 1 }
 0x28a   : > { %v1475_v32 = vmax.f32 %v1473_v57, %v1474_v19 }
 0x28c   : > { %vm1476_vm9 = vcmp.eq.f32.partialorder %v7782_v14, %v1475_v32  ;;  %vm1477_vm10 = vcmp.eq.f32.partialorder %v7785_v47, %v1475_v32  ;;  %vm1478_vm11 = vcmp.eq.f32.partialorder %v7788_v53, %v1475_v32  ;;  %vm1479_vm3 = vcmp.eq.f32.partialorder %v7791_v1, %v1475_v32 }
 0x28d   : > { %vm1480_vm4 = vcmp.eq.f32.partialorder %v7794_v30, %v1475_v32  ;;  %vm1481_vm13 = vcmp.eq.f32.partialorder %v7797_v34, %v1475_v32  ;;  %vm1482_vm7 = vcmp.eq.f32.partialorder %v7800_v52, %v1475_v32  ;;  %vm1483_vm12 = vcmp.eq.f32.partialorder %v7803_v49, %v1475_v32 }
 0x28e   : > { %v1484_v44 = vsel %vm1476_vm9, %v6928_v54, 64.0  ;;  %v1485_v45 = vsel %vm1477_vm10, %v6930_v55, 64.0  ;;  %v1486_v24 = vsel %vm1478_vm11, %v6932_v58, 64.0  ;;  %v1487_v50 = vsel %vm1479_vm3, %v6934_v59, 64.0 }
 0x28f   : > { %v1488_v43 = vsel %vm1480_vm4, %v6938_v61, 64.0  ;;  %v1489_v2 = vsel %vm1481_vm13, %v6940_v62, 64.0  ;;  %v1490_v15 = vsel %vm1482_vm7, %v6942_v63, 64.0  ;;  %v1491_v10 = vsel %vm1483_vm12, %v6944_v0, 64.0 }
 0x290   : > { %v1492_v31 = vsel %vm662_vm5, %v1484_v44, inf  ;;  %v1493_v13 = vsel %vm662_vm5, %v1485_v45, inf  ;;  %v1494_v60 = vsel %vm662_vm5, %v1486_v24, inf  ;;  %v1495_v33 = vsel %vm662_vm5, %v1487_v50, inf }
 0x291   : > { %v1496_v11 = vsel %vm662_vm5, %v1488_v43, inf  ;;  %v1498_v18 = vsel %vm662_vm5, %v1489_v2, inf  ;;  %v1500_v12 = vsel %vm662_vm5, %v1490_v15, inf  ;;  %v1502_v48 = vsel %vm662_vm5, %v1491_v10, inf }
 0x292   : > { %v1497_v26 = vmin.f32 %v1492_v31, %v1496_v11  ;;  %v1499_v23 = vmin.f32 %v1493_v13, %v1498_v18  ;;  %v1501_v8 = vmin.f32 %v1494_v60, %v1500_v12  ;;  %v1503_v41 = vmin.f32 %v1495_v33, %v1502_v48 }
 0x293   : > { %v7850_v35 = vsel %vm9946_vm2, %v1475_v32, %v7739_v22  ;;  %v7855_v28 = vsel %vm9945_vm15, %v1475_v32, %v7744_v46 }
 0x294   : > { %v1504_v29 = vmin.f32 %v1497_v26, %v1499_v23  ;;  %v1505_v4 = vmin.f32 %v1501_v8, %v1503_v41 }
 0x296   : > { %v1506_v36 = vmin.f32 %v1504_v29, %v1505_v4 }
 0x298   : > { %v1507_v37 = vrot.slane %v1506_v36, 4 }
 0x29a   : > { %v1508_v38 = vmin.f32 %v1506_v36, %v1507_v37 }
 0x29c   : > { %v1509_v39 = vrot.slane %v1508_v38, 2 }
 0x29e   : > { %v1510_v40 = vmin.f32 %v1508_v38, %v1509_v39 }
 0x2a0   : > { %v1511_v20 = vrot.slane %v1510_v40, 1 }
 0x2a2   : > { %v1512_v21 = vmin.f32 %v1510_v40, %v1511_v20 }
 0x2a4   : > { %vm1527_vm12 = vcmp.eq.f32.partialorder %v6928_v54, %v1512_v21  ;;  %vm1528_vm7 = vcmp.eq.f32.partialorder %v6930_v55, %v1512_v21  ;;  %vm1529_vm9 = vcmp.eq.f32.partialorder %v6932_v58, %v1512_v21  ;;  %vm1530_vm10 = vcmp.eq.f32.partialorder %v6934_v59, %v1512_v21  ;;  %1517 = vperm.xlu1 %6649, %v1512_v21  }
 0x2a5   : > { %vm1531_vm11 = vcmp.eq.f32.partialorder %v6938_v61, %v1512_v21  ;;  %vm1532_vm3 = vcmp.eq.f32.partialorder %v6940_v62, %v1512_v21  ;;  %vm1533_vm4 = vcmp.eq.f32.partialorder %v6942_v63, %v1512_v21  ;;  %vm1534_vm13 = vcmp.eq.f32.partialorder %v6944_v0, %v1512_v21 }
 0x2a6   : > { %v7866_v22 = vsel %vm1527_vm12, -inf, %v7782_v14  ;;  %v7869_v46 = vsel %vm1528_vm7, -inf, %v7785_v47  ;;  %v7872_v6 = vsel %vm1529_vm9, -inf, %v7788_v53  ;;  %v7875_v17 = vsel %vm1530_vm10, -inf, %v7791_v1 }
 0x2a7   : > { %v7878_v16 = vsel %vm1531_vm11, -inf, %v7794_v30  ;;  %v7881_v56 = vsel %vm1532_vm3, -inf, %v7797_v34  ;;  %v7884_v57 = vsel %vm1533_vm4, -inf, %v7800_v52  ;;  %v7887_v14 = vsel %vm1534_vm13, -inf, %v7803_v49 }
 0x2a8   : > { %v1543_v47 = vsel %vm662_vm5, %v7866_v22, -inf  ;;  %v1544_v53 = vsel %vm662_vm5, %v7869_v46, -inf  ;;  %v1545_v1 = vsel %vm662_vm5, %v7872_v6, -inf  ;;  %v1546_v30 = vsel %vm662_vm5, %v7875_v17, -inf }
 0x2a9   : > { %v1547_v34 = vsel %vm662_vm5, %v7878_v16, -inf  ;;  %v1549_v52 = vsel %vm662_vm5, %v7881_v56, -inf  ;;  %v1551_v49 = vsel %vm662_vm5, %v7884_v57, -inf  ;;  %v1553_v19 = vsel %vm662_vm5, %v7887_v14, -inf }
 0x2aa   : > { %v1548_v32 = vmax.f32 %v1543_v47, %v1547_v34  ;;  %v1550_v44 = vmax.f32 %v1544_v53, %v1549_v52  ;;  %v1552_v45 = vmax.f32 %v1545_v1, %v1551_v49  ;;  %v1554_v24 = vmax.f32 %v1546_v30, %v1553_v19 }
 0x2ab   : > { %vm9948_vm12 = vcmp.eq.f32.partialorder %v6928_v54, 10.0  ;;  %vm9947_vm7 = vcmp.eq.f32.partialorder %v6930_v55, 10.0 }
 0x2ac   : > { %v1555_v50 = vmax.f32 %v1548_v32, %v1550_v44  ;;  %v1556_v43 = vmax.f32 %v1552_v45, %v1554_v24 }
 0x2ae   : > { %v1557_v2 = vmax.f32 %v1555_v50, %v1556_v43 }
 0x2b0   : > { %v1558_v15 = vrot.slane %v1557_v2, 4 }
 0x2b2   : > { %v1559_v10 = vmax.f32 %v1557_v2, %v1558_v15 }
 0x2b4   : > { %v1560_v31 = vrot.slane %v1559_v10, 2 }
 0x2b6   : > { %v1561_v13 = vmax.f32 %v1559_v10, %v1560_v31 }
 0x2b8   : > { %v1562_v60 = vrot.slane %v1561_v13, 1 }
 0x2ba   : > { %v1563_v33 = vmax.f32 %v1561_v13, %v1562_v60 }
 0x2bc   : > { %vm1564_vm9 = vcmp.eq.f32.partialorder %v7866_v22, %v1563_v33  ;;  %vm1565_vm10 = vcmp.eq.f32.partialorder %v7869_v46, %v1563_v33  ;;  %vm1566_vm11 = vcmp.eq.f32.partialorder %v7872_v6, %v1563_v33  ;;  %vm1567_vm3 = vcmp.eq.f32.partialorder %v7875_v17, %v1563_v33 }
 0x2bd   : > { %vm1568_vm4 = vcmp.eq.f32.partialorder %v7878_v16, %v1563_v33  ;;  %vm1569_vm13 = vcmp.eq.f32.partialorder %v7881_v56, %v1563_v33  ;;  %vm1570_vm15 = vcmp.eq.f32.partialorder %v7884_v57, %v1563_v33  ;;  %vm1571_vm2 = vcmp.eq.f32.partialorder %v7887_v14, %v1563_v33 }
 0x2be   : > { %v1572_v11 = vsel %vm1564_vm9, %v6928_v54, 64.0  ;;  %v1573_v18 = vsel %vm1565_vm10, %v6930_v55, 64.0  ;;  %v1574_v12 = vsel %vm1566_vm11, %v6932_v58, 64.0  ;;  %v1575_v48 = vsel %vm1567_vm3, %v6934_v59, 64.0 }
 0x2bf   : > { %v1576_v26 = vsel %vm1568_vm4, %v6938_v61, 64.0  ;;  %v1577_v23 = vsel %vm1569_vm13, %v6940_v62, 64.0  ;;  %v1578_v8 = vsel %vm1570_vm15, %v6942_v63, 64.0  ;;  %v1579_v41 = vsel %vm1571_vm2, %v6944_v0, 64.0 }
 0x2c0   : > { %v1580_v29 = vsel %vm662_vm5, %v1572_v11, inf  ;;  %v1581_v4 = vsel %vm662_vm5, %v1573_v18, inf  ;;  %v1582_v36 = vsel %vm662_vm5, %v1574_v12, inf  ;;  %v1583_v37 = vsel %vm662_vm5, %v1575_v48, inf }
 0x2c1   : > { %v1584_v38 = vsel %vm662_vm5, %v1576_v26, inf  ;;  %v1586_v39 = vsel %vm662_vm5, %v1577_v23, inf  ;;  %v1588_v40 = vsel %vm662_vm5, %v1578_v8, inf  ;;  %v1590_v20 = vsel %vm662_vm5, %v1579_v41, inf }
 0x2c2   : > { %v1585_v21 = vmin.f32 %v1580_v29, %v1584_v38  ;;  %v1587_v47 = vmin.f32 %v1581_v4, %v1586_v39  ;;  %v1589_v53 = vmin.f32 %v1582_v36, %v1588_v40  ;;  %v1591_v1 = vmin.f32 %v1583_v37, %v1590_v20 }
 0x2c3   : > { %v7934_v30 = vsel %vm9948_vm12, %v1563_v33, %v7850_v35  ;;  %v7939_v34 = vsel %vm9947_vm7, %v1563_v33, %v7855_v28 }
 0x2c4   : > { %v1592_v52 = vmin.f32 %v1585_v21, %v1587_v47  ;;  %v1593_v49 = vmin.f32 %v1589_v53, %v1591_v1 }
 0x2c6   : > { %v1594_v19 = vmin.f32 %v1592_v52, %v1593_v49 }
 0x2c8   : > { %v1595_v32 = vrot.slane %v1594_v19, 4 }
 0x2ca   : > { %v1596_v44 = vmin.f32 %v1594_v19, %v1595_v32 }
 0x2cc   : > { %v1597_v45 = vrot.slane %v1596_v44, 2 }
 0x2ce   : > { %v1598_v24 = vmin.f32 %v1596_v44, %v1597_v45 }
 0x2d0   : > { %v1599_v50 = vrot.slane %v1598_v24, 1 }
 0x2d2   : > { %v7941_v43 = vmin.f32 %v1598_v24, %v1599_v50 }
 0x2d4   : > { %vm1615_vm2 = vcmp.eq.f32.partialorder %v6928_v54, %v7941_v43  ;;  %vm1616_vm15 = vcmp.eq.f32.partialorder %v6930_v55, %v7941_v43  ;;  %vm1617_vm9 = vcmp.eq.f32.partialorder %v6932_v58, %v7941_v43  ;;  %vm1618_vm10 = vcmp.eq.f32.partialorder %v6934_v59, %v7941_v43 }
 0x2d5   : > { %vm1619_vm11 = vcmp.eq.f32.partialorder %v6938_v61, %v7941_v43  ;;  %vm1620_vm3 = vcmp.eq.f32.partialorder %v6940_v62, %v7941_v43  ;;  %vm1621_vm4 = vcmp.eq.f32.partialorder %v6942_v63, %v7941_v43  ;;  %vm1622_vm13 = vcmp.eq.f32.partialorder %v6944_v0, %v7941_v43 }
 0x2d6   : > { %v7960_v35 = vsel %vm1615_vm2, -inf, %v7866_v22  ;;  %v7963_v28 = vsel %vm1616_vm15, -inf, %v7869_v46  ;;  %v7966_v2 = vsel %vm1617_vm9, -inf, %v7872_v6  ;;  %v7969_v15 = vsel %vm1618_vm10, -inf, %v7875_v17 }
 0x2d7   : > { %v7972_v10 = vsel %vm1619_vm11, -inf, %v7878_v16  ;;  %v7975_v31 = vsel %vm1620_vm3, -inf, %v7881_v56  ;;  %v7978_v13 = vsel %vm1621_vm4, -inf, %v7884_v57  ;;  %v7981_v22 = vsel %vm1622_vm13, -inf, %v7887_v14 }
 0x2d8   : > { %v1631_v46 = vsel %vm662_vm5, %v7960_v35, -inf  ;;  %v1632_v6 = vsel %vm662_vm5, %v7963_v28, -inf  ;;  %v1633_v17 = vsel %vm662_vm5, %v7966_v2, -inf  ;;  %v1634_v16 = vsel %vm662_vm5, %v7969_v15, -inf }
 0x2d9   : > { %v1635_v56 = vsel %vm662_vm5, %v7972_v10, -inf  ;;  %v1637_v57 = vsel %vm662_vm5, %v7975_v31, -inf  ;;  %v1639_v14 = vsel %vm662_vm5, %v7978_v13, -inf  ;;  %v1641_v60 = vsel %vm662_vm5, %v7981_v22, -inf }
 0x2da   : > { %v1636_v33 = vmax.f32 %v1631_v46, %v1635_v56  ;;  %v1638_v11 = vmax.f32 %v1632_v6, %v1637_v57  ;;  %v1640_v18 = vmax.f32 %v1633_v17, %v1639_v14  ;;  %v1642_v12 = vmax.f32 %v1634_v16, %v1641_v60 }
 0x2db   : > { %vm9950_vm2 = vcmp.eq.f32.partialorder %v6928_v54, 11.0  ;;  %vm9949_vm15 = vcmp.eq.f32.partialorder %v6930_v55, 11.0 }
 0x2dc   : > { %v1643_v48 = vmax.f32 %v1636_v33, %v1638_v11  ;;  %v1644_v26 = vmax.f32 %v1640_v18, %v1642_v12 }
 0x2de   : > { %v1645_v23 = vmax.f32 %v1643_v48, %v1644_v26 }
 0x2e0   : > { %v1646_v8 = vrot.slane %v1645_v23, 4 }
 0x2e2   : > { %v1647_v41 = vmax.f32 %v1645_v23, %v1646_v8 }
 0x2e4   : > { %v1648_v29 = vrot.slane %v1647_v41, 2 }
 0x2e6   : > { %v1649_v4 = vmax.f32 %v1647_v41, %v1648_v29 }
 0x2e8   : > { %v1650_v36 = vrot.slane %v1649_v4, 1 }
 0x2ea   : > { %v1651_v37 = vmax.f32 %v1649_v4, %v1650_v36 }
 0x2ec   : > { %vm1652_vm9 = vcmp.eq.f32.partialorder %v7960_v35, %v1651_v37  ;;  %vm1653_vm10 = vcmp.eq.f32.partialorder %v7963_v28, %v1651_v37  ;;  %vm1654_vm11 = vcmp.eq.f32.partialorder %v7966_v2, %v1651_v37  ;;  %vm1655_vm3 = vcmp.eq.f32.partialorder %v7969_v15, %v1651_v37 }
 0x2ed   : > { %vm1656_vm4 = vcmp.eq.f32.partialorder %v7972_v10, %v1651_v37  ;;  %vm1657_vm13 = vcmp.eq.f32.partialorder %v7975_v31, %v1651_v37  ;;  %vm1658_vm7 = vcmp.eq.f32.partialorder %v7978_v13, %v1651_v37  ;;  %vm1659_vm12 = vcmp.eq.f32.partialorder %v7981_v22, %v1651_v37 }
 0x2ee   : > { %v1660_v38 = vsel %vm1652_vm9, %v6928_v54, 64.0  ;;  %v1661_v39 = vsel %vm1653_vm10, %v6930_v55, 64.0  ;;  %v1662_v40 = vsel %vm1654_vm11, %v6932_v58, 64.0  ;;  %v1663_v20 = vsel %vm1655_vm3, %v6934_v59, 64.0 }
 0x2ef   : > { %v1664_v21 = vsel %vm1656_vm4, %v6938_v61, 64.0  ;;  %v1665_v47 = vsel %vm1657_vm13, %v6940_v62, 64.0  ;;  %v1666_v53 = vsel %vm1658_vm7, %v6942_v63, 64.0  ;;  %v1667_v1 = vsel %vm1659_vm12, %v6944_v0, 64.0 }
 0x2f0   : > { %v1668_v52 = vsel %vm662_vm5, %v1660_v38, inf  ;;  %v1669_v49 = vsel %vm662_vm5, %v1661_v39, inf  ;;  %v1670_v19 = vsel %vm662_vm5, %v1662_v40, inf  ;;  %v1671_v32 = vsel %vm662_vm5, %v1663_v20, inf }
 0x2f1   : > { %v1672_v44 = vsel %vm662_vm5, %v1664_v21, inf  ;;  %v1674_v45 = vsel %vm662_vm5, %v1665_v47, inf  ;;  %v1676_v24 = vsel %vm662_vm5, %v1666_v53, inf  ;;  %v1678_v50 = vsel %vm662_vm5, %v1667_v1, inf }
 0x2f2   : > { %v1673_v46 = vmin.f32 %v1668_v52, %v1672_v44  ;;  %v1675_v6 = vmin.f32 %v1669_v49, %v1674_v45  ;;  %v1677_v17 = vmin.f32 %v1670_v19, %v1676_v24  ;;  %v1679_v16 = vmin.f32 %v1671_v32, %v1678_v50 }
 0x2f3   : > { %v8028_v56 = vsel %vm9950_vm2, %v1651_v37, %v7934_v30  ;;  %v8033_v57 = vsel %vm9949_vm15, %v1651_v37, %v7939_v34 }
 0x2f4   : > { %v1680_v14 = vmin.f32 %v1673_v46, %v1675_v6  ;;  %v1681_v60 = vmin.f32 %v1677_v17, %v1679_v16 }
 0x2f6   : > { %v1682_v33 = vmin.f32 %v1680_v14, %v1681_v60 }
 0x2f8   : > { %v1683_v11 = vrot.slane %v1682_v33, 4 }
 0x2fa   : > { %v1684_v18 = vmin.f32 %v1682_v33, %v1683_v11 }
 0x2fc   : > { %v1685_v12 = vrot.slane %v1684_v18, 2 }
 0x2fe   : > { %v1686_v48 = vmin.f32 %v1684_v18, %v1685_v12 }
 0x300   : > { %v1687_v26 = vrot.slane %v1686_v48, 1 }
 0x302   : > { %v8035_v23 = vmin.f32 %v1686_v48, %v1687_v26 }
 0x304   : > { %vm1703_vm12 = vcmp.eq.f32.partialorder %v6928_v54, %v8035_v23  ;;  %vm1704_vm7 = vcmp.eq.f32.partialorder %v6930_v55, %v8035_v23  ;;  %vm1705_vm9 = vcmp.eq.f32.partialorder %v6932_v58, %v8035_v23  ;;  %vm1706_vm10 = vcmp.eq.f32.partialorder %v6934_v59, %v8035_v23 }
 0x305   : > { %vm1707_vm11 = vcmp.eq.f32.partialorder %v6938_v61, %v8035_v23  ;;  %vm1708_vm3 = vcmp.eq.f32.partialorder %v6940_v62, %v8035_v23  ;;  %vm1709_vm4 = vcmp.eq.f32.partialorder %v6942_v63, %v8035_v23  ;;  %vm1710_vm13 = vcmp.eq.f32.partialorder %v6944_v0, %v8035_v23 }
 0x306   : > { %v8054_v30 = vsel %vm1703_vm12, -inf, %v7960_v35  ;;  %v8057_v34 = vsel %vm1704_vm7, -inf, %v7963_v28  ;;  %v8060_v8 = vsel %vm1705_vm9, -inf, %v7966_v2  ;;  %v8063_v41 = vsel %vm1706_vm10, -inf, %v7969_v15 }
 0x307   : > { %v8066_v29 = vsel %vm1707_vm11, -inf, %v7972_v10  ;;  %v8069_v4 = vsel %vm1708_vm3, -inf, %v7975_v31  ;;  %v8072_v36 = vsel %vm1709_vm4, -inf, %v7978_v13  ;;  %v8075_v35 = vsel %vm1710_vm13, -inf, %v7981_v22 }
 0x308   : > { %v1719_v28 = vsel %vm662_vm5, %v8054_v30, -inf  ;;  %v1720_v2 = vsel %vm662_vm5, %v8057_v34, -inf  ;;  %v1721_v15 = vsel %vm662_vm5, %v8060_v8, -inf  ;;  %v1722_v10 = vsel %vm662_vm5, %v8063_v41, -inf }
 0x309   : > { %v1723_v31 = vsel %vm662_vm5, %v8066_v29, -inf  ;;  %v1725_v13 = vsel %vm662_vm5, %v8069_v4, -inf  ;;  %v1727_v22 = vsel %vm662_vm5, %v8072_v36, -inf  ;;  %v1729_v37 = vsel %vm662_vm5, %v8075_v35, -inf }
 0x30a   : > { %v1724_v38 = vmax.f32 %v1719_v28, %v1723_v31  ;;  %v1726_v39 = vmax.f32 %v1720_v2, %v1725_v13  ;;  %v1728_v40 = vmax.f32 %v1721_v15, %v1727_v22  ;;  %v1730_v20 = vmax.f32 %v1722_v10, %v1729_v37 }
 0x30b   : > { %vm9952_vm12 = vcmp.eq.f32.partialorder %v6928_v54, 12.0  ;;  %vm9951_vm7 = vcmp.eq.f32.partialorder %v6930_v55, 12.0 }
 0x30c   : > { %v1731_v21 = vmax.f32 %v1724_v38, %v1726_v39  ;;  %v1732_v47 = vmax.f32 %v1728_v40, %v1730_v20 }
 0x30e   : > { %v1733_v53 = vmax.f32 %v1731_v21, %v1732_v47 }
 0x310   : > { %v1734_v1 = vrot.slane %v1733_v53, 4 }
 0x312   : > { %v1735_v52 = vmax.f32 %v1733_v53, %v1734_v1 }
 0x314   : > { %v1736_v49 = vrot.slane %v1735_v52, 2 }
 0x316   : > { %v1737_v19 = vmax.f32 %v1735_v52, %v1736_v49 }
 0x318   : > { %v1738_v32 = vrot.slane %v1737_v19, 1 }
 0x31a   : > { %v1739_v44 = vmax.f32 %v1737_v19, %v1738_v32 }
 0x31c   : > { %vm1740_vm9 = vcmp.eq.f32.partialorder %v8054_v30, %v1739_v44  ;;  %vm1741_vm10 = vcmp.eq.f32.partialorder %v8057_v34, %v1739_v44  ;;  %vm1742_vm11 = vcmp.eq.f32.partialorder %v8060_v8, %v1739_v44  ;;  %vm1743_vm3 = vcmp.eq.f32.partialorder %v8063_v41, %v1739_v44 }
 0x31d   : > { %vm1744_vm4 = vcmp.eq.f32.partialorder %v8066_v29, %v1739_v44  ;;  %vm1745_vm13 = vcmp.eq.f32.partialorder %v8069_v4, %v1739_v44  ;;  %vm1746_vm15 = vcmp.eq.f32.partialorder %v8072_v36, %v1739_v44  ;;  %vm1747_vm2 = vcmp.eq.f32.partialorder %v8075_v35, %v1739_v44 }
 0x31e   : > { %v1748_v45 = vsel %vm1740_vm9, %v6928_v54, 64.0  ;;  %v1749_v24 = vsel %vm1741_vm10, %v6930_v55, 64.0  ;;  %v1750_v50 = vsel %vm1742_vm11, %v6932_v58, 64.0  ;;  %v1751_v46 = vsel %vm1743_vm3, %v6934_v59, 64.0 }
 0x31f   : > { %v1752_v6 = vsel %vm1744_vm4, %v6938_v61, 64.0  ;;  %v1753_v17 = vsel %vm1745_vm13, %v6940_v62, 64.0  ;;  %v1754_v16 = vsel %vm1746_vm15, %v6942_v63, 64.0  ;;  %v1755_v14 = vsel %vm1747_vm2, %v6944_v0, 64.0 }
 0x320   : > { %v1756_v60 = vsel %vm662_vm5, %v1748_v45, inf  ;;  %v1757_v33 = vsel %vm662_vm5, %v1749_v24, inf  ;;  %v1758_v11 = vsel %vm662_vm5, %v1750_v50, inf  ;;  %v1759_v18 = vsel %vm662_vm5, %v1751_v46, inf }
 0x321   : > { %v1760_v12 = vsel %vm662_vm5, %v1752_v6, inf  ;;  %v1762_v48 = vsel %vm662_vm5, %v1753_v17, inf  ;;  %v1764_v26 = vsel %vm662_vm5, %v1754_v16, inf  ;;  %v1766_v28 = vsel %vm662_vm5, %v1755_v14, inf }
 0x322   : > { %v1761_v2 = vmin.f32 %v1756_v60, %v1760_v12  ;;  %v1763_v15 = vmin.f32 %v1757_v33, %v1762_v48  ;;  %v1765_v10 = vmin.f32 %v1758_v11, %v1764_v26  ;;  %v1767_v31 = vmin.f32 %v1759_v18, %v1766_v28 }
 0x323   : > { %v8122_v13 = vsel %vm9952_vm12, %v1739_v44, %v8028_v56  ;;  %v8127_v22 = vsel %vm9951_vm7, %v1739_v44, %v8033_v57 }
 0x324   : > { %v1768_v37 = vmin.f32 %v1761_v2, %v1763_v15  ;;  %v1769_v38 = vmin.f32 %v1765_v10, %v1767_v31 }
 0x326   : > { %v1770_v39 = vmin.f32 %v1768_v37, %v1769_v38 }
 0x328   : > { %v1771_v40 = vrot.slane %v1770_v39, 4 }
 0x32a   : > { %v1772_v20 = vmin.f32 %v1770_v39, %v1771_v40 }
 0x32c   : > { %v1773_v21 = vrot.slane %v1772_v20, 2 }
 0x32e   : > { %v1774_v47 = vmin.f32 %v1772_v20, %v1773_v21 }
 0x330   : > { %v1775_v53 = vrot.slane %v1774_v47, 1 }
 0x332   : > { %v8129_v1 = vmin.f32 %v1774_v47, %v1775_v53 }
 0x334   : > { %vm1791_vm2 = vcmp.eq.f32.partialorder %v6928_v54, %v8129_v1  ;;  %vm1792_vm15 = vcmp.eq.f32.partialorder %v6930_v55, %v8129_v1  ;;  %vm1793_vm9 = vcmp.eq.f32.partialorder %v6932_v58, %v8129_v1  ;;  %vm1794_vm10 = vcmp.eq.f32.partialorder %v6934_v59, %v8129_v1 }
 0x335   : > { %vm1795_vm11 = vcmp.eq.f32.partialorder %v6938_v61, %v8129_v1  ;;  %vm1796_vm3 = vcmp.eq.f32.partialorder %v6940_v62, %v8129_v1  ;;  %vm1797_vm4 = vcmp.eq.f32.partialorder %v6942_v63, %v8129_v1  ;;  %vm1798_vm13 = vcmp.eq.f32.partialorder %v6944_v0, %v8129_v1 }
 0x336   : > { %v8148_v56 = vsel %vm1791_vm2, -inf, %v8054_v30  ;;  %v8151_v57 = vsel %vm1792_vm15, -inf, %v8057_v34  ;;  %v8154_v52 = vsel %vm1793_vm9, -inf, %v8060_v8  ;;  %v8157_v49 = vsel %vm1794_vm10, -inf, %v8063_v41 }
 0x337   : > { %v8160_v19 = vsel %vm1795_vm11, -inf, %v8066_v29  ;;  %v8163_v32 = vsel %vm1796_vm3, -inf, %v8069_v4  ;;  %v8166_v44 = vsel %vm1797_vm4, -inf, %v8072_v36  ;;  %v8169_v30 = vsel %vm1798_vm13, -inf, %v8075_v35 }
 0x338   : > { %v1807_v34 = vsel %vm662_vm5, %v8148_v56, -inf  ;;  %v1808_v8 = vsel %vm662_vm5, %v8151_v57, -inf  ;;  %v1809_v41 = vsel %vm662_vm5, %v8154_v52, -inf  ;;  %v1810_v29 = vsel %vm662_vm5, %v8157_v49, -inf }
 0x339   : > { %v1811_v4 = vsel %vm662_vm5, %v8160_v19, -inf  ;;  %v1813_v36 = vsel %vm662_vm5, %v8163_v32, -inf  ;;  %v1815_v35 = vsel %vm662_vm5, %v8166_v44, -inf  ;;  %v1817_v45 = vsel %vm662_vm5, %v8169_v30, -inf }
 0x33a   : > { %v1812_v24 = vmax.f32 %v1807_v34, %v1811_v4  ;;  %v1814_v50 = vmax.f32 %v1808_v8, %v1813_v36  ;;  %v1816_v46 = vmax.f32 %v1809_v41, %v1815_v35  ;;  %v1818_v6 = vmax.f32 %v1810_v29, %v1817_v45 }
 0x33b   : > { %vm9953_vm2 = vcmask 130048   ;;  %vm9955_vm15 = vcmp.eq.f32.partialorder %v6928_v54, 13.0  ;;  %vm9954_vm9 = vcmp.eq.f32.partialorder %v6930_v55, 13.0 }
 0x33c   : > { %v1819_v17 = vmax.f32 %v1812_v24, %v1814_v50  ;;  %v1820_v16 = vmax.f32 %v1816_v46, %v1818_v6 }
 0x33e   : > { %v1821_v14 = vmax.f32 %v1819_v17, %v1820_v16 }
 0x340   : > { %v1822_v60 = vrot.slane %v1821_v14, 4 }
 0x342   : > { %v1823_v33 = vmax.f32 %v1821_v14, %v1822_v60  ;;  %v6076_v11 = vpop.f32.mrb[6].mxu1 }
 0x343   : > { %v8187_v18 = vmul.f32 0.17677669, %v6076_v11  ;;  %v2558_v12 = vpop.f32.mrb[7].mxu1 }
 0x344   : > { %v1824_v48 = vrot.slane %v1823_v33, 2  ;;  %v8189_v26 = vmul.f32 0.17677669, %v2558_v12 }
 0x345   : > { %v2573_v28 = vsel %vm9953_vm2, %v8187_v18, -inf }
 0x346   : > { %v1825_v2 = vmax.f32 %v1823_v33, %v1824_v48  ;;  %2574 = vmax.xlane.f32.xlu0 %v2573_v28  ;;  %v2570_v15 = vsel %vm9953_vm2, %v8189_v26, -inf }
 0x347   : > { %2571 = vmax.xlane.f32.xlu1 %v2570_v15 }
 0x348   : > { %v1826_v10 = vrot.slane %v1825_v2, 1 }
 0x34a   : > { %v1827_v31 = vmax.f32 %v1825_v2, %v1826_v10 }
 0x34c   : > { %vm1828_vm10 = vcmp.eq.f32.partialorder %v8148_v56, %v1827_v31  ;;  %vm1829_vm11 = vcmp.eq.f32.partialorder %v8151_v57, %v1827_v31  ;;  %vm1830_vm3 = vcmp.eq.f32.partialorder %v8154_v52, %v1827_v31  ;;  %vm1831_vm4 = vcmp.eq.f32.partialorder %v8157_v49, %v1827_v31 }
 0x34d   : > { %vm1832_vm13 = vcmp.eq.f32.partialorder %v8160_v19, %v1827_v31  ;;  %vm1833_vm7 = vcmp.eq.f32.partialorder %v8163_v32, %v1827_v31  ;;  %vm1834_vm12 = vcmp.eq.f32.partialorder %v8166_v44, %v1827_v31  ;;  %vm1835_vm2 = vcmp.eq.f32.partialorder %v8169_v30, %v1827_v31 }
 0x34e   : > { %v1836_v37 = vsel %vm1828_vm10, %v6928_v54, 64.0  ;;  %v1837_v38 = vsel %vm1829_vm11, %v6930_v55, 64.0  ;;  %v1838_v39 = vsel %vm1830_vm3, %v6932_v58, 64.0  ;;  %v1839_v40 = vsel %vm1831_vm4, %v6934_v59, 64.0 }
 0x34f   : > { %v1840_v20 = vsel %vm1832_vm13, %v6938_v61, 64.0  ;;  %v1841_v21 = vsel %vm1833_vm7, %v6940_v62, 64.0  ;;  %v1842_v47 = vsel %vm1834_vm12, %v6942_v63, 64.0  ;;  %v1843_v53 = vsel %vm1835_vm2, %v6944_v0, 64.0 }
 0x350   : > { %v1844_v34 = vsel %vm662_vm5, %v1836_v37, inf  ;;  %v1845_v8 = vsel %vm662_vm5, %v1837_v38, inf  ;;  %v1846_v41 = vsel %vm662_vm5, %v1838_v39, inf  ;;  %v1847_v29 = vsel %vm662_vm5, %v1839_v40, inf }
 0x351   : > { %v1848_v4 = vsel %vm662_vm5, %v1840_v20, inf  ;;  %v1850_v36 = vsel %vm662_vm5, %v1841_v21, inf  ;;  %v1852_v35 = vsel %vm662_vm5, %v1842_v47, inf  ;;  %v1854_v45 = vsel %vm662_vm5, %v1843_v53, inf }
 0x352   : > { %v1849_v24 = vmin.f32 %v1844_v34, %v1848_v4  ;;  %v1851_v50 = vmin.f32 %v1845_v8, %v1850_v36  ;;  %v1853_v46 = vmin.f32 %v1846_v41, %v1852_v35  ;;  %v1855_v6 = vmin.f32 %v1847_v29, %v1854_v45 }
 0x353   : > { %v8224_v17 = vsel %vm9955_vm15, %v1827_v31, %v8122_v13  ;;  %v8229_v16 = vsel %vm9954_vm9, %v1827_v31, %v8127_v22 }
 0x354   : > { %v1856_v14 = vmin.f32 %v1849_v24, %v1851_v50  ;;  %v1857_v60 = vmin.f32 %v1853_v46, %v1855_v6 }
 0x356   : > { %v1858_v33 = vmin.f32 %v1856_v14, %v1857_v60 }
 0x358   : > { %v1859_v11 = vrot.slane %v1858_v33, 4  ;;  %1605 = vperm.xlu1 %6649, %v7941_v43  }
 0x35a   : > { %v1860_v12 = vmin.f32 %v1858_v33, %v1859_v11 }
 0x35c   : > { %813 = vperm.xlu0 %6650, %v7068_v51   ;;  %1693 = vperm.xlu1 %6649, %v8035_v23   ;;  %v1861_v48 = vrot.slane %v1860_v12, 2 }
 0x35e   : > { %v1862_v28 = vmin.f32 %v1860_v12, %v1861_v48 }
 0x360   : > { %989 = vperm.xlu0 %6650, %v7288_v25   ;;  %1781 = vperm.xlu1 %6649, %v8129_v1   ;;  %v1863_v13 = vrot.slane %v1862_v28, 1 }
 0x362   : > { %v1864_v22 = vmin.f32 %v1862_v28, %v1863_v13 }
 0x364   : > { %1429 = vperm.xlu0 %6650, %v7763_v27   ;;  %1869 = vperm.xlu1 %6649, %v1864_v22   ;;  %vm1879_vm12 = vcmp.eq.f32.partialorder %v6928_v54, %v1864_v22  ;;  %vm1880_vm7 = vcmp.eq.f32.partialorder %v6930_v55, %v1864_v22  ;;  %vm1881_vm2 = vcmp.eq.f32.partialorder %v6932_v58, %v1864_v22 }
 0x365   : > { %vm1882_vm10 = vcmp.eq.f32.partialorder %v6934_v59, %v1864_v22  ;;  %vm1883_vm11 = vcmp.eq.f32.partialorder %v6938_v61, %v1864_v22  ;;  %vm1884_vm3 = vcmp.eq.f32.partialorder %v6940_v62, %v1864_v22  ;;  %vm1885_vm4 = vcmp.eq.f32.partialorder %v6942_v63, %v1864_v22 }
 0x366   : > { %vm1886_vm13 = vcmp.eq.f32.partialorder %v6944_v0, %v1864_v22  ;;  %v8246_v51 = vsel %vm1879_vm12, -inf, %v8148_v56  ;;  %v8249_v25 = vsel %vm1880_vm7, -inf, %v8151_v57  ;;  %v8252_v27 = vsel %vm1881_vm2, -inf, %v8154_v52 }
 0x367   : > { %v8255_v43 = vsel %vm1882_vm10, -inf, %v8157_v49  ;;  %v8258_v23 = vsel %vm1883_vm11, -inf, %v8160_v19  ;;  %v8261_v1 = vsel %vm1884_vm3, -inf, %v8163_v32  ;;  %v8264_v2 = vsel %vm1885_vm4, -inf, %v8166_v44 }
 0x368   : > { %v8267_v56 = vsel %vm1886_vm13, -inf, %v8169_v30  ;;  %v1895_v57 = vsel %vm662_vm5, %v8246_v51, -inf  ;;  %v1896_v52 = vsel %vm662_vm5, %v8249_v25, -inf  ;;  %v1897_v49 = vsel %vm662_vm5, %v8252_v27, -inf }
 0x369   : > { %v1898_v19 = vsel %vm662_vm5, %v8255_v43, -inf  ;;  %v1899_v32 = vsel %vm662_vm5, %v8258_v23, -inf  ;;  %v1901_v44 = vsel %vm662_vm5, %v8261_v1, -inf  ;;  %v1903_v30 = vsel %vm662_vm5, %v8264_v2, -inf }
 0x36a   : > { %v1900_v15 = vmax.f32 %v1895_v57, %v1899_v32  ;;  %v1902_v10 = vmax.f32 %v1896_v52, %v1901_v44  ;;  %v1904_v31 = vmax.f32 %v1897_v49, %v1903_v30  ;;  %v1905_v37 = vsel %vm662_vm5, %v8267_v56, -inf }
 0x36b   : > { %v1906_v38 = vmax.f32 %v1898_v19, %v1905_v37  ;;  %vm9957_vm12 = vcmp.eq.f32.partialorder %v6928_v54, 14.0  ;;  %vm9956_vm7 = vcmp.eq.f32.partialorder %v6930_v55, 14.0 }
 0x36c   : > { %v1907_v39 = vmax.f32 %v1900_v15, %v1902_v10 }
 0x36d   : > { %v1908_v40 = vmax.f32 %v1904_v31, %v1906_v38 }
 0x36f   : > { %v1909_v20 = vmax.f32 %v1907_v39, %v1908_v40 }
 0x371   : > { %v1910_v21 = vrot.slane %v1909_v20, 4 }
 0x373   : > { %v1911_v47 = vmax.f32 %v1909_v20, %v1910_v21 }
 0x375   : > { %v1912_v53 = vrot.slane %v1911_v47, 2 }
 0x377   : > { %v1913_v34 = vmax.f32 %v1911_v47, %v1912_v53 }
 0x379   : > { %v1914_v8 = vrot.slane %v1913_v34, 1 }
 0x37b   : > { %v1915_v41 = vmax.f32 %v1913_v34, %v1914_v8 }
 0x37d   : > { %vm1916_vm2 = vcmp.eq.f32.partialorder %v8246_v51, %v1915_v41  ;;  %vm1917_vm10 = vcmp.eq.f32.partialorder %v8249_v25, %v1915_v41  ;;  %vm1918_vm11 = vcmp.eq.f32.partialorder %v8252_v27, %v1915_v41  ;;  %vm1919_vm3 = vcmp.eq.f32.partialorder %v8255_v43, %v1915_v41 }
 0x37e   : > { %vm1920_vm4 = vcmp.eq.f32.partialorder %v8258_v23, %v1915_v41  ;;  %vm1921_vm13 = vcmp.eq.f32.partialorder %v8261_v1, %v1915_v41  ;;  %vm1922_vm9 = vcmp.eq.f32.partialorder %v8264_v2, %v1915_v41  ;;  %vm1923_vm15 = vcmp.eq.f32.partialorder %v8267_v56, %v1915_v41 }
 0x37f   : > { %v1924_v29 = vsel %vm1916_vm2, %v6928_v54, 64.0  ;;  %v1925_v4 = vsel %vm1917_vm10, %v6930_v55, 64.0  ;;  %v1926_v36 = vsel %vm1918_vm11, %v6932_v58, 64.0  ;;  %v1927_v35 = vsel %vm1919_vm3, %v6934_v59, 64.0 }
 0x380   : > { %v1928_v45 = vsel %vm1920_vm4, %v6938_v61, 64.0  ;;  %v1929_v24 = vsel %vm1921_vm13, %v6940_v62, 64.0  ;;  %v1930_v50 = vsel %vm1922_vm9, %v6942_v63, 64.0  ;;  %v1931_v46 = vsel %vm1923_vm15, %v6944_v0, 64.0 }
 0x381   : > { %v1932_v6 = vsel %vm662_vm5, %v1924_v29, inf  ;;  %v1933_v14 = vsel %vm662_vm5, %v1925_v4, inf  ;;  %v1934_v60 = vsel %vm662_vm5, %v1926_v36, inf  ;;  %v1935_v33 = vsel %vm662_vm5, %v1927_v35, inf }
 0x382   : > { %v1936_v11 = vsel %vm662_vm5, %v1928_v45, inf  ;;  %v1938_v12 = vsel %vm662_vm5, %v1929_v24, inf  ;;  %v1940_v48 = vsel %vm662_vm5, %v1930_v50, inf  ;;  %v1942_v28 = vsel %vm662_vm5, %v1931_v46, inf }
 0x383   : > { %v1937_v13 = vmin.f32 %v1932_v6, %v1936_v11  ;;  %v1939_v22 = vmin.f32 %v1933_v14, %v1938_v12  ;;  %v1941_v57 = vmin.f32 %v1934_v60, %v1940_v48  ;;  %v1943_v52 = vmin.f32 %v1935_v33, %v1942_v28 }
 0x384   : > { %v8314_v49 = vsel %vm9957_vm12, %v1915_v41, %v8224_v17  ;;  %v8319_v19 = vsel %vm9956_vm7, %v1915_v41, %v8229_v16 }
 0x385   : > { %v1944_v32 = vmin.f32 %v1937_v13, %v1939_v22  ;;  %v1945_v44 = vmin.f32 %v1941_v57, %v1943_v52 }
 0x387   : > { %v1946_v30 = vmin.f32 %v1944_v32, %v1945_v44 }
 0x389   : > { %v1947_v15 = vrot.slane %v1946_v30, 4 }
 0x38b   : > { %v1948_v10 = vmin.f32 %v1946_v30, %v1947_v15 }
 0x38d   : > { %v1949_v31 = vrot.slane %v1948_v10, 2 }
 0x38f   : > { %v1950_v37 = vmin.f32 %v1948_v10, %v1949_v31 }
 0x391   : > { %v1951_v38 = vrot.slane %v1950_v37, 1 }
 0x393   : > { %v8321_v39 = vmin.f32 %v1950_v37, %v1951_v38 }
 0x395   : > { %vm1967_vm15 = vcmp.eq.f32.partialorder %v6928_v54, %v8321_v39  ;;  %vm1968_vm9 = vcmp.eq.f32.partialorder %v6930_v55, %v8321_v39  ;;  %vm1969_vm2 = vcmp.eq.f32.partialorder %v6932_v58, %v8321_v39  ;;  %vm1970_vm10 = vcmp.eq.f32.partialorder %v6934_v59, %v8321_v39 }
 0x396   : > { %vm1971_vm11 = vcmp.eq.f32.partialorder %v6938_v61, %v8321_v39  ;;  %vm1972_vm3 = vcmp.eq.f32.partialorder %v6940_v62, %v8321_v39  ;;  %vm1973_vm4 = vcmp.eq.f32.partialorder %v6942_v63, %v8321_v39  ;;  %vm1974_vm13 = vcmp.eq.f32.partialorder %v6944_v0, %v8321_v39 }
 0x397   : > { %v1975_v17 = vsel %vm1967_vm15, -inf, %v8246_v51  ;;  %v1976_v16 = vsel %vm1968_vm9, -inf, %v8249_v25  ;;  %v1977_v40 = vsel %vm1969_vm2, -inf, %v8252_v27  ;;  %v1978_v20 = vsel %vm1970_vm10, -inf, %v8255_v43 }
 0x398   : > { %v1979_v21 = vsel %vm1971_vm11, -inf, %v8258_v23  ;;  %v1980_v47 = vsel %vm1972_vm3, -inf, %v8261_v1  ;;  %v1981_v53 = vsel %vm1973_vm4, -inf, %v8264_v2  ;;  %v1982_v34 = vsel %vm1974_vm13, -inf, %v8267_v56 }
 0x399   : > { %v1983_v8 = vsel %vm662_vm5, %v1975_v17, -inf  ;;  %v1984_v41 = vsel %vm662_vm5, %v1976_v16, -inf  ;;  %v1985_v51 = vsel %vm662_vm5, %v1977_v40, -inf  ;;  %v1986_v25 = vsel %vm662_vm5, %v1978_v20, -inf }
 0x39a   : > { %v1987_v27 = vsel %vm662_vm5, %v1979_v21, -inf  ;;  %v1989_v43 = vsel %vm662_vm5, %v1980_v47, -inf  ;;  %v1991_v23 = vsel %vm662_vm5, %v1981_v53, -inf  ;;  %v1993_v1 = vsel %vm662_vm5, %v1982_v34, -inf }
 0x39b   : > { %v1988_v29 = vmax.f32 %v1983_v8, %v1987_v27  ;;  %v1990_v2 = vmax.f32 %v1984_v41, %v1989_v43  ;;  %v1992_v4 = vmax.f32 %v1985_v51, %v1991_v23  ;;  %v1994_v56 = vmax.f32 %v1986_v25, %v1993_v1 }
 0x39c   : > { %vm9958_vm15 = vcmp.eq.f32.partialorder %v6930_v55, 15.0  ;;  %vm9959_vm9 = vcmp.eq.f32.partialorder %v6928_v54, 15.0  ;;  %v660_v8 = vand.u32 127, %v576_v3 }
 0x39d   : > { %v1995_v36 = vmax.f32 %v1988_v29, %v1990_v2  ;;  %v1996_v35 = vmax.f32 %v1992_v4, %v1994_v56  ;;  %v6726_v29 = vmov 0.0  }
 0x39f   : > { %v1997_v45 = vmax.f32 %v1995_v36, %v1996_v35 }
 0x3a1   : > { %v1998_v24 = vrot.slane %v1997_v45, 4 }
 0x3a3   : > { %v1999_v50 = vmax.f32 %v1997_v45, %v1998_v24 }
 0x3a5   : > { %v2000_v46 = vrot.slane %v1999_v50, 2 }
 0x3a7   : > { %v2001_v6 = vmax.f32 %v1999_v50, %v2000_v46 }
 0x3a9   : > { %v2002_v14 = vrot.slane %v2001_v6, 1 }
 0x3ab   : > { %v2003_v60 = vmax.f32 %v2001_v6, %v2002_v14 }
 0x3ad   : > { %vm2004_vm2 = vcmp.eq.f32.partialorder %v1975_v17, %v2003_v60  ;;  %vm2005_vm10 = vcmp.eq.f32.partialorder %v1976_v16, %v2003_v60  ;;  %vm2006_vm11 = vcmp.eq.f32.partialorder %v1977_v40, %v2003_v60  ;;  %vm2007_vm3 = vcmp.eq.f32.partialorder %v1978_v20, %v2003_v60  ;;  %v726_v40 = vpop.permute.xlu1 %725 }
 0x3ae   : > { %vm2008_vm4 = vcmp.eq.f32.partialorder %v1979_v21, %v2003_v60  ;;  %vm2009_vm13 = vcmp.eq.f32.partialorder %v1980_v47, %v2003_v60  ;;  %vm2010_vm7 = vcmp.eq.f32.partialorder %v1981_v53, %v2003_v60  ;;  %vm2011_vm12 = vcmp.eq.f32.partialorder %v1982_v34, %v2003_v60 }
 0x3af   : > { %v2012_v33 = vsel %vm2004_vm2, %v6928_v54, 64.0  ;;  %v2013_v11 = vsel %vm2005_vm10, %v6930_v55, 64.0  ;;  %v2014_v12 = vsel %vm2006_vm11, %v6932_v58, 64.0  ;;  %v2015_v48 = vsel %vm2007_vm3, %v6934_v59, 64.0 }
 0x3b0   : > { %v2016_v28 = vsel %vm2008_vm4, %v6938_v61, 64.0  ;;  %v2017_v13 = vsel %vm2009_vm13, %v6940_v62, 64.0  ;;  %v2018_v22 = vsel %vm2010_vm7, %v6942_v63, 64.0  ;;  %v2019_v57 = vsel %vm2011_vm12, %v6944_v0, 64.0 }
 0x3b1   : > { %v2020_v52 = vsel %vm662_vm5, %v2012_v33, inf  ;;  %v2021_v32 = vsel %vm662_vm5, %v2013_v11, inf  ;;  %v2022_v44 = vsel %vm662_vm5, %v2014_v12, inf  ;;  %v2023_v30 = vsel %vm662_vm5, %v2015_v48, inf  ;;  %v902_v20 = vpop.permute.xlu1 %901 }
 0x3b2   : > { %v2024_v58 = vsel %vm662_vm5, %v2016_v28, inf  ;;  %v2026_v59 = vsel %vm662_vm5, %v2017_v13, inf  ;;  %v2028_v61 = vsel %vm662_vm5, %v2018_v22, inf  ;;  %v2030_v62 = vsel %vm662_vm5, %v2019_v57, inf }
 0x3b3   : > { %v2025_v15 = vmin.f32 %v2020_v52, %v2024_v58  ;;  %v2027_v63 = vmin.f32 %v2021_v32, %v2026_v59  ;;  %v2029_v10 = vmin.f32 %v2022_v44, %v2028_v61  ;;  %v2031_v0 = vmin.f32 %v2023_v30, %v2030_v62  ;;  %v5524_v62 = vld [vmem:[%s9920_s7 + $0x60] sm:$0xff] }
 0x3b4   : > { %v8376_v31 = vsel %vm9958_vm15, %v2003_v60, %v8319_v19  ;;  %v8381_v37 = vsel %vm9959_vm9, %v2003_v60, %v8314_v49  ;;  %v8388_v19 = vcvt.s32.f32 %v660_v8  ;;  %vm9963_vm2 = vcmp.eq.f32.partialorder %v6930_v55, 0.0 }
 0x3b5   : > { %v2032_v38 = vmin.f32 %v2025_v15, %v2027_v63  ;;  %v2033_v17 = vmin.f32 %v2029_v10, %v2031_v0  ;;  %v1078_v21 = vpop.permute.xlu1 %1077  ;;  %vm9964_vm3 = vcmp.eq.f32.partialorder %v6928_v54, 2.0  ;;  %vm9967_vm13 = vcmp.eq.f32.partialorder %v6930_v55, 2.0  ;;  %v5525_v15 = vld [vmem:[%s9920_s7 + $0x68] sm:$0xff] }
 0x3b6   : > { %vm728_vm5 = vcmp.eq.f32.partialorder %v8388_v19, %v726_v40  ;;  %vm904_vm12 = vcmp.eq.f32.partialorder %v8388_v19, %v902_v20  ;;  %vm1080_vm11 = vcmp.eq.f32.partialorder %v8388_v19, %v1078_v21  ;;  %v6247_v63 = vpack.c.bf16 %v5525_v15, %v5524_v62 }
 0x3b7   : > { %v2034_v16 = vmin.f32 %v2032_v38, %v2033_v17  ;;  %vm729_vm7 = vmand %vm721_vm8, %vm728_vm5 }
 0x3b8   : > { %vm730_vm10 = vmand %vm9963_vm2, %vm728_vm5  ;;  %v731_v2 = vsel %vm729_vm7, 1.0, %v6726_v29  ;;  %6248 = vmatprep.subr.bf16.mxu1 %v6247_v63 }
 0x3b9   : > { %v1166_v47 = vpop.permute.xlu1 %1165  ;;  %vm8401_vm4 = vmand %vm9964_vm3, %vm904_vm12  ;;  %vm9972_vm3 = vcmp.eq.f32.partialorder %v6928_v54, 1.0  ;;  %v732_v4 = vsel %vm730_vm10, 1.0, %v6726_v29  ;;  %v2035_v50 = vrot.slane %v2034_v16, 4  ;;  %6250 = vmatpush3.bf16.msra.mxu1 %v6247_v63 }
 0x3ba   : > { %vm8407_vm15 = vmand %vm9967_vm13, %vm904_vm12  ;;  %vm1168_vm2 = vcmp.eq.f32.partialorder %v8388_v19, %v1166_v47  ;;  %vm9973_vm13 = vcmp.eq.f32.partialorder %v6930_v55, 1.0 }
 0x3bb   : > { %vm8413_vm8 = vmand %vm1073_vm0, %vm1080_vm11  ;;  %v2036_v57 = vmin.f32 %v2034_v16, %v2035_v50 }
 0x3bc   : > { %vm8427_vm0 = vmand %vm1074_vm1, %vm1080_vm11  ;;  %vm9978_vm1 = vcmp.eq.f32.partialorder %v6928_v54, 3.0 }
 0x3bd   : > { %v1254_v53 = vpop.permute.xlu1 %1253  ;;  %vm8435_vm7 = vmand %vm1161_vm14, %vm1168_vm2  ;;  %vm9979_vm14 = vcmp.eq.f32.partialorder %v6930_v55, 3.0  ;;  %v2037_v30 = vrot.slane %v2036_v57, 2 }
 0x3bf   : > { %v2038_v58 = vmin.f32 %v2036_v57, %v2037_v30 }
 0x3c1   : > { %v8383_v34 = vpop.permute.xlu1 %1341  ;;  %v2039_v59 = vrot.slane %v2038_v58, 1 }
 0x3c3   : > { %v2040_v61 = vmin.f32 %v2038_v58, %v2039_v59 }
 0x3c5   : > { %v8386_v41 = vpop.permute.xlu1 %1517 }
 0x3d3   : > { %v2575_v51 = vpop.xlane.xlu0 %2574 }
 0x3d4   : > { %v2577_v49 = vsub.f32 %v8187_v18, %v2575_v51  ;;  %v2572_v25 = vpop.xlane.xlu1 %2571 }
 0x3d5   : > { %v2576_v27 = vsub.f32 %v8189_v26, %v2572_v25 }
 0x3d6   : > { %v2580_v43 = vmul.f32 1.442695, %v2577_v49 }
 0x3d7   : > { %v2578_v23 = vmul.f32 1.442695, %v2576_v27 }
 0x3d8   : > { %6663 = vpow2.f32 %v2580_v43  ;;  %v1606_v10 = vpop.permute.xlu1 %1605 }
 0x3d9   : > { %6665 = vpow2.f32 %v2578_v23 }
 0x3db   : > { %v814_v26 = vpop.permute.xlu0 %813 }
 0x3dc   : > { %vm816_vm5 = vcmp.eq.f32.partialorder %v8388_v19, %v814_v26  ;;  %v1694_v0 = vpop.permute.xlu1 %1693 }
 0x3dd   : > { %vm817_vm12 = vmand %vm9972_vm3, %vm816_vm5  ;;  %vm9980_vm3 = vcmp.eq.f32.partialorder %v6930_v55, 5.0 }
 0x3de   : > { %vm818_vm9 = vmand %vm9973_vm13, %vm816_vm5  ;;  %v819_v56 = vsel %vm817_vm12, 1.0, %v731_v2  ;;  %vm1256_vm5 = vcmp.eq.f32.partialorder %v8388_v19, %v1254_v53 }
 0x3df   : > { %v820_v35 = vsel %vm818_vm9, 1.0, %v732_v4  ;;  %v990_v45 = vpop.permute.xlu0 %989  ;;  %v907_v46 = vsel %vm8401_vm4, 1.0, %v819_v56  ;;  %vm1170_vm12 = vmand %vm9980_vm3, %vm1168_vm2  ;;  %vm9981_vm4 = vcmask 130048  }
 0x3e0   : > { %vm992_vm10 = vcmp.eq.f32.partialorder %v8388_v19, %v990_v45  ;;  %v908_v14 = vsel %vm8407_vm15, 1.0, %v820_v35  ;;  %vm9982_vm15 = vcmp.eq.f32.partialorder %v6928_v54, 6.0  ;;  %vm9983_vm2 = vmmov %vm9981_vm4 }
 0x3e1   : > { %vm993_vm9 = vmand %vm9978_vm1, %vm992_vm10 }
 0x3e2   : > { %v8445_v6 = vpop.eup %6663  ;;  %vm994_vm11 = vmand %vm9979_vm14, %vm992_vm10  ;;  %v995_v60 = vsel %vm993_vm9, 1.0, %v907_v46  ;;  %vm9986_vm9 = vcmp.eq.f32.partialorder %v6930_v55, 7.0 }
 0x3e3   : > { %v8451_v33 = vpop.eup %6665  ;;  %v996_v11 = vsel %vm994_vm11, 1.0, %v908_v14  ;;  %v1083_v12 = vsel %vm8413_vm8, 1.0, %v995_v60  ;;  %v2585_v48 = vsel %vm9981_vm4, %v8445_v6, 0.0  ;;  %vm1257_vm13 = vmand %vm9982_vm15, %vm1256_vm5  ;;  %vm9984_vm8 = vcmp.eq.f32.partialorder %v6930_v55, 6.0  ;;  %v1430_v38 = vpop.permute.xlu0 %1429 }
 0x3e4   : > { %v1084_v28 = vsel %vm8427_vm0, 1.0, %v996_v11  ;;  %v1171_v13 = vsel %vm8435_vm7, 1.0, %v1083_v12  ;;  %2586 = vadd.xlane.f32.xlu0 %v2585_v48  ;;  %v2582_v22 = vsel %vm9983_vm2, %v8451_v33, 0.0  ;;  %vm1258_vm10 = vmand %vm9984_vm8, %vm1256_vm5  ;;  %vm1344_vm0 = vcmp.eq.f32.partialorder %v8388_v19, %v8383_v34  ;;  %v6707_v48 = vld [vmem:[#allocation2 + $0x8] sm:$0xff] }
 0x3e5   : > { %v1172_v52 = vsel %vm1170_vm12, 1.0, %v1084_v28  ;;  %v1259_v32 = vsel %vm1257_vm13, 1.0, %v1171_v13  ;;  %2583 = vadd.xlane.f32.xlu1 %v2582_v22  ;;  %vm1432_vm7 = vcmp.eq.f32.partialorder %v8388_v19, %v1430_v38  ;;  %vm9985_vm5 = vcmp.eq.f32.partialorder %v6928_v54, 7.0  ;;  %vm1346_vm14 = vmand %vm9986_vm9, %vm1344_vm0  ;;  %v6708_v13 = vld [vmem:[#allocation2] sm:$0xff] }
 0x3e6   : > { %v1260_v44 = vsel %vm1258_vm10, 1.0, %v1172_v52  ;;  %vm1345_vm1 = vmand %vm9985_vm5, %vm1344_vm0  ;;  %vm9987_vm11 = vcmp.eq.f32.partialorder %v6928_v54, 8.0  ;;  %vm9988_vm12 = vcmp.eq.f32.partialorder %v6930_v55, 8.0  ;;  %vm1520_vm15 = vcmp.eq.f32.partialorder %v8388_v19, %v8386_v41 }
 0x3e7   : > { %v1347_v17 = vsel %vm1345_vm1, 1.0, %v1259_v32  ;;  %vm1433_vm3 = vmand %vm9987_vm11, %vm1432_vm7  ;;  %v1348_v16 = vsel %vm1346_vm14, 1.0, %v1260_v44  ;;  %vm9989_vm13 = vcmp.eq.f32.partialorder %v6928_v54, 9.0  ;;  %vm1608_vm8 = vcmp.eq.f32.partialorder %v8388_v19, %v1606_v10 }
 0x3e8   : > { %vm1434_vm4 = vmand %vm9988_vm12, %vm1432_vm7  ;;  %v1435_v40 = vsel %vm1433_vm3, 1.0, %v1347_v17  ;;  %vm9990_vm10 = vcmp.eq.f32.partialorder %v6930_v55, 9.0  ;;  %vm9991_vm5 = vcmp.eq.f32.partialorder %v6928_v54, 10.0  ;;  %vm1696_vm7 = vcmp.eq.f32.partialorder %v8388_v19, %v1694_v0  ;;  %v5539_v17 = vld [vmem:[%s9922_s9 + $0x20] sm:$0xff] }
 0x3e9   : > { %v1436_v20 = vsel %vm1434_vm4, 1.0, %v1348_v16  ;;  %vm1521_vm2 = vmand %vm9989_vm13, %vm1520_vm15  ;;  %vm9992_vm9 = vcmp.eq.f32.partialorder %v6930_v55, 10.0  ;;  %vm9993_vm3 = vcmp.eq.f32.partialorder %v6928_v54, 11.0  ;;  %vm9994_vm4 = vcmp.eq.f32.partialorder %v6930_v55, 11.0  ;;  %v5540_v16 = vld [vmem:[%s9922_s9 + $0x28] sm:$0xff] }
 0x3ea   : > { %vm1522_vm0 = vmand %vm9990_vm10, %vm1520_vm15  ;;  %v1523_v47 = vsel %vm1521_vm2, 1.0, %v1435_v40  ;;  %vm9995_vm2 = vcmp.eq.f32.partialorder %v6928_v54, 12.0  ;;  %v5541_v40 = vld [vmem:[%s9922_s9 + $0x30] sm:$0xff] }
 0x3eb   : > { %v1524_v53 = vsel %vm1522_vm0, 1.0, %v1436_v20  ;;  %vm1609_vm1 = vmand %vm9991_vm5, %vm1608_vm8  ;;  %v6263_v20 = vpack.c.bf16 %v5540_v16, %v5539_v17 }
 0x3ec   : > { %vm1610_vm14 = vmand %vm9992_vm9, %vm1608_vm8  ;;  %v1611_v8 = vsel %vm1609_vm1, 1.0, %v1523_v47  ;;  %vm9996_vm8 = vcmp.eq.f32.partialorder %v6930_v55, 12.0  ;;  %vm9997_vm1 = vcmp.eq.f32.partialorder %v6928_v54, 13.0  ;;  %v2830_v47 = vld [vmem:[%s9922_s9 + $0x8] sm:$0xff] }
 0x3ed   : > { %v1612_v51 = vsel %vm1610_vm14, 1.0, %v1524_v53  ;;  %vm1697_vm12 = vmand %vm9993_vm3, %vm1696_vm7 }
 0x3ee   : > { %vm1698_vm15 = vmand %vm9994_vm4, %vm1696_vm7  ;;  %v1699_v49 = vsel %vm1697_vm12, 1.0, %v1611_v8  ;;  %vm9998_vm7 = vcmp.eq.f32.partialorder %v6930_v55, 13.0  ;;  %vm9999_vm12 = vcmp.eq.f32.partialorder %v6928_v54, 15.0  ;;  %v2831_v8 = vld [vmem:[%s9922_s9 + $0x10] sm:$0xff] }
 0x3ef   : > { %v1700_v25 = vsel %vm1698_vm15, 1.0, %v1612_v51 }
 0x3f6   : > { %2045 = vperm.xlu1 %6649, %v2040_v61  }
 0x3fa   : > { %1957 = vperm.xlu0 %6650, %v8321_v39   ;;  %v1782_v39 = vpop.permute.xlu1 %1781 }
 0x3fb   : > { %vm1784_vm11 = vcmp.eq.f32.partialorder %v8388_v19, %v1782_v39 }
 0x3fc   : > { %vm1785_vm10 = vmand %vm9995_vm2, %vm1784_vm11  ;;  %vm2055_vm2 = vcmask 523264  }
 0x3fd   : > { %vm1786_vm0 = vmand %vm9996_vm8, %vm1784_vm11  ;;  %v1787_v43 = vsel %vm1785_vm10, 1.0, %v1699_v49  ;;  %vm10000_vm11 = vcmp.eq.f32.partialorder %v6928_v54, 14.0  ;;  %vm10001_vm10 = vcmp.eq.f32.partialorder %v6930_v55, 14.0  ;;  %v5547_v49 = vld [vmem:[%s9922_s9 + $0x40] sm:$0xff] }
 0x3fe   : > { %v1870_v21 = vpop.permute.xlu1 %1869  ;;  %v1788_v23 = vsel %vm1786_vm0, 1.0, %v1700_v25  ;;  %v5548_v25 = vld [vmem:[%s9922_s9 + $0x48] sm:$0xff] }
 0x3ff   : > { %vm1872_vm13 = vcmp.eq.f32.partialorder %v8388_v19, %v1870_v21  ;;  %v5542_v21 = vld [vmem:[%s9922_s9 + $0x38] sm:$0xff] }
 0x400   : > { %vm1873_vm9 = vmand %vm9997_vm1, %vm1872_vm13  ;;  %vm10003_vm1 = vcmask 130048   ;;  %v6267_v53 = vpack.c.bf16 %v5542_v21, %v5541_v40 }
 0x401   : > { %vm1874_vm14 = vmand %vm9998_vm7, %vm1872_vm13  ;;  %v1875_v18 = vsel %vm1873_vm9, 1.0, %v1787_v43  ;;  %vm10002_vm13 = vcmp.eq.f32.partialorder %v6930_v55, 15.0  ;;  %v5526_v55 = vld [vmem:[%s9920_s7 + $0x70] sm:$0xff] }
 0x402   : > { %v1876_v26 = vsel %vm1874_vm14, 1.0, %v1788_v23  ;;  %vm10004_vm9 = vmmov %vm10003_vm1 }
 0x471   : > { %v2587_v34 = vpop.xlane.xlu0 %2586 }
 0x472   : > { %v2584_v41 = vpop.xlane.xlu1 %2583 }
 0x473   : > { %6667 = vrcp.f32 %v2584_v41  ;;  %v2832_v41 = vld [vmem:[%s9922_s9 + $0x18] sm:$0xff] }
 0x474   : > { %6669 = vrcp.f32 %v2587_v34  ;;  %v6259_v51 = vpack.c.bf16 %v2832_v41, %v2831_v8 }
 0x475   : > { %6671 = vtanh.f32 %v8381_v37 }
 0x476   : > { %v2046_v27 = vpop.permute.xlu1 %2045  ;;  %6673 = vtanh.f32 %v8376_v31  ;;  %v2829_v31 = vld [vmem:[%s9922_s9] sm:$0xff] }
 0x477   : > { %vm2048_vm5 = vcmp.eq.f32.partialorder %v8388_v19, %v2046_v27  ;;  %v6255_v34 = vpack.c.bf16 %v2830_v47, %v2829_v31  ;;  %v6271_v27 = vpack.c.bf16 %v5548_v25, %v5547_v49 }
 0x478   : > { %vm2049_vm4 = vmand %vm9999_vm12, %vm2048_vm5 }
 0x479   : > { %v1958_v3 = vpop.permute.xlu0 %1957  ;;  %vm2050_vm0 = vmand %vm10002_vm13, %vm2048_vm5  ;;  %vm10005_vm5 = vcmask 261120  }
 0x47a   : > { %vm1960_vm3 = vcmp.eq.f32.partialorder %v8388_v19, %v1958_v3  ;;  %v5527_v19 = vld [vmem:[%s9920_s7 + $0x78] sm:$0xff]  ;;  %vm10006_vm7 = vmmov %vm10005_vm5 }
 0x47b   : > { %vm1961_vm15 = vmand %vm10000_vm11, %vm1960_vm3  ;;  %v6251_v24 = vpack.c.bf16 %v5527_v19, %v5526_v55 }
 0x47c   : > { %vm1962_vm8 = vmand %vm10001_vm10, %vm1960_vm3  ;;  %v1963_v1 = vsel %vm1961_vm15, 1.0, %v1875_v18 }
 0x47d   : > { %v6668_v2 = vpop.eup %6667  ;;  %v1964_v4 = vsel %vm1962_vm8, 1.0, %v1876_v26  ;;  %v2051_v56 = vsel %vm2049_vm4, 1.0, %v1963_v1  ;;  %6252 = vmatprep.subr.bf16.mxu1 %v6251_v24  ;;  %vm10007_vm14 = vmmov %vm10005_vm5 }
 0x47e   : > { %v6670_v36 = vpop.eup %6669  ;;  %6034 = vmatprep.mubr.msk.f32.mxu0 %vm2055_vm2, %v2051_v56  ;;  %v2052_v54 = vsel %vm2050_vm0, 1.0, %v1964_v4  ;;  %v2590_v35 = vmul.f32 %v6668_v2, %v8451_v33  ;;  %6254 = vmatpush3.bf16.msra.mxu1 %v6251_v24  ;;  %vm10008_vm3 = vmmov %vm10005_vm5 }
 0x47f   : > { %6035 = vmatmul.mubr.msk.f32.vlgmr.msra.gmra.mrb[0].mxu0 %vm2055_vm2, %v2052_v54  ;;  %v2591_v45 = vmul.f32 %v6670_v36, %v8445_v6  ;;  %v5529_v6 = vld [vmem:[%s9921_s8 + $0x3] ss:$0 sm:$0xff]  ;;  %v6672_v32 = vpop.eup %6671  ;;  %vm10009_vm12 = vmmov %vm10008_vm3  ;;  %6264 = vmatprep.subr.bf16.mxu1 %v6263_v20 }
 0x480   : > { %6246 = vmatpush3.bf16.msra.mxu0 %v7759_v9  ;;  %6081 = vmatprep.mubr.msk.f32.mxu0 %vm10003_vm1, %v2590_v35  ;;  %vm10010_vm4 = vmmov %vm10008_vm3  ;;  %v6674_v39 = vpop.eup %6673 }
 0x481   : > { %vm10011_vm11 = vmmov %vm10008_vm3  ;;  %6256 = vmatprep.subr.bf16.mxu0 %v6255_v34 }
 0x482   : > { %vm10012_vm10 = vmmov %vm10008_vm3 }
 0x483   : > { %6082 = vmatmul.mubr.msk.f32.vlgmr.msra.gmra.mrb[2].mxu0 %vm10004_vm9, %v2591_v45  ;;  %vm10013_vm1 = vmmov %vm10008_vm3 }
 0x484   : > { %6258 = vmatpush3.bf16.msra.mxu0 %v6255_v34  ;;  %vm10014_vm9 = vmmov %vm10013_vm1 }
 0x485   : > { %6260 = vmatprep.subr.bf16.mxu0 %v6259_v51 }
 0x488   : > { %6262 = vmatpush3.bf16.msra.mxu0 %v6259_v51 }
 0x489   : > { %6272 = vmatprep.subr.bf16.mxu0 %v6271_v27 }
 0x552   : > { %v8546_v50 = vpop.f32.mrb[0].mxu0 }
 0x553   : > { %v2128_v9 = vpop.f32.mrb[1].mxu0 }
 0x556   : > { %v6083_v46 = vpop.f32.mrb[2].mxu0 }
 0x557   : > { %v2664_v14 = vpop.f32.mrb[3].mxu0 }
 0x558   : > { %6092 = vmatprep.mubr.msk.f32.mxu1 %vm10005_vm5, %v2664_v14  ;;  %vm10015_vm5 = vmmov %vm10013_vm1 }
 0x559   : > { %6093 = vmatmul.mubr.msk.f32.vlgmr.msra.gmra.mrb[8].mxu1 %vm10006_vm7, %v6083_v46  ;;  %vm10016_vm7 = vmmov %vm10013_vm1 }
 0x55a   : > { %6266 = vmatpush3.bf16.msra.mxu1 %v6263_v20 }
 0x55b   : > { %6268 = vmatprep.subr.bf16.mxu1 %v6267_v53 }
 0x55e   : > { %6270 = vmatpush3.bf16.msra.mxu1 %v6267_v53 }
 0x62c   : > { %v6094_v60 = vpop.f32.mrb[8].mxu1 }
 0x62d   : > { %v2764_v33 = vadd.f32 %v6094_v60, %v5529_v6  ;;  %v2758_v11 = vpop.f32.mrb[9].mxu1 }
 0x62e   : > { %v2759_v12 = vadd.f32 %v5529_v6, %v2758_v11 }
 0x62f   : > { %v8553_v28 = vadd.f32 %v6707_v48, %v2764_v33 }
 0x630   : > { %v8555_v22 = vadd.f32 %v6708_v13, %v2759_v12  ;;  %v5535_v12 = vld [vmem:[%s9919_s6 + $0x1] ss:$0 sm:$0xff]  ;;  %v5549_v13 = vld [vmem:[%s9922_s9 + $0x50] sm:$0xff] }
 0x631   : > { %v2776_v57 = vsel %vm10007_vm14, %v8553_v28, 0.0  ;;  %vm10017_vm14 = vmmov %vm10013_vm1 }
 0x632   : > { %2777 = vadd.xlane.f32.xlu1 %v2776_v57  ;;  %v2773_v52 = vsel %vm10008_vm3, %v8555_v22, 0.0  ;;  %v5550_v57 = vld [vmem:[%s9922_s9 + $0x58] sm:$0xff]  ;;  %vm10018_vm3 = vmmov %vm10013_vm1 }
 0x633   : > { %2774 = vadd.xlane.f32.xlu0 %v2773_v52 }
 0x643   : > { %2141 = vperm.xlu1 %6649, %v6672_v32  }
 0x6bf   : > { %v2778_v44 = vpop.xlane.xlu1 %2777 }
 0x6c0   : > { %v2780_v30 = vmul.f32 0.03125, %v2778_v44  ;;  %v2775_v58 = vpop.xlane.xlu0 %2774  ;;  %v6275_v44 = vpack.c.bf16 %v5550_v57, %v5549_v13 }
 0x6c1   : > { %v2779_v59 = vmul.f32 0.03125, %v2775_v58 }
 0x6c2   : > { %v8563_v61 = vsub.f32 %v8553_v28, %v2780_v30  ;;  %v5544_v30 = vld [vmem:[%s9923_s10 + $0x1] ss:$0 sm:$0xff] }
 0x6c3   : > { %v8566_v62 = vsub.f32 %v8555_v22, %v2779_v59  ;;  %v2142_v15 = vpop.permute.xlu1 %2141 }
 0x6c4   : > { %v8568_v63 = vmul.f32 %v2142_v15, %v2128_v9  ;;  %v2784_v10 = vmul.f32 %v8563_v61, %v8563_v61 }
 0x6c5   : > { %v2783_v0 = vmul.f32 %v8566_v62, %v8566_v62 }
 0x6c6   : > { %6114 = vmatprep.mubr.msk.f32.mxu1 %vm10009_vm12, %v8568_v63  ;;  %v2788_v37 = vsel %vm10010_vm4, %v2784_v10, 0.0  ;;  %vm10019_vm12 = vcmask 130048  }
 0x6c7   : > { %2789 = vadd.xlane.f32.xlu0 %v2788_v37  ;;  %v2785_v38 = vsel %vm10011_vm11, %v2783_v0, 0.0  ;;  %vm10020_vm4 = vmmov %vm10019_vm12 }
 0x6c8   : > { %vm10021_vm11 = vmmov %vm10020_vm4 }
 0x6cb   : > { %2786 = vadd.xlane.f32.xlu0 %v2785_v38 }
 0x6e1   : > { %2146 = vperm.xlu0 %6650, %v6674_v39   ;;  %v5552_v39 = vld [vmem:[%s9923_s10 + $0x2] ss:$0 sm:$0xff] }
 0x754   : > { %v2790_v43 = vpop.xlane.xlu0 %2789 }
 0x755   : > { %v2792_v23 = vmul.f32 0.032258064, %v2790_v43 }
 0x757   : > { %6675 = vrsqrt.f32 %v2792_v23  ;;  %vm2802_vm15 = vcmp.eq.f32.partialorder %v2792_v23, inf  ;;  %v2805_v56 = vand.u32 2147483648, %v2792_v23  ;;  %vm2804_vm8 = vcmp.eq.f32.partialorder %v2792_v23, 0.0 }
 0x758   : > { %v2787_v3 = vpop.xlane.xlu0 %2786 }
 0x759   : > { %v2791_v18 = vmul.f32 0.032258064, %v2787_v3 }
 0x75b   : > { %6677 = vrsqrt.f32 %v2791_v18  ;;  %vm2795_vm13 = vcmp.eq.f32.partialorder %v2791_v18, inf  ;;  %v2798_v19 = vand.u32 2147483648, %v2791_v18  ;;  %vm2797_vm0 = vcmp.eq.f32.partialorder %v2791_v18, 0.0 }
 0x760   : > { %v2147_v26 = vpop.permute.xlu0 %2146 }
 0x761   : > { %v6676_v1 = vpop.eup %6675  ;;  %v2150_v2 = vmul.f32 %v8546_v50, %v2147_v26  ;;  %v5534_v50 = vld [vmem:[%s9918_s5 + $0x1] ss:$0 sm:$0xff] }
 0x762   : > { %v2801_v4 = vmul.f32 %v6676_v1, %v2792_v23  ;;  %v2814_v6 = vmul.f32 %v5534_v50, %v8563_v61  ;;  %v2813_v60 = vmul.f32 %v5534_v50, %v8566_v62 }
 0x763   : > { %6115 = vmatmul.mubr.msk.f32.vlgmr.msra.gmra.mrb[10].mxu1 %vm10012_vm10, %v2150_v2  ;;  %vm10023_vm10 = vmmov %vm10020_vm4 }
 0x764   : > { %v2803_v36 = vsel %vm2802_vm15, %v2792_v23, %v2801_v4  ;;  %vm10022_vm15 = vmmov %vm10020_vm4  ;;  %v5562_v4 = vld [vmem:[%s9922_s9 + $0x68] sm:$0xff] }
 0x765   : > { %v6678_v54 = vpop.eup %6677  ;;  %v2806_v35 = vsel %vm2804_vm8, %v2805_v56, %v2803_v36  ;;  %vm10024_vm8 = vmmov %vm10020_vm4 }
 0x766   : > { %v2816_v45 = vadd.f32 1e-06, %v2806_v35  ;;  %v2794_v55 = vmul.f32 %v6678_v54, %v2791_v18 }
 0x768   : > { %v2796_v24 = vsel %vm2795_vm13, %v2791_v18, %v2794_v55  ;;  %6679 = vrcp.f32 %v2816_v45  ;;  %v5563_v45 = vld [vmem:[%s9922_s9 + $0x70] sm:$0xff]  ;;  %v5564_v55 = vld [vmem:[%s9922_s9 + $0x78] sm:$0xff]  ;;  %vm10025_vm13 = vmmov %vm10013_vm1 }
 0x769   : > { %v2799_v9 = vsel %vm2797_vm0, %v2798_v19, %v2796_v24  ;;  %vm10026_vm0 = vmmov %vm10013_vm1 }
 0x76a   : > { %v2815_v46 = vadd.f32 1e-06, %v2799_v9 }
 0x76c   : > { %6681 = vrcp.f32 %v2815_v46  ;;  %v6293_v46 = vpack.c.bf16 %v5564_v55, %v5563_v45 }
 0x772   : > { %v6680_v14 = vpop.eup %6679 }
 0x773   : > { %v2820_v11 = vmul.f32 %v6680_v14, %v2814_v6  ;;  %v5566_v6 = vld [vmem:[%s9923_s10 + $0x3] ss:$0 sm:$0xff] }
 0x775   : > { %v2828_v32 = vadd.f32 %v5535_v12, %v2820_v11 }
 0x776   : > { %v6682_v33 = vpop.eup %6681 }
 0x777   : > { %v2818_v48 = vmul.f32 %v6682_v33, %v2813_v60 }
 0x779   : > { %v2827_v52 = vadd.f32 %v5535_v12, %v2818_v48 }
 0x77b   : > { %6103 = vmatprep.mubr.msk.f32.mxu0 %vm10013_vm1, %v2827_v52  ;;  %vm10027_vm1 = vmmov %vm10026_vm0 }
 0x77c   : > { %6104 = vmatmul.mubr.msk.f32.vlgmr.msra.gmra.mrb[4].mxu0 %vm10014_vm9, %v2828_v32  ;;  %vm10028_vm9 = vmmov %vm10026_vm0 }
 0x77d   : > { %6274 = vmatpush3.bf16.msra.mxu0 %v6271_v27  ;;  %6125 = vmatprep.mubr.msk.f32.mxu0 %vm10015_vm5, %v8568_v63  ;;  %v5536_v63 = vld [vmem:[%s9923_s10] ss:$0 sm:$0xff]  ;;  %vm10029_vm5 = vmmov %vm10026_vm0 }
 0x77e   : > { %6276 = vmatprep.subr.bf16.mxu0 %v6275_v44 }
 0x781   : > { %6278 = vmatpush3.bf16.msra.mxu0 %v6275_v44 }
 0x784   : > { %6126 = vmatmul.mubr.msk.f32.vlgmr.msra.gmra.mrb[6].mxu0 %vm10016_vm7, %v2150_v2  ;;  %v5561_v2 = vld [vmem:[%s9922_s9 + $0x60] sm:$0xff]  ;;  %vm10030_vm7 = vmmov %vm10026_vm0 }
 0x785   : > { %v6289_v56 = vpack.c.bf16 %v5562_v4, %v5561_v2  ;;  %v3474_v2 = vld [vmem:[%s9924_s11 + $0xb8] sm:$0xff] }
 0x836   : > { %v6116_v58 = vpop.f32.mrb[10].mxu1 }
 0x837   : > { %v3012_v59 = vadd.f32 %v6116_v58, %v5544_v30  ;;  %v3006_v61 = vpop.f32.mrb[11].mxu1 }
 0x838   : > { %v3007_v62 = vadd.f32 %v5544_v30, %v3006_v61 }
 0x83a   : > { %v6279_v15 = vpack.c.bf16 %v3012_v59, %v3007_v62 }
 0x83c   : > { %6281 = vmatprep.subr.msk.bf16.mxu1 %vm7748_vm6, %v6279_v15 }
 0x83d   : > { %6284 = vmatpush3.bf16.xpose.msk.msra.mxu1 %vm7748_vm6, %v6279_v15 }
 0x84f   : > { %v6105_v10 = vpop.f32.mrb[4].mxu0 }
 0x850   : > { %v2912_v37 = vpop.f32.mrb[5].mxu0  ;;  %v2918_v38 = vadd.f32 %v6105_v10, %v5536_v63  ;;  %v3468_v10 = vld [vmem:[%s9924_s11 + $0x88] sm:$0xff] }
 0x851   : > { %v2913_v0 = vadd.f32 %v5536_v63, %v2912_v37  ;;  %v3452_v63 = vld [vmem:[%s9924_s11 + $0x8] sm:$0xff]  ;;  %v3454_v37 = vld [vmem:[%s9924_s11 + $0x18] sm:$0xff] }
 0x853   : > { %6132 = vmatprep.mubr.msk.f32.mxu1 %vm10017_vm14, %v2913_v0  ;;  %v6297_v0 = vpack.c.bf16 %v3468_v10, %v3452_v63  ;;  %v3504_v10 = vld [vmem:[%s9924_s11 + $0x1a8] sm:$0xff] }
 0x854   : > { %6133 = vmatmul.mubr.msk.f32.vlgmr.msra.gmra.mrb[12].mxu1 %vm10018_vm3, %v2918_v38  ;;  %v3470_v38 = vld [vmem:[%s9924_s11 + $0x98] sm:$0xff] }
 0x855   : > { %3669 = vmatprep.mubr.f32.mxu1 %v6726_v29  ;;  %6298 = vmatprep.subr.bf16.mxu1 %v6297_v0  ;;  %v3506_v0 = vld [vmem:[%s9924_s11 + $0x1b8] sm:$0xff] }
 0x857   : > { %v6127_v17 = vpop.f32.mrb[6].mxu0 }
 0x858   : > { %v3100_v16 = vadd.f32 %v6127_v17, %v5552_v39  ;;  %v3094_v40 = vpop.f32.mrb[7].mxu0  ;;  %v3467_v17 = vld [vmem:[%s9924_s11 + $0x80] sm:$0xff] }
 0x859   : > { %v3095_v20 = vadd.f32 %v5552_v39, %v3094_v40  ;;  %v3451_v39 = vld [vmem:[%s9924_s11] sm:$0xff] }
 0x85a   : > { %v6299_v40 = vpack.c.bf16 %v3467_v17, %v3451_v39  ;;  %v3487_v17 = vld [vmem:[%s9924_s11 + $0x120] sm:$0xff] }
 0x85b   : > { %v6285_v21 = vpack.c.bf16 %v3100_v16, %v3095_v20  ;;  %v6305_v16 = vpack.c.bf16 %v3470_v38, %v3454_v37  ;;  %v3453_v20 = vld [vmem:[%s9924_s11 + $0x10] sm:$0xff]  ;;  %v3490_v37 = vld [vmem:[%s9924_s11 + $0x138] sm:$0xff] }
 0x85c   : > { %6300 = vmatpush1.bf16.msra.mxu1 %v6299_v40  ;;  %v3503_v40 = vld [vmem:[%s9924_s11 + $0x1a0] sm:$0xff] }
 0x85d   : > { %6286 = vmatprep.subr.bf16.mxu0 %v6285_v21 }
 0x85e   : > { %6288 = vmatpush3.bf16.msra.mxu0 %v6285_v21  ;;  %v3469_v21 = vld [vmem:[%s9924_s11 + $0x90] sm:$0xff] }
 0x85f   : > { %6290 = vmatprep.subr.bf16.mxu0 %v6289_v56 }
 0x927   : > { %v6134_v31 = vpop.f32.mrb[12].mxu1 }
 0x928   : > { %v3191_v47 = vmul.f32 0.17677669, %v6134_v31  ;;  %v3181_v53 = vpop.f32.mrb[13].mxu1  ;;  %v3484_v31 = vld [vmem:[%s9924_s11 + $0x108] sm:$0xff] }
 0x929   : > { %v3190_v34 = vmul.f32 0.17677669, %v3181_v53  ;;  %v3500_v53 = vld [vmem:[%s9924_s11 + $0x188] sm:$0xff] }
 0x92a   : > { %v3195_v8 = vsel %vm10019_vm12, %v3191_v47, -inf }
 0x92b   : > { %3196 = vmax.xlane.f32.xlu0 %v3195_v8  ;;  %v3192_v41 = vsel %vm10020_vm4, %v3190_v34, -inf  ;;  %v3502_v8 = vld [vmem:[%s9924_s11 + $0x198] sm:$0xff] }
 0x92c   : > { %3193 = vmax.xlane.f32.xlu1 %v3192_v41  ;;  %v6301_v41 = vpack.c.bf16 %v3500_v53, %v3484_v31  ;;  %v3460_v53 = vld [vmem:[%s9924_s11 + $0x48] sm:$0xff] }
 0x92e   : > { %6302 = vmatprep.subr.bf16.mxu1 %v6301_v41  ;;  %v3478_v41 = vld [vmem:[%s9924_s11 + $0xd8] sm:$0xff] }
 0x9b8   : > { %v3197_v51 = vpop.xlane.xlu0 %3196 }
 0x9b9   : > { %v3199_v49 = vsub.f32 %v3191_v47, %v3197_v51  ;;  %v3194_v25 = vpop.xlane.xlu1 %3193  ;;  %v6307_v47 = vpack.c.bf16 %v3469_v21, %v3453_v20  ;;  %v3489_v20 = vld [vmem:[%s9924_s11 + $0x130] sm:$0xff] }
 0x9ba   : > { %v3198_v27 = vsub.f32 %v3190_v34, %v3194_v25  ;;  %v3486_v34 = vld [vmem:[%s9924_s11 + $0x118] sm:$0xff]  ;;  %v3499_v25 = vld [vmem:[%s9924_s11 + $0x180] sm:$0xff]  ;;  %v3505_v21 = vld [vmem:[%s9924_s11 + $0x1b0] sm:$0xff] }
 0x9bb   : > { %v3202_v43 = vmul.f32 1.442695, %v3199_v49  ;;  %v6309_v51 = vpack.c.bf16 %v3502_v8, %v3486_v34  ;;  %v3483_v49 = vld [vmem:[%s9924_s11 + $0x100] sm:$0xff]  ;;  %v3476_v34 = vld [vmem:[%s9924_s11 + $0xc8] sm:$0xff]  ;;  %v3462_v8 = vld [vmem:[%s9924_s11 + $0x58] sm:$0xff] }
 0x9bc   : > { %v3200_v23 = vmul.f32 1.442695, %v3198_v27  ;;  %v3485_v27 = vld [vmem:[%s9924_s11 + $0x110] sm:$0xff] }
 0x9bd   : > { %6683 = vpow2.f32 %v3202_v43  ;;  %v6303_v43 = vpack.c.bf16 %v3499_v25, %v3483_v49  ;;  %v6327_v49 = vpack.c.bf16 %v3505_v21, %v3489_v20  ;;  %v3459_v25 = vld [vmem:[%s9924_s11 + $0x40] sm:$0xff] }
 0x9be   : > { %6685 = vpow2.f32 %v3200_v23  ;;  %v3501_v23 = vld [vmem:[%s9924_s11 + $0x190] sm:$0xff] }
 0x9bf   : > { %6304 = vmatpush1.bf16.msra.mxu1 %v6303_v43  ;;  %v3475_v43 = vld [vmem:[%s9924_s11 + $0xc0] sm:$0xff] }
 0x9c7   : > { %v6684_v3 = vpop.eup %6683 }
 0x9c8   : > { %v6686_v18 = vpop.eup %6685  ;;  %v3207_v26 = vsel %vm10021_vm11, %v6684_v3, 0.0  ;;  %vm10031_vm11 = vmmov %vm10026_vm0 }
 0x9c9   : > { %3208 = vadd.xlane.f32.xlu0 %v3207_v26  ;;  %v3204_v1 = vsel %vm10022_vm15, %v6686_v18, 0.0  ;;  %v3472_v26 = vld [vmem:[%s9924_s11 + $0xa8] sm:$0xff]  ;;  %vm10032_vm15 = vmmov %vm10026_vm0 }
 0x9ca   : > { %3205 = vadd.xlane.f32.xlu1 %v3204_v1  ;;  %v3458_v1 = vld [vmem:[%s9924_s11 + $0x38] sm:$0xff] }
 0xa56   : > { %v3209_v36 = vpop.xlane.xlu0 %3208 }
 0xa57   : > { %6687 = vrcp.f32 %v3209_v36  ;;  %v3206_v54 = vpop.xlane.xlu1 %3205 }
 0xa58   : > { %6689 = vrcp.f32 %v3206_v54 }
 0xa61   : > { %v6688_v35 = vpop.eup %6687 }
 0xa62   : > { %v6690_v19 = vpop.eup %6689  ;;  %v3213_v9 = vmul.f32 %v6688_v35, %v6684_v3  ;;  %v3456_v3 = vld [vmem:[%s9924_s11 + $0x28] sm:$0xff] }
 0xa63   : > { %v3212_v24 = vmul.f32 %v6690_v19, %v6686_v18  ;;  %v6311_v18 = vpack.c.bf16 %v3501_v23, %v3485_v27  ;;  %v6313_v4 = vpack.c.bf16 %v3472_v26, %v3456_v3  ;;  %v3461_v23 = vld [vmem:[%s9924_s11 + $0x50] sm:$0xff]  ;;  %v6337_v26 = vpack.c.bf16 %v3478_v41, %v3462_v8  ;;  %v4285_v8 = vld [vmem:[%s9926_s13 + $0x100] sm:$0xff]  ;;  %v4286_v41 = vld [vmem:[%s9926_s13 + $0x108] sm:$0xff] }
 0xa64   : > { %v3477_v3 = vld [vmem:[%s9924_s11 + $0xd0] sm:$0xff] }
 0xa65   : > { %6139 = vmatprep.mubr.msk.f32.mxu0 %vm10023_vm10, %v3212_v24  ;;  %6314 = vmatprep.subr.bf16.mxu1 %v6313_v4  ;;  %vm10033_vm10 = vmmov %vm10026_vm0  ;;  %v3494_v4 = vld [vmem:[%s9924_s11 + $0x158] sm:$0xff] }
 0xa66   : > { %6140 = vmatmul.mubr.msk.f32.vlgmr.msra.gmra.mrb[8].mxu0 %vm10024_vm8, %v3213_v9  ;;  %vm10034_vm8 = vmmov %vm10026_vm0 }
 0xa67   : > { %6292 = vmatpush3.bf16.msra.mxu0 %v6289_v56  ;;  %v6321_v56 = vpack.c.bf16 %v3474_v2, %v3458_v1  ;;  %v3492_v1 = vld [vmem:[%s9924_s11 + $0x148] sm:$0xff] }
 0xa68   : > { %6294 = vmatprep.subr.bf16.mxu0 %v6293_v46  ;;  %v3508_v2 = vld [vmem:[%s9924_s11 + $0x1c8] sm:$0xff] }
 0xa6b   : > { %6296 = vmatpush3.bf16.msra.mxu0 %v6293_v46 }
 0xa6c   : > { %6306 = vmatprep.subr.bf16.mxu0 %v6305_v16 }
 0xb39   : > { %v6141_v50 = vpop.f32.mrb[8].mxu0 }
 0xb3a   : > { %v3286_v14 = vpop.f32.mrb[9].mxu0 }
 0xb3b   : > { %6150 = vmatprep.mubr.msk.f32.mxu0 %vm10025_vm13, %v3286_v14  ;;  %vm10035_vm13 = vmmov %vm10026_vm0 }
 0xb3c   : > { %6151 = vmatmul.mubr.msk.f32.vlgmr.msra.gmra.mrb[10].mxu0 %vm10026_vm0, %v6141_v50 }
 0xb3d   : > { %3746 = vmatprep.mubr.f32.mxu0 %v6726_v29  ;;  %6308 = vmatpush1.bf16.msra.mxu0 %v6307_v47  ;;  %v6325_v47 = vpack.c.bf16 %v3506_v0, %v3490_v37  ;;  %v3513_v37 = vld [vmem:[%s9924_s11 + $0x1f0] sm:$0xff] }
 0xb3e   : > { %6310 = vmatprep.subr.bf16.mxu0 %v6309_v51  ;;  %v6319_v51 = vpack.c.bf16 %v3503_v40, %v3487_v17  ;;  %v4270_v17 = vld [vmem:[%s9926_s13 + $0x88] sm:$0xff] }
 0xb3f   : > { %v4302_v40 = vld [vmem:[%s9926_s13 + $0x188] sm:$0xff] }
 0xb41   : > { %6312 = vmatpush1.bf16.msra.mxu0 %v6311_v18  ;;  %v6329_v18 = vpack.c.bf16 %v3476_v34, %v3460_v53 }
 0xb42   : > { %6322 = vmatprep.subr.bf16.mxu0 %v6321_v56  ;;  %v3510_v56 = vld [vmem:[%s9924_s11 + $0x1d8] sm:$0xff] }
 0xc0f   : > { %v6152_v60 = vpop.f32.mrb[10].mxu0 }
 0xc10   : > { %v3386_v33 = vadd.f32 %v6152_v60, %v5566_v6  ;;  %v3380_v11 = vpop.f32.mrb[11].mxu0 }
 0xc11   : > { %v3381_v12 = vadd.f32 %v5566_v6, %v3380_v11 }
 0xc12   : > { %v8671_v48 = vadd.f32 %v3386_v33, %v8553_v28 }
 0xc13   : > { %v8674_v13 = vadd.f32 %v3381_v12, %v8555_v22 }
 0xc14   : > { %v3398_v57 = vsel %vm10027_vm1, %v8671_v48, 0.0  ;;  %vm10036_vm1 = vmmov %vm10026_vm0 }
 0xc15   : > { %3399 = vadd.xlane.f32.xlu0 %v3398_v57  ;;  %v3395_v52 = vsel %vm10028_vm9, %v8674_v13, 0.0  ;;  %v5571_v57 = vld [vmem:[%s9918_s5 + $0x2] ss:$0 sm:$0xff]  ;;  %vm10037_vm9 = vmmov %vm10026_vm0 }
 0xc16   : > { %3396 = vadd.xlane.f32.xlu1 %v3395_v52  ;;  %v3455_v52 = vld [vmem:[%s9924_s11 + $0x20] sm:$0xff] }
 0xca2   : > { %v3400_v32 = vpop.xlane.xlu0 %3399 }
 0xca3   : > { %v3402_v44 = vmul.f32 0.03125, %v3400_v32  ;;  %v3397_v30 = vpop.xlane.xlu1 %3396 }
 0xca4   : > { %v3401_v58 = vmul.f32 0.03125, %v3397_v30  ;;  %v3471_v30 = vld [vmem:[%s9924_s11 + $0xa0] sm:$0xff] }
 0xca5   : > { %v8681_v59 = vsub.f32 %v8671_v48, %v3402_v44  ;;  %v6315_v38 = vpack.c.bf16 %v3471_v30, %v3455_v52  ;;  %v3481_v52 = vld [vmem:[%s9924_s11 + $0xf0] sm:$0xff]  ;;  %v3496_v30 = vld [vmem:[%s9924_s11 + $0x168] sm:$0xff] }
 0xca6   : > { %v8684_v28 = vsub.f32 %v8674_v13, %v3401_v58  ;;  %v3457_v58 = vld [vmem:[%s9924_s11 + $0x30] sm:$0xff] }
 0xca7   : > { %v3406_v22 = vmul.f32 %v8681_v59, %v8681_v59 }
 0xca8   : > { %v3405_v61 = vmul.f32 %v8684_v28, %v8684_v28  ;;  %v3435_v44 = vmul.f32 %v5571_v57, %v8684_v28  ;;  %v3488_v28 = vld [vmem:[%s9924_s11 + $0x128] sm:$0xff] }
 0xca9   : > { %v3410_v62 = vsel %vm10029_vm5, %v3406_v22, 0.0  ;;  %v3473_v22 = vld [vmem:[%s9924_s11 + $0xb0] sm:$0xff]  ;;  %v6317_v31 = vpack.c.bf16 %v3504_v10, %v3488_v28  ;;  %vm10038_vm5 = vmmov %vm10026_vm0 }
 0xcaa   : > { %3411 = vadd.xlane.f32.xlu0 %v3410_v62  ;;  %v3407_v15 = vsel %vm10030_vm7, %v3405_v61, 0.0  ;;  %v5572_v62 = vld [vmem:[%s9919_s6 + $0x2] ss:$0 sm:$0xff]  ;;  %v6323_v39 = vpack.c.bf16 %v3473_v22, %v3457_v58  ;;  %v3512_v58 = vld [vmem:[%s9924_s11 + $0x1e8] sm:$0xff]  ;;  %v3498_v22 = vld [vmem:[%s9924_s11 + $0x178] sm:$0xff] }
 0xcab   : > { %3408 = vadd.xlane.f32.xlu1 %v3407_v15  ;;  %v3436_v15 = vmul.f32 %v5571_v57, %v8681_v59  ;;  %v3465_v57 = vld [vmem:[%s9924_s11 + $0x70] sm:$0xff]  ;;  %v6349_v0 = vpack.c.bf16 %v3512_v58, %v3496_v30  ;;  %vm10039_vm7 = vmmov %vm10026_vm0  ;;  %v4292_v30 = vld [vmem:[%s9926_s13 + $0x138] sm:$0xff] }
 0xcac   : > { %v6355_v28 = vpack.c.bf16 %v3481_v52, %v3465_v57  ;;  %v3497_v10 = vld [vmem:[%s9924_s11 + $0x170] sm:$0xff]  ;;  %v4260_v57 = vld [vmem:[%s9926_s13 + $0x38] sm:$0xff]  ;;  %v4277_v58 = vld [vmem:[%s9926_s13 + $0xc0] sm:$0xff] }
 0xcad   : > { %v6359_v21 = vpack.c.bf16 %v3513_v37, %v3497_v10  ;;  %v4262_v10 = vld [vmem:[%s9926_s13 + $0x48] sm:$0xff] }
 0xd37   : > { %v3412_v36 = vpop.xlane.xlu0 %3411 }
 0xd38   : > { %v3414_v54 = vmul.f32 0.032258064, %v3412_v36  ;;  %v3409_v35 = vpop.xlane.xlu1 %3408  ;;  %v6331_v36 = vpack.c.bf16 %v3475_v43, %v3459_v25  ;;  %v4303_v25 = vld [vmem:[%s9926_s13 + $0x190] sm:$0xff]  ;;  %v4304_v43 = vld [vmem:[%s9926_s13 + $0x198] sm:$0xff] }
 0xd39   : > { %v3413_v45 = vmul.f32 0.032258064, %v3409_v35  ;;  %v3491_v35 = vld [vmem:[%s9924_s11 + $0x140] sm:$0xff] }
 0xd3a   : > { %6691 = vrsqrt.f32 %v3414_v54  ;;  %vm3424_vm14 = vcmp.eq.f32.partialorder %v3414_v54, inf  ;;  %v3427_v9 = vand.u32 2147483648, %v3414_v54  ;;  %vm3426_vm3 = vcmp.eq.f32.partialorder %v3414_v54, 0.0 }
 0xd3b   : > { %6693 = vrsqrt.f32 %v3413_v45  ;;  %vm3417_vm12 = vcmp.eq.f32.partialorder %v3413_v45, inf  ;;  %v3420_v14 = vand.u32 2147483648, %v3413_v45  ;;  %vm3419_vm4 = vcmp.eq.f32.partialorder %v3413_v45, 0.0 }
 0xd44   : > { %v6692_v55 = vpop.eup %6691 }
 0xd45   : > { %v6694_v19 = vpop.eup %6693  ;;  %v3423_v24 = vmul.f32 %v6692_v55, %v3414_v54  ;;  %v3493_v55 = vld [vmem:[%s9924_s11 + $0x150] sm:$0xff] }
 0xd46   : > { %v3416_v46 = vmul.f32 %v6694_v19, %v3413_v45  ;;  %v3509_v19 = vld [vmem:[%s9924_s11 + $0x1d0] sm:$0xff] }
 0xd47   : > { %v3425_v50 = vsel %vm3424_vm14, %v3414_v54, %v3423_v24  ;;  %v6339_v54 = vpack.c.bf16 %v3477_v3, %v3461_v23  ;;  %v6333_v24 = vpack.c.bf16 %v3508_v2, %v3492_v1  ;;  %vm10040_vm14 = vmmov %vm10026_vm0  ;;  %v6395_v3 = vpack.c.bf16 %v4286_v41, %v4285_v8  ;;  %v4295_v41 = vld [vmem:[%s9926_s13 + $0x150] sm:$0xff] }
 0xd48   : > { %v3428_v6 = vsel %vm3426_vm3, %v3427_v9, %v3425_v50  ;;  %v3418_v60 = vsel %vm3417_vm12, %v3413_v45, %v3416_v46  ;;  %v3507_v45 = vld [vmem:[%s9924_s11 + $0x1c0] sm:$0xff]  ;;  %v6341_v9 = vpack.c.bf16 %v3510_v56, %v3494_v4  ;;  %v3464_v46 = vld [vmem:[%s9924_s11 + $0x68] sm:$0xff]  ;;  %vm10041_vm3 = vmmov %vm10026_vm0  ;;  %v6397_v2 = vpack.c.bf16 %v4304_v43, %v4303_v25 }
 0xd49   : > { %v3438_v33 = vadd.f32 1e-06, %v3428_v6  ;;  %v3421_v11 = vsel %vm3419_vm4, %v3420_v14, %v3418_v60  ;;  %v3480_v50 = vld [vmem:[%s9924_s11 + $0xe8] sm:$0xff]  ;;  %v3466_v14 = vld [vmem:[%s9924_s11 + $0x78] sm:$0xff]  ;;  %v6335_v60 = vpack.c.bf16 %v3507_v45, %v3491_v35  ;;  %v4287_v4 = vld [vmem:[%s9926_s13 + $0x110] sm:$0xff] }
 0xd4a   : > { %v3437_v12 = vadd.f32 1e-06, %v3421_v11  ;;  %v3482_v6 = vld [vmem:[%s9924_s11 + $0xf8] sm:$0xff]  ;;  %v3463_v11 = vld [vmem:[%s9924_s11 + $0x60] sm:$0xff]  ;;  %vm10042_vm12 = vmmov %vm10026_vm0 }
 0xd4b   : > { %6695 = vrcp.f32 %v3438_v33  ;;  %v6343_v33 = vpack.c.bf16 %v3509_v19, %v3493_v55  ;;  %v4288_v56 = vld [vmem:[%s9926_s13 + $0x118] sm:$0xff]  ;;  %vm10043_vm4 = vmmov %vm10026_vm0  ;;  %v4305_v35 = vld [vmem:[%s9926_s13 + $0x1a0] sm:$0xff] }
 0xd4c   : > { %6697 = vrcp.f32 %v3437_v12  ;;  %v3479_v12 = vld [vmem:[%s9924_s11 + $0xe0] sm:$0xff]  ;;  %v4306_v45 = vld [vmem:[%s9926_s13 + $0x1a8] sm:$0xff] }
 0xd4d   : > { %v4257_v19 = vld [vmem:[%s9926_s13 + $0x20] sm:$0xff]  ;;  %v4282_v25 = vld [vmem:[%s9926_s13 + $0xe8] sm:$0xff] }
 0xd4e   : > { %v4313_v43 = vld [vmem:[%s9926_s13 + $0x1e0] sm:$0xff] }
 0xd55   : > { %v6696_v32 = vpop.eup %6695 }
 0xd56   : > { %v6698_v61 = vpop.eup %6697  ;;  %v3442_v59 = vmul.f32 %v6696_v32, %v3436_v15  ;;  %v6345_v32 = vpack.c.bf16 %v3480_v50, %v3464_v46  ;;  %v3495_v15 = vld [vmem:[%s9924_s11 + $0x160] sm:$0xff]  ;;  %v6401_v46 = vpack.c.bf16 %v4306_v45, %v4305_v35  ;;  %v4290_v50 = vld [vmem:[%s9926_s13 + $0x128] sm:$0xff]  ;;  %v4283_v45 = vld [vmem:[%s9926_s13 + $0xf0] sm:$0xff] }
 0xd57   : > { %v3440_v63 = vmul.f32 %v6698_v61, %v3435_v44  ;;  %v6353_v44 = vpack.c.bf16 %v3482_v6, %v3466_v14  ;;  %v3514_v61 = vld [vmem:[%s9924_s11 + $0x1f8] sm:$0xff]  ;;  %v4275_v14 = vld [vmem:[%s9926_s13 + $0xb0] sm:$0xff] }
 0xd58   : > { %v8819_v27 = vadd.f32 %v5572_v62, %v3442_v59  ;;  %v4301_v59 = vld [vmem:[%s9926_s13 + $0x180] sm:$0xff]  ;;  %v4276_v6 = vld [vmem:[%s9926_s13 + $0xb8] sm:$0xff] }
 0xd59   : > { %v8787_v16 = vadd.f32 %v5572_v62, %v3440_v63  ;;  %v6347_v62 = vpack.c.bf16 %v3479_v12, %v3463_v11  ;;  %v3511_v63 = vld [vmem:[%s9924_s11 + $0x1e0] sm:$0xff]  ;;  %v6393_v34 = vpack.c.bf16 %v4302_v40, %v4301_v59  ;;  %v6373_v52 = vpack.c.bf16 %v4276_v6, %v4275_v14  ;;  %v4280_v59 = vld [vmem:[%s9926_s13 + $0xd8] sm:$0xff]  ;;  %v4311_v40 = vld [vmem:[%s9926_s13 + $0x1d0] sm:$0xff] }
 0xd5a   : > { %v6351_v20 = vpack.c.bf16 %v3511_v63, %v3495_v15  ;;  %v4261_v63 = vld [vmem:[%s9926_s13 + $0x40] sm:$0xff]  ;;  %v4299_v14 = vld [vmem:[%s9926_s13 + $0x170] sm:$0xff]  ;;  %v4300_v6 = vld [vmem:[%s9926_s13 + $0x178] sm:$0xff] }
 0xd5b   : > { %5573 = vmatmul.mubr.msk.f32.vlgmr.msra.gmra.mrb[14].mxu1 %vm10031_vm11, %v8787_v16  ;;  %5575 = vmatmul.mubr.msk.f32.vlgmr.msra.gmra.mrb[12].mxu0 %vm10032_vm15, %v8787_v16  ;;  %vm10044_vm11 = vmmov %vm10026_vm0 }
 0xd5c   : > { %6316 = vmatpush1.bf16.msra.mxu1 %v6315_v38  ;;  %6324 = vmatpush1.bf16.msra.mxu0 %v6323_v39  ;;  %v6357_v38 = vpack.c.bf16 %v3514_v61, %v3498_v22  ;;  %v4269_v39 = vld [vmem:[%s9926_s13 + $0x80] sm:$0xff]  ;;  %vm10045_vm15 = vmmov %vm10026_vm0  ;;  %v4278_v22 = vld [vmem:[%s9926_s13 + $0xc8] sm:$0xff] }
 0xd5d   : > { %3675 = vmatprep.mubr.f32.mxu1 %v6726_v29  ;;  %3752 = vmatprep.mubr.f32.mxu0 %v6726_v29  ;;  %v6361_v53 = vpack.c.bf16 %v4270_v17, %v4269_v39  ;;  %v4309_v61 = vld [vmem:[%s9926_s13 + $0x1c0] sm:$0xff]  ;;  %v6377_v37 = vpack.c.bf16 %v4278_v22, %v4277_v58  ;;  %v4294_v39 = vld [vmem:[%s9926_s13 + $0x148] sm:$0xff]  ;;  %v4279_v17 = vld [vmem:[%s9926_s13 + $0xd0] sm:$0xff]  ;;  %v3533_v58 = vsub.s32 3, %v6845_v5 }
 0xd5e   : > { %6318 = vmatprep.subr.bf16.mxu1 %v6317_v31  ;;  %6326 = vmatprep.subr.bf16.mxu0 %v6325_v47  ;;  %v4253_v31 = vld [vmem:[%s9926_s13] sm:$0xff]  ;;  %v4254_v47 = vld [vmem:[%s9926_s13 + $0x8] sm:$0xff] }
 0xd5f   : > { %5574 = vmatmul.mubr.msk.f32.gmra.mrb[16].mxu1 %vm10033_vm10, %v8819_v27  ;;  %5576 = vmatmul.mubr.msk.f32.gmra.mrb[14].mxu0 %vm10034_vm8, %v8819_v27  ;;  %v6363_v23 = vpack.c.bf16 %v4254_v47, %v4253_v31  ;;  %v4263_v47 = vld [vmem:[%s9926_s13 + $0x50] sm:$0xff]  ;;  %vm10046_vm10 = vmmov %vm10026_vm0 }
 0xd60   : > { %6320 = vmatpush1.bf16.msra.mxu1 %v6319_v51  ;;  %6328 = vmatpush1.bf16.msra.mxu0 %v6327_v49  ;;  %v4271_v51 = vld [vmem:[%s9926_s13 + $0x90] sm:$0xff]  ;;  %v4272_v49 = vld [vmem:[%s9926_s13 + $0x98] sm:$0xff]  ;;  %vm10047_vm8 = vmmov %vm10026_vm0 }
 0xd61   : > { %3823 = vmatprep.mubr.f32.mxu1 %v6726_v29  ;;  %3900 = vmatprep.mubr.f32.mxu0 %v6726_v29  ;;  %v6365_v1 = vpack.c.bf16 %v4272_v49, %v4271_v51  ;;  %v4296_v51 = vld [vmem:[%s9926_s13 + $0x158] sm:$0xff]  ;;  %v4281_v49 = vld [vmem:[%s9926_s13 + $0xe0] sm:$0xff] }
 0xd62   : > { %6330 = vmatprep.subr.bf16.mxu1 %v6329_v18  ;;  %6338 = vmatprep.subr.bf16.mxu0 %v6337_v26  ;;  %v4255_v18 = vld [vmem:[%s9926_s13 + $0x10] sm:$0xff]  ;;  %v4256_v26 = vld [vmem:[%s9926_s13 + $0x18] sm:$0xff] }
 0xd63   : > { %5577 = vmatmul.mubr.msk.f32.vlgmr.msra.gmra.mrb[18].mxu1 %vm10035_vm13, %v8787_v16  ;;  %5579 = vmatmul.mubr.msk.f32.vlgmr.msra.gmra.mrb[16].mxu0 %vm10026_vm0, %v8787_v16  ;;  %v6367_v55 = vpack.c.bf16 %v4256_v26, %v4255_v18  ;;  %v6415_v18 = vpack.c.bf16 %v4296_v51, %v4295_v41  ;;  %v4265_v26 = vld [vmem:[%s9926_s13 + $0x60] sm:$0xff]  ;;  %v3549_v41 = vsub.s32 7, %v6845_v5  ;;  %vm10048_vm13 = vmmov %vm10026_vm0 }
 0xd64   : > { %6332 = vmatpush1.bf16.msra.mxu1 %v6331_v36  ;;  %6340 = vmatpush1.bf16.msra.mxu0 %v6339_v54  ;;  %v4273_v36 = vld [vmem:[%s9926_s13 + $0xa0] sm:$0xff]  ;;  %v4274_v54 = vld [vmem:[%s9926_s13 + $0xa8] sm:$0xff] }
 0xd65   : > { %3829 = vmatprep.mubr.f32.mxu1 %v6726_v29  ;;  %3906 = vmatprep.mubr.f32.mxu0 %v6726_v29 }
 0xd66   : > { %6334 = vmatprep.subr.bf16.mxu1 %v6333_v24  ;;  %6342 = vmatprep.subr.bf16.mxu0 %v6341_v9  ;;  %v4258_v24 = vld [vmem:[%s9926_s13 + $0x28] sm:$0xff]  ;;  %v6369_v9 = vpack.c.bf16 %v4274_v54, %v4273_v36 }
 0xd67   : > { %5578 = vmatmul.mubr.msk.f32.gmra.mrb[20].mxu1 %vm10036_vm1, %v8819_v27  ;;  %5580 = vmatmul.mubr.msk.f32.gmra.mrb[18].mxu0 %vm10037_vm9, %v8819_v27  ;;  %v6371_v11 = vpack.c.bf16 %v4258_v24, %v4257_v19  ;;  %v4298_v36 = vld [vmem:[%s9926_s13 + $0x168] sm:$0xff]  ;;  %v4316_v24 = vld [vmem:[%s9926_s13 + $0x1f8] sm:$0xff]  ;;  %vm10049_vm1 = vmmov %vm10026_vm0 }
 0xd68   : > { %6336 = vmatpush1.bf16.msra.mxu1 %v6335_v60  ;;  %6344 = vmatpush1.bf16.msra.mxu0 %v6343_v33  ;;  %v4307_v60 = vld [vmem:[%s9926_s13 + $0x1b0] sm:$0xff]  ;;  %v4308_v33 = vld [vmem:[%s9926_s13 + $0x1b8] sm:$0xff]  ;;  %vm10050_vm9 = vmmov %vm10026_vm0 }
 0xd69   : > { %3977 = vmatprep.mubr.f32.mxu1 %v6726_v29  ;;  %4054 = vmatprep.mubr.f32.mxu0 %v6726_v29 }
 0xd6a   : > { %6346 = vmatprep.subr.bf16.mxu1 %v6345_v32  ;;  %6354 = vmatprep.subr.bf16.mxu0 %v6353_v44  ;;  %v6405_v32 = vpack.c.bf16 %v4308_v33, %v4307_v60  ;;  %v4291_v44 = vld [vmem:[%s9926_s13 + $0x130] sm:$0xff]  ;;  %v6423_v60 = vpack.c.bf16 %v4300_v6, %v4299_v14  ;;  %v4333_v33 = vld [vmem:[%s9926_s13 + $0x280] sm:$0xff]  ;;  %v4370_v6 = vld [vmem:[%s9926_s13 + $0x3a8] sm:$0xff] }
 0xd6b   : > { %5581 = vmatmul.mubr.msk.f32.vlgmr.msra.gmra.mrb[22].mxu1 %vm10038_vm5, %v8787_v16  ;;  %5583 = vmatmul.mubr.msk.f32.vlgmr.msra.gmra.mrb[20].mxu0 %vm10039_vm7, %v8787_v16  ;;  %v6407_v15 = vpack.c.bf16 %v4292_v30, %v4291_v44  ;;  %v9150_v44 = vld [vmem:[%s9925_s12] sm:$0xff]  ;;  %v3525_v30 = vsub.s32 1, %v6845_v5  ;;  %vm10051_vm5 = vmmov %vm10026_vm0 }
 0xd6c   : > { %6348 = vmatpush1.bf16.msra.mxu1 %v6347_v62  ;;  %6356 = vmatpush1.bf16.msra.mxu0 %v6355_v28  ;;  %v4310_v62 = vld [vmem:[%s9926_s13 + $0x1c8] sm:$0xff]  ;;  %v3522_v22 = vrot.slane %v9150_v44, %v6848_v7  ;;  %v4369_v14 = vld [vmem:[%s9926_s13 + $0x3a0] sm:$0xff]  ;;  %vm10052_vm7 = vmmov %vm10026_vm0 }
 0xd6d   : > { %3983 = vmatprep.mubr.f32.mxu1 %v6726_v29  ;;  %4060 = vmatprep.mubr.f32.mxu0 %v6726_v29 }
 0xd6e   : > { %6350 = vmatprep.subr.bf16.mxu1 %v6349_v0  ;;  %6358 = vmatprep.subr.bf16.mxu0 %v6357_v38  ;;  %v6409_v0 = vpack.c.bf16 %v4310_v62, %v4309_v61  ;;  %v4293_v38 = vld [vmem:[%s9926_s13 + $0x140] sm:$0xff]  ;;  %v3526_v62 = vrot.slane %v9150_v44, %v3525_v30 }
 0xd6f   : > { %5582 = vmatmul.mubr.msk.f32.gmra.mrb[24].mxu1 %vm10040_vm14, %v8819_v27  ;;  %5584 = vmatmul.mubr.msk.f32.gmra.mrb[22].mxu0 %vm10041_vm3, %v8819_v27  ;;  %v6411_v31 = vpack.c.bf16 %v4294_v39, %v4293_v38  ;;  %v4349_v38 = vld [vmem:[%s9926_s13 + $0x300] sm:$0xff]  ;;  %v4350_v39 = vld [vmem:[%s9926_s13 + $0x308] sm:$0xff]  ;;  %vm10053_vm14 = vmmov %vm10026_vm0  ;;  %vm10055_vm3 = vcmask 130048  }
 0xd70   : > { %6352 = vmatpush1.bf16.msra.mxu1 %v6351_v20  ;;  %6360 = vmatpush1.bf16.msra.mxu0 %v6359_v21  ;;  %v4312_v20 = vld [vmem:[%s9926_s13 + $0x1d8] sm:$0xff]  ;;  %v6379_v21 = vpack.c.bf16 %v4262_v10, %v4261_v63  ;;  %v4318_v63 = vld [vmem:[%s9926_s13 + $0x208] sm:$0xff]  ;;  %v3541_v10 = vsub.s32 5, %v6845_v5 }
 0xd71   : > { %4131 = vmatprep.mubr.f32.mxu1 %v6726_v29  ;;  %4208 = vmatprep.mubr.f32.mxu0 %v6726_v29  ;;  %v6413_v8 = vpack.c.bf16 %v4312_v20, %v4311_v40 }
 0xd72   : > { %6362 = vmatprep.subr.bf16.mxu1 %v6361_v53  ;;  %6394 = vmatprep.subr.bf16.mxu0 %v6393_v34  ;;  %v4264_v53 = vld [vmem:[%s9926_s13 + $0x58] sm:$0xff]  ;;  %v6381_v34 = vpack.c.bf16 %v4280_v59, %v4279_v17  ;;  %v4335_v17 = vld [vmem:[%s9926_s13 + $0x290] sm:$0xff] }
 0xd73   : > { %5585 = vmatmul.mubr.msk.f32.vlgmr.msra.gmra.mrb[26].mxu1 %vm10042_vm12, %v8787_v16  ;;  %5587 = vmatmul.mubr.msk.f32.vlgmr.msra.gmra.mrb[24].mxu0 %vm10043_vm4, %v8787_v16  ;;  %v6399_v16 = vpack.c.bf16 %v4288_v56, %v4287_v4  ;;  %v4266_v4 = vld [vmem:[%s9926_s13 + $0x68] sm:$0xff]  ;;  %v4297_v56 = vld [vmem:[%s9926_s13 + $0x160] sm:$0xff]  ;;  %vm10056_vm12 = vmmov %vm10055_vm3 }
 0xd74   : > { %4137 = vmatprep.mubr.f32.mxu1 %v6726_v29  ;;  %4214 = vmatprep.mubr.f32.mxu0 %v6726_v29  ;;  %v4289_v29 = vld [vmem:[%s9926_s13 + $0x120] sm:$0xff]  ;;  %v6387_v54 = vpack.c.bf16 %v4266_v4, %v4265_v26  ;;  %v6419_v35 = vpack.c.bf16 %v4298_v36, %v4297_v56  ;;  %v4320_v4 = vld [vmem:[%s9926_s13 + $0x218] sm:$0xff]  ;;  %v4351_v56 = vld [vmem:[%s9926_s13 + $0x310] sm:$0xff] }
 0xd75   : > { %6364 = vmatpush3.bf16.msra.mxu1 %v6363_v23  ;;  %6396 = vmatpush3.bf16.msra.mxu0 %v6395_v3  ;;  %v6403_v12 = vpack.c.bf16 %v4290_v50, %v4289_v29  ;;  %v4314_v23 = vld [vmem:[%s9926_s13 + $0x1e8] sm:$0xff]  ;;  %v6383_v3 = vpack.c.bf16 %v4264_v53, %v4263_v47  ;;  %v4367_v47 = vld [vmem:[%s9926_s13 + $0x390] sm:$0xff]  ;;  %v4368_v53 = vld [vmem:[%s9926_s13 + $0x398] sm:$0xff] }
 0xd76   : > { %6366 = vmatprep.subr.bf16.mxu1 %v6365_v1  ;;  %6398 = vmatprep.subr.bf16.mxu0 %v6397_v2  ;;  %v6385_v1 = vpack.c.bf16 %v4282_v25, %v4281_v49  ;;  %v6417_v2 = vpack.c.bf16 %v4314_v23, %v4313_v43  ;;  %v6459_v49 = vpack.c.bf16 %v4350_v39, %v4349_v38  ;;  %v4319_v43 = vld [vmem:[%s9926_s13 + $0x210] sm:$0xff]  ;;  %v9244_v39 = vld [vmem:[%s9925_s12 + $0x8] sm:$0xff]  ;;  %vm10057_vm4 = vmmov %vm10055_vm3 }
 0xd77   : > { %5586 = vmatmul.mubr.msk.f32.gmra.mrb[28].mxu1 %vm10044_vm11, %v8819_v27  ;;  %5588 = vmatmul.mubr.msk.f32.gmra.mrb[26].mxu0 %vm10045_vm15, %v8819_v27  ;;  %v4259_v27 = vld [vmem:[%s9926_s13 + $0x30] sm:$0xff]  ;;  %v9194_v25 = vrot.slane %v9150_v44, %v3541_v10  ;;  %v6465_v38 = vpack.c.bf16 %v4370_v6, %v4369_v14  ;;  %vm10058_vm11 = vmmov %vm10055_vm3 }
 0xd78   : > { %v6375_v28 = vpack.c.bf16 %v4260_v57, %v4259_v27  ;;  %v4366_v57 = vld [vmem:[%s9926_s13 + $0x388] sm:$0xff] }
 0xd79   : > { %6368 = vmatpush3.bf16.msra.mxu1 %v6367_v55  ;;  %6400 = vmatpush3.bf16.msra.mxu0 %v6399_v16  ;;  %v4284_v55 = vld [vmem:[%s9926_s13 + $0xf8] sm:$0xff]  ;;  %v4315_v16 = vld [vmem:[%s9926_s13 + $0x1f0] sm:$0xff] }
 0xd7a   : > { %6370 = vmatprep.subr.bf16.mxu1 %v6369_v9  ;;  %6402 = vmatprep.subr.bf16.mxu0 %v6401_v46  ;;  %v6389_v19 = vpack.c.bf16 %v4284_v55, %v4283_v45  ;;  %v4267_v9 = vld [vmem:[%s9926_s13 + $0x70] sm:$0xff]  ;;  %v4268_v46 = vld [vmem:[%s9926_s13 + $0x78] sm:$0xff]  ;;  %v6421_v29 = vpack.c.bf16 %v4316_v24, %v4315_v16  ;;  %v4337_v24 = vld [vmem:[%s9926_s13 + $0x2a0] sm:$0xff] }
 0xd7b   : > { %v6391_v50 = vpack.c.bf16 %v4268_v46, %v4267_v9 }
 0xd7d   : > { %6372 = vmatpush3.bf16.msra.mxu1 %v6371_v11  ;;  %6404 = vmatpush3.bf16.msra.mxu0 %v6403_v12  ;;  %v4334_v11 = vld [vmem:[%s9926_s13 + $0x288] sm:$0xff]  ;;  %v4365_v12 = vld [vmem:[%s9926_s13 + $0x380] sm:$0xff] }
 0xd7e   : > { %6374 = vmatprep.subr.bf16.mxu1 %v6373_v52  ;;  %6406 = vmatprep.subr.bf16.mxu0 %v6405_v32  ;;  %v6425_v27 = vpack.c.bf16 %v4334_v11, %v4333_v33  ;;  %v6457_v52 = vpack.c.bf16 %v4366_v57, %v4365_v12  ;;  %v3529_v32 = vsub.s32 2, %v6845_v5  ;;  %v4322_v33 = vld [vmem:[%s9926_s13 + $0x228] sm:$0xff] }
 0xd80   : > { %v3530_v61 = vrot.slane %v9150_v44, %v3529_v32 }
 0xd81   : > { %6376 = vmatpush3.bf16.msra.mxu1 %v6375_v28  ;;  %6408 = vmatpush3.bf16.msra.mxu0 %v6407_v15  ;;  %v3534_v28 = vrot.slane %v9150_v44, %v3533_v58  ;;  %v4317_v15 = vld [vmem:[%s9926_s13 + $0x200] sm:$0xff] }
 0xd82   : > { %6378 = vmatprep.subr.bf16.mxu1 %v6377_v37  ;;  %6410 = vmatprep.subr.bf16.mxu0 %v6409_v0  ;;  %v6427_v51 = vpack.c.bf16 %v4318_v63, %v4317_v15 }
 0xd85   : > { %6380 = vmatpush3.bf16.msra.mxu1 %v6379_v21  ;;  %6412 = vmatpush3.bf16.msra.mxu0 %v6411_v31  ;;  %v4336_v31 = vld [vmem:[%s9926_s13 + $0x298] sm:$0xff] }
 0xd86   : > { %6382 = vmatprep.subr.bf16.mxu1 %v6381_v34  ;;  %6414 = vmatprep.subr.bf16.mxu0 %v6413_v8 }
 0xd89   : > { %6384 = vmatpush3.bf16.msra.mxu1 %v6383_v3  ;;  %6416 = vmatpush3.bf16.msra.mxu0 %v6415_v18 }
 0xd8a   : > { %6386 = vmatprep.subr.bf16.mxu1 %v6385_v1  ;;  %6418 = vmatprep.subr.bf16.mxu0 %v6417_v2  ;;  %v6429_v1 = vpack.c.bf16 %v4336_v31, %v4335_v17  ;;  %v6461_v2 = vpack.c.bf16 %v4368_v53, %v4367_v47  ;;  %v4339_v17 = vld [vmem:[%s9926_s13 + $0x2b0] sm:$0xff]  ;;  %v4372_v31 = vld [vmem:[%s9926_s13 + $0x3b8] sm:$0xff] }
 0xd8d   : > { %6388 = vmatpush3.bf16.msra.mxu1 %v6387_v54  ;;  %6420 = vmatpush3.bf16.msra.mxu0 %v6419_v35 }
 0xd8e   : > { %6390 = vmatprep.subr.bf16.mxu1 %v6389_v19  ;;  %6422 = vmatprep.subr.bf16.mxu0 %v6421_v29  ;;  %v4352_v19 = vld [vmem:[%s9926_s13 + $0x318] sm:$0xff]  ;;  %v9214_v29 = vrot.slane %v9150_v44, %v3549_v41 }
 0xd91   : > { %6392 = vmatpush3.bf16.msra.mxu1 %v6391_v50  ;;  %6424 = vmatpush3.bf16.msra.mxu0 %v6423_v60  ;;  %v4338_v50 = vld [vmem:[%s9926_s13 + $0x2a8] sm:$0xff]  ;;  %v4321_v60 = vld [vmem:[%s9926_s13 + $0x220] sm:$0xff] }
 0xd92   : > { %6426 = vmatprep.subr.bf16.mxu1 %v6425_v27  ;;  %6458 = vmatprep.subr.bf16.mxu0 %v6457_v52  ;;  %v6431_v52 = vpack.c.bf16 %v4320_v4, %v4319_v43  ;;  %v4323_v43 = vld [vmem:[%s9926_s13 + $0x230] sm:$0xff] }
 0xd93   : > { %v4355_v4 = vld [vmem:[%s9926_s13 + $0x330] sm:$0xff] }
 0xe2e   : > { %v3671_v37 = vpop.f32.mrb[14].mxu1  ;;  %v3748_v0 = vpop.f32.mrb[12].mxu0 }
 0xe2f   : > { %v3672_v59 = vadd.f32 %v3671_v37, %v3522_v22  ;;  %v3749_v40 = vadd.f32 %v3748_v0, %v3530_v61  ;;  %v3673_v20 = vpop.f32.mrb[15].mxu1  ;;  %v3750_v21 = vpop.f32.mrb[13].mxu0  ;;  %v6433_v0 = vpack.c.bf16 %v4338_v50, %v4337_v24  ;;  %v4325_v24 = vld [vmem:[%s9926_s13 + $0x240] sm:$0xff] }
 0xe30   : > { %v3674_v34 = vadd.f32 %v3673_v20, %v3526_v62  ;;  %v3751_v8 = vadd.f32 %v3750_v21, %v3534_v28  ;;  %v4340_v20 = vld [vmem:[%s9926_s13 + $0x2b8] sm:$0xff]  ;;  %v4371_v21 = vld [vmem:[%s9926_s13 + $0x3b0] sm:$0xff] }
 0xe31   : > { %v4221_v36 = vmax.f32 %v3672_v59, 0.0  ;;  %v4223_v54 = vmax.f32 %v3749_v40, 0.0 }
 0xe32   : > { %v4222_v23 = vmax.f32 %v3674_v34, 0.0  ;;  %v4224_v3 = vmax.f32 %v3751_v8, 0.0  ;;  %v3677_v18 = vpop.f32.mrb[16].mxu1  ;;  %v3754_v26 = vpop.f32.mrb[14].mxu0 }
 0xe33   : > { %v3678_v35 = vadd.f32 %v3677_v18, %v3522_v22  ;;  %v3755_v45 = vadd.f32 %v3754_v26, %v3530_v61  ;;  %v3679_v55 = vpop.f32.mrb[17].mxu1  ;;  %v3756_v16 = vpop.f32.mrb[15].mxu0  ;;  %v6463_v22 = vpack.c.bf16 %v4352_v19, %v4351_v56  ;;  %v4353_v61 = vld [vmem:[%s9926_s13 + $0x320] sm:$0xff]  ;;  %v3562_v26 = vrot.slane %v9244_v39, %v3529_v32  ;;  %v4356_v56 = vld [vmem:[%s9926_s13 + $0x338] sm:$0xff]  ;;  %v4342_v32 = vld [vmem:[%s9926_s13 + $0x2c8] sm:$0xff] }
 0xe34   : > { %v3680_v9 = vadd.f32 %v3679_v55, %v3526_v62  ;;  %v3757_v46 = vadd.f32 %v3756_v16, %v3534_v28  ;;  %4573 = vmatprep.mubr.f32.mxu1 %v4222_v23  ;;  %4648 = vmatprep.mubr.f32.mxu0 %v4224_v3  ;;  %v4354_v62 = vld [vmem:[%s9926_s13 + $0x328] sm:$0xff]  ;;  %v4324_v23 = vld [vmem:[%s9926_s13 + $0x238] sm:$0xff]  ;;  %v6471_v19 = vpack.c.bf16 %v4356_v56, %v4355_v4 }
 0xe35   : > { %4574 = vmatmul.mubr.f32.vlgmr.msra.gmra.mrb[30].mxu1 %v4221_v36  ;;  %4649 = vmatmul.mubr.f32.vlgmr.msra.gmra.mrb[28].mxu0 %v4223_v54  ;;  %v4237_v28 = vmax.f32 %v3678_v35, 0.0  ;;  %v4239_v15 = vmax.f32 %v3755_v45, 0.0  ;;  %v4341_v36 = vld [vmem:[%s9926_s13 + $0x2c0] sm:$0xff]  ;;  %v4374_v35 = vld [vmem:[%s9926_s13 + $0x3c8] sm:$0xff]  ;;  %v6439_v16 = vpack.c.bf16 %v4324_v23, %v4323_v43 }
 0xe36   : > { %v4238_v11 = vmax.f32 %v3680_v9, 0.0  ;;  %v4240_v12 = vmax.f32 %v3757_v46, 0.0  ;;  %6428 = vmatpush3.bf16.msra.mxu1 %v6427_v51  ;;  %6460 = vmatpush3.bf16.msra.mxu0 %v6459_v49  ;;  %v9231_v27 = vpop.f32.mrb[18].mxu1  ;;  %v9233_v57 = vpop.f32.mrb[16].mxu0  ;;  %v6435_v51 = vpack.c.bf16 %v4322_v33, %v4321_v60  ;;  %v6467_v49 = vpack.c.bf16 %v4354_v62, %v4353_v61  ;;  %v4373_v54 = vld [vmem:[%s9926_s13 + $0x3c0] sm:$0xff]  ;;  %v4326_v9 = vld [vmem:[%s9926_s13 + $0x248] sm:$0xff] }
 0xe37   : > { %v3827_v63 = vpop.f32.mrb[19].mxu1  ;;  %v3904_v37 = vpop.f32.mrb[17].mxu0  ;;  %6430 = vmatprep.subr.bf16.mxu1 %v6429_v1  ;;  %6462 = vmatprep.subr.bf16.mxu0 %v6461_v2  ;;  %v6437_v1 = vpack.c.bf16 %v4340_v20, %v4339_v17  ;;  %v6469_v2 = vpack.c.bf16 %v4372_v31, %v4371_v21  ;;  %v3537_v46 = vsub.s32 4, %v6845_v5  ;;  %v6441_v60 = vpack.c.bf16 %v4342_v32, %v4341_v36  ;;  %v4344_v61 = vld [vmem:[%s9926_s13 + $0x2d8] sm:$0xff]  ;;  %v4375_v62 = vld [vmem:[%s9926_s13 + $0x3d0] sm:$0xff]  ;;  %v4345_v43 = vld [vmem:[%s9926_s13 + $0x2e0] sm:$0xff] }
 0xe38   : > { %v3828_v59 = vadd.f32 %v3827_v63, %v9194_v25  ;;  %v3905_v40 = vadd.f32 %v3904_v37, %v9214_v29  ;;  %4578 = vmatprep.mubr.f32.mxu1 %v4238_v11  ;;  %4653 = vmatprep.mubr.f32.mxu0 %v4240_v12  ;;  %v6473_v33 = vpack.c.bf16 %v4374_v35, %v4373_v54  ;;  %v4357_v11 = vld [vmem:[%s9926_s13 + $0x340] sm:$0xff]  ;;  %v4358_v12 = vld [vmem:[%s9926_s13 + $0x348] sm:$0xff]  ;;  %v4359_v20 = vld [vmem:[%s9926_s13 + $0x350] sm:$0xff] }
 0xe39   : > { %4579 = vmatmul.mubr.f32.gmra.mrb[32].mxu1 %v4237_v28  ;;  %4654 = vmatmul.mubr.f32.gmra.mrb[30].mxu0 %v4239_v15  ;;  %v4376_v28 = vld [vmem:[%s9926_s13 + $0x3d8] sm:$0xff]  ;;  %v3570_v15 = vrot.slane %v9244_v39, %v3537_v46  ;;  %v4346_v23 = vld [vmem:[%s9926_s13 + $0x2e8] sm:$0xff] }
 0xe3a   : > { %v4226_v47 = vmax.f32 %v3828_v59, 0.0  ;;  %v4228_v53 = vmax.f32 %v3905_v40, 0.0  ;;  %6432 = vmatpush3.bf16.msra.mxu1 %v6431_v52  ;;  %6464 = vmatpush3.bf16.msra.mxu0 %v6463_v22  ;;  %v9260_v34 = vpop.f32.mrb[20].mxu1  ;;  %v9262_v8 = vpop.f32.mrb[18].mxu0  ;;  %v4343_v52 = vld [vmem:[%s9926_s13 + $0x2d0] sm:$0xff]  ;;  %v3545_v22 = vsub.s32 6, %v6845_v5  ;;  %v6449_v35 = vpack.c.bf16 %v4346_v23, %v4345_v43 }
 0xe3b   : > { %v9270_v3 = vpop.f32.mrb[21].mxu1  ;;  %v9272_v18 = vpop.f32.mrb[19].mxu0  ;;  %6434 = vmatprep.subr.bf16.mxu1 %v6433_v0  ;;  %6466 = vmatprep.subr.bf16.mxu0 %v6465_v38  ;;  %v6443_v0 = vpack.c.bf16 %v4326_v9, %v4325_v24  ;;  %v6475_v38 = vpack.c.bf16 %v4358_v12, %v4357_v11  ;;  %v4327_v59 = vld [vmem:[%s9926_s13 + $0x250] sm:$0xff]  ;;  %v4328_v40 = vld [vmem:[%s9926_s13 + $0x258] sm:$0xff]  ;;  %v4378_v4 = vld [vmem:[%s9926_s13 + $0x3e8] sm:$0xff] }
 0xe3c   : > { %4723 = vmatprep.mubr.f32.mxu1 %v4226_v47  ;;  %4798 = vmatprep.mubr.f32.mxu0 %v4228_v53  ;;  %v3578_v17 = vrot.slane %v9244_v39, %v3545_v22  ;;  %v6445_v53 = vpack.c.bf16 %v4344_v61, %v4343_v52  ;;  %v6447_v32 = vpack.c.bf16 %v4328_v40, %v4327_v59  ;;  %v4347_v11 = vld [vmem:[%s9926_s13 + $0x2f0] sm:$0xff]  ;;  %v4348_v12 = vld [vmem:[%s9926_s13 + $0x2f8] sm:$0xff] }
 0xe3d   : > { %v4383_v5 = vld [vmem:[%s9926_s13 + $0x410] sm:$0xff] }
 0xe3e   : > { %6436 = vmatpush3.bf16.msra.mxu1 %v6435_v51  ;;  %6468 = vmatpush3.bf16.msra.mxu0 %v6467_v49  ;;  %v9295_v45 = vpop.f32.mrb[22].mxu1  ;;  %v4056_v55 = vpop.f32.mrb[20].mxu0  ;;  %v6477_v51 = vpack.c.bf16 %v4376_v28, %v4375_v62  ;;  %v4360_v49 = vld [vmem:[%s9926_s13 + $0x358] sm:$0xff]  ;;  %v4379_v62 = vld [vmem:[%s9926_s13 + $0x3f0] sm:$0xff] }
 0xe3f   : > { %v9304_v50 = vadd.f32 %v4056_v55, %v3562_v26  ;;  %v9306_v14 = vpop.f32.mrb[23].mxu1  ;;  %v9308_v6 = vpop.f32.mrb[21].mxu0  ;;  %6438 = vmatprep.subr.bf16.mxu1 %v6437_v1  ;;  %6470 = vmatprep.subr.bf16.mxu0 %v6469_v2  ;;  %v3582_v1 = vrot.slane %v9244_v39, %v3549_v41  ;;  %v4377_v2 = vld [vmem:[%s9926_s13 + $0x3e0] sm:$0xff]  ;;  %v6479_v54 = vpack.c.bf16 %v4360_v49, %v4359_v20  ;;  %v4330_v41 = vld [vmem:[%s9926_s13 + $0x268] sm:$0xff]  ;;  %v4380_v28 = vld [vmem:[%s9926_s13 + $0x3f8] sm:$0xff] }
 0xe40   : > { %v4361_v55 = vld [vmem:[%s9926_s13 + $0x360] sm:$0xff]  ;;  %v4332_v49 = vld [vmem:[%s9926_s13 + $0x278] sm:$0xff] }
 0xe42   : > { %6440 = vmatpush3.bf16.msra.mxu1 %v6439_v16  ;;  %6472 = vmatpush3.bf16.msra.mxu0 %v6471_v19  ;;  %v9332_v63 = vpop.f32.mrb[24].mxu1  ;;  %v4062_v37 = vpop.f32.mrb[22].mxu0 }
 0xe43   : > { %v9344_v21 = vadd.f32 %v4062_v37, %v3562_v26  ;;  %v9346_v31 = vpop.f32.mrb[25].mxu1  ;;  %v9348_v47 = vpop.f32.mrb[23].mxu0  ;;  %6442 = vmatprep.subr.bf16.mxu1 %v6441_v60  ;;  %6474 = vmatprep.subr.bf16.mxu0 %v6473_v33  ;;  %v3574_v26 = vrot.slane %v9244_v39, %v3541_v10  ;;  %v4329_v10 = vld [vmem:[%s9926_s13 + $0x260] sm:$0xff]  ;;  %v6481_v60 = vpack.c.bf16 %v4378_v4, %v4377_v2  ;;  %v4362_v33 = vld [vmem:[%s9926_s13 + $0x368] sm:$0xff]  ;;  %v4364_v4 = vld [vmem:[%s9926_s13 + $0x378] sm:$0xff] }
 0xe44   : > { %v3538_v37 = vrot.slane %v9150_v44, %v3537_v46  ;;  %v6451_v40 = vpack.c.bf16 %v4330_v41, %v4329_v10  ;;  %v6483_v20 = vpack.c.bf16 %v4362_v33, %v4361_v55  ;;  %v4363_v46 = vld [vmem:[%s9926_s13 + $0x370] sm:$0xff]  ;;  %v6485_v2 = vpack.c.bf16 %v4380_v28, %v4379_v62  ;;  %v4382_v10 = vld [vmem:[%s9926_s13 + $0x408] sm:$0xff]  ;;  %v4413_v55 = vld [vmem:[%s9926_s13 + $0x500] sm:$0xff] }
 0xe45   : > { %v4431_v62 = vld [vmem:[%s9926_s13 + $0x590] sm:$0xff]  ;;  %v4432_v28 = vld [vmem:[%s9926_s13 + $0x598] sm:$0xff] }
 0xe46   : > { %6444 = vmatpush3.bf16.msra.mxu1 %v6443_v0  ;;  %6476 = vmatpush3.bf16.msra.mxu0 %v6475_v38  ;;  %v4133_v56 = vpop.f32.mrb[26].mxu1  ;;  %v4210_v36 = vpop.f32.mrb[24].mxu0  ;;  %v3546_v0 = vrot.slane %v9150_v44, %v3545_v22 }
 0xe47   : > { %v9380_v16 = vadd.f32 %v4133_v56, %v3570_v15  ;;  %v9382_v19 = vadd.f32 %v4210_v36, %v3578_v17  ;;  %v4135_v24 = vpop.f32.mrb[27].mxu1  ;;  %v4212_v9 = vpop.f32.mrb[25].mxu0  ;;  %6446 = vmatprep.subr.bf16.mxu1 %v6445_v53  ;;  %6478 = vmatprep.subr.bf16.mxu0 %v6477_v51  ;;  %v6453_v53 = vpack.c.bf16 %v4348_v12, %v4347_v11  ;;  %v4331_v51 = vld [vmem:[%s9926_s13 + $0x270] sm:$0xff]  ;;  %v4397_v56 = vld [vmem:[%s9926_s13 + $0x480] sm:$0xff]  ;;  %v4400_v12 = vld [vmem:[%s9926_s13 + $0x498] sm:$0xff] }
 0xe48   : > { %v9393_v52 = vadd.f32 %v4135_v24, %v3574_v26  ;;  %v9395_v61 = vadd.f32 %v4212_v9, %v3582_v1  ;;  %v4414_v24 = vld [vmem:[%s9926_s13 + $0x508] sm:$0xff]  ;;  %v4399_v9 = vld [vmem:[%s9926_s13 + $0x490] sm:$0xff]  ;;  %v3903_v33 = vadd.f32 %v9233_v57, %v3546_v0  ;;  %v3911_v57 = vadd.f32 %v9272_v18, %v9214_v29 }
 0xe49   : > { %v3832_v29 = vadd.f32 %v9260_v34, %v3538_v37  ;;  %v3909_v18 = vadd.f32 %v9262_v8, %v3546_v0  ;;  %v4415_v8 = vld [vmem:[%s9926_s13 + $0x510] sm:$0xff]  ;;  %v4401_v0 = vld [vmem:[%s9926_s13 + $0x4a0] sm:$0xff] }
 0xe4a   : > { %6448 = vmatpush3.bf16.msra.mxu1 %v6447_v32  ;;  %6480 = vmatpush3.bf16.msra.mxu0 %v6479_v54  ;;  %v4139_v38 = vpop.f32.mrb[28].mxu1  ;;  %v4216_v59 = vpop.f32.mrb[26].mxu0  ;;  %v4429_v32 = vld [vmem:[%s9926_s13 + $0x580] sm:$0xff]  ;;  %v4430_v54 = vld [vmem:[%s9926_s13 + $0x588] sm:$0xff] }
 0xe4b   : > { %v9416_v44 = vadd.f32 %v4139_v38, %v3570_v15  ;;  %v9418_v22 = vadd.f32 %v4216_v59, %v3578_v17  ;;  %v4141_v43 = vpop.f32.mrb[29].mxu1  ;;  %v4218_v23 = vpop.f32.mrb[27].mxu0  ;;  %6450 = vmatprep.subr.bf16.mxu1 %v6449_v35  ;;  %6482 = vmatprep.subr.bf16.mxu0 %v6481_v60  ;;  %v4398_v15 = vld [vmem:[%s9926_s13 + $0x488] sm:$0xff]  ;;  %v4381_v35 = vld [vmem:[%s9926_s13 + $0x400] sm:$0xff]  ;;  %v3826_v60 = vadd.f32 %v9231_v27, %v3538_v37  ;;  %v4416_v37 = vld [vmem:[%s9926_s13 + $0x518] sm:$0xff] }
 0xe4c   : > { %v9429_v36 = vadd.f32 %v4141_v43, %v3574_v26  ;;  %v9431_v17 = vadd.f32 %v4218_v23, %v3582_v1  ;;  %v6455_v26 = vpack.c.bf16 %v4332_v49, %v4331_v51  ;;  %v6487_v1 = vpack.c.bf16 %v4364_v4, %v4363_v46  ;;  %v4434_v43 = vld [vmem:[%s9926_s13 + $0x5a8] sm:$0xff] }
 0xe4d   : > { %v6489_v41 = vpack.c.bf16 %v4398_v15, %v4397_v56  ;;  %v6521_v11 = vpack.c.bf16 %v4430_v54, %v4429_v32  ;;  %v3834_v27 = vadd.f32 %v9270_v3, %v9194_v25  ;;  %v9472_v38 = vrot.slane %v9244_v39, %v3525_v30  ;;  %v4384_v30 = vld [vmem:[%s9926_s13 + $0x418] sm:$0xff]  ;;  %v4385_v15 = vld [vmem:[%s9926_s13 + $0x420] sm:$0xff]  ;;  %v4386_v32 = vld [vmem:[%s9926_s13 + $0x428] sm:$0xff] }
 0xe4e   : > { %6452 = vmatpush3.bf16.msra.mxu1 %v6451_v40  ;;  %6484 = vmatpush3.bf16.msra.mxu0 %v6483_v20  ;;  %v9477_v59 = vrot.slane %v9244_v39, %v3533_v58  ;;  %v6491_v40 = vpack.c.bf16 %v4382_v10, %v4381_v35  ;;  %v6523_v20 = vpack.c.bf16 %v4414_v24, %v4413_v55  ;;  %v4225_v25 = vmax.f32 %v3826_v60, 0.0  ;;  %v4403_v55 = vld [vmem:[%s9926_s13 + $0x4b0] sm:$0xff]  ;;  %v4404_v24 = vld [vmem:[%s9926_s13 + $0x4b8] sm:$0xff] }
 0xe4f   : > { %6454 = vmatprep.subr.bf16.mxu1 %v6453_v53  ;;  %6486 = vmatprep.subr.bf16.mxu0 %v6485_v2  ;;  %v6493_v53 = vpack.c.bf16 %v4400_v12, %v4399_v9  ;;  %v6525_v51 = vpack.c.bf16 %v4432_v28, %v4431_v62  ;;  %v4227_v3 = vmax.f32 %v3903_v33, 0.0  ;;  %v4242_v58 = vmax.f32 %v3834_v27, 0.0  ;;  %v4435_v9 = vld [vmem:[%s9926_s13 + $0x5b0] sm:$0xff]  ;;  %v4436_v60 = vld [vmem:[%s9926_s13 + $0x5b8] sm:$0xff] }
 0xe50   : > { %v4244_v49 = vmax.f32 %v3911_v57, 0.0  ;;  %v3982_v46 = vadd.f32 %v9306_v14, %v9472_v38  ;;  %v4059_v34 = vadd.f32 %v9308_v6, %v9477_v59  ;;  %v4402_v14 = vld [vmem:[%s9926_s13 + $0x4a8] sm:$0xff]  ;;  %v4433_v6 = vld [vmem:[%s9926_s13 + $0x5a0] sm:$0xff]  ;;  %v4241_v23 = vmax.f32 %v3832_v29, 0.0  ;;  %v4387_v12 = vld [vmem:[%s9926_s13 + $0x430] sm:$0xff] }
 0xe51   : > { %v4243_v2 = vmax.f32 %v3909_v18, 0.0  ;;  %v6495_v4 = vpack.c.bf16 %v4384_v30, %v4383_v5  ;;  %v6527_v56 = vpack.c.bf16 %v4416_v37, %v4415_v8  ;;  %v6497_v10 = vpack.c.bf16 %v4402_v14, %v4401_v0  ;;  %v4388_v62 = vld [vmem:[%s9926_s13 + $0x438] sm:$0xff]  ;;  %v4419_v57 = vld [vmem:[%s9926_s13 + $0x530] sm:$0xff]  ;;  %v4389_v18 = vld [vmem:[%s9926_s13 + $0x440] sm:$0xff] }
 0xe52   : > { %6456 = vmatpush3.bf16.msra.mxu1 %v6455_v26  ;;  %6488 = vmatpush3.bf16.msra.mxu0 %v6487_v1  ;;  %v4230_v54 = vmax.f32 %v3982_v46, 0.0  ;;  %v4232_v35 = vmax.f32 %v4059_v34, 0.0  ;;  %v6529_v26 = vpack.c.bf16 %v4434_v43, %v4433_v6  ;;  %v4417_v1 = vld [vmem:[%s9926_s13 + $0x520] sm:$0xff]  ;;  %v6499_v33 = vpack.c.bf16 %v4386_v32, %v4385_v15  ;;  %v4390_v5 = vld [vmem:[%s9926_s13 + $0x448] sm:$0xff]  ;;  %v4407_v34 = vld [vmem:[%s9926_s13 + $0x4d0] sm:$0xff] }
 0xe53   : > { %6490 = vmatprep.subr.bf16.mxu1 %v6489_v41  ;;  %6522 = vmatprep.subr.bf16.mxu0 %v6521_v11  ;;  %v4418_v41 = vld [vmem:[%s9926_s13 + $0x528] sm:$0xff]  ;;  %v6501_v28 = vpack.c.bf16 %v4404_v24, %v4403_v55  ;;  %v6533_v27 = vpack.c.bf16 %v4436_v60, %v4435_v9  ;;  %v4408_v8 = vld [vmem:[%s9926_s13 + $0x4d8] sm:$0xff]  ;;  %v4439_v37 = vld [vmem:[%s9926_s13 + $0x5d0] sm:$0xff]  ;;  %v6507_v14 = vpack.c.bf16 %v4390_v5, %v4389_v18 }
 0xe54   : > { %v6531_v11 = vpack.c.bf16 %v4418_v41, %v4417_v1  ;;  %v4422_v46 = vld [vmem:[%s9926_s13 + $0x548] sm:$0xff]  ;;  %v4440_v0 = vld [vmem:[%s9926_s13 + $0x5d8] sm:$0xff]  ;;  %v4391_v43 = vld [vmem:[%s9926_s13 + $0x450] sm:$0xff] }
 0xe55   : > { %4724 = vmatmul.mubr.f32.vlgmr.msra.gmra.mrb[34].mxu1 %v4225_v25  ;;  %4799 = vmatmul.mubr.f32.vlgmr.msra.gmra.mrb[32].mxu0 %v4227_v3  ;;  %v4438_v25 = vld [vmem:[%s9926_s13 + $0x5c8] sm:$0xff]  ;;  %v6503_v3 = vpack.c.bf16 %v4388_v62, %v4387_v12  ;;  %v4424_v15 = vld [vmem:[%s9926_s13 + $0x558] sm:$0xff]  ;;  %v4409_v32 = vld [vmem:[%s9926_s13 + $0x4e0] sm:$0xff] }
 0xe56   : > { %4728 = vmatprep.mubr.f32.mxu1 %v4242_v58  ;;  %4803 = vmatprep.mubr.f32.mxu0 %v4244_v49  ;;  %v4421_v49 = vld [vmem:[%s9926_s13 + $0x540] sm:$0xff]  ;;  %v4394_v55 = vld [vmem:[%s9926_s13 + $0x468] sm:$0xff]  ;;  %v4412_v12 = vld [vmem:[%s9926_s13 + $0x4f8] sm:$0xff] }
 0xe57   : > { %6492 = vmatpush3.bf16.msra.mxu1 %v6491_v40  ;;  %6524 = vmatpush3.bf16.msra.mxu0 %v6523_v20  ;;  %v4420_v40 = vld [vmem:[%s9926_s13 + $0x538] sm:$0xff]  ;;  %v4405_v20 = vld [vmem:[%s9926_s13 + $0x4c0] sm:$0xff]  ;;  %v6539_v6 = vpack.c.bf16 %v4422_v46, %v4421_v49  ;;  %v4443_v62 = vld [vmem:[%s9926_s13 + $0x5f0] sm:$0xff] }
 0xe58   : > { %6494 = vmatprep.subr.bf16.mxu1 %v6493_v53  ;;  %6526 = vmatprep.subr.bf16.mxu0 %v6525_v51  ;;  %v4406_v53 = vld [vmem:[%s9926_s13 + $0x4c8] sm:$0xff]  ;;  %v4437_v51 = vld [vmem:[%s9926_s13 + $0x5c0] sm:$0xff]  ;;  %v6535_v29 = vpack.c.bf16 %v4420_v40, %v4419_v57  ;;  %v4395_v40 = vld [vmem:[%s9926_s13 + $0x470] sm:$0xff] }
 0xe59   : > { %4729 = vmatmul.mubr.f32.gmra.mrb[36].mxu1 %v4241_v23  ;;  %4804 = vmatmul.mubr.f32.gmra.mrb[34].mxu0 %v4243_v2  ;;  %v6505_v30 = vpack.c.bf16 %v4406_v53, %v4405_v20  ;;  %v6537_v58 = vpack.c.bf16 %v4438_v25, %v4437_v51  ;;  %v4392_v23 = vld [vmem:[%s9926_s13 + $0x458] sm:$0xff]  ;;  %v6509_v2 = vpack.c.bf16 %v4408_v8, %v4407_v34  ;;  %v4393_v41 = vld [vmem:[%s9926_s13 + $0x460] sm:$0xff]  ;;  %v4494_v5 = vld [vmem:[%s9926_s13 + $0x788] sm:$0xff] }
 0xe5a   : > { %4873 = vmatprep.mubr.f32.mxu1 %v4230_v54  ;;  %4948 = vmatprep.mubr.f32.mxu0 %v4232_v35  ;;  %v4410_v54 = vld [vmem:[%s9926_s13 + $0x4e8] sm:$0xff]  ;;  %v4441_v35 = vld [vmem:[%s9926_s13 + $0x5e0] sm:$0xff]  ;;  %v4396_v20 = vld [vmem:[%s9926_s13 + $0x478] sm:$0xff]  ;;  %v3554_v53 = vrot.slane %v9244_v39, %v6848_v7 }
 0xe5b   : > { %6496 = vmatpush3.bf16.msra.mxu1 %v6495_v4  ;;  %6528 = vmatpush3.bf16.msra.mxu0 %v6527_v56  ;;  %v6541_v4 = vpack.c.bf16 %v4440_v0, %v4439_v37  ;;  %v4423_v56 = vld [vmem:[%s9926_s13 + $0x550] sm:$0xff]  ;;  %v6513_v24 = vpack.c.bf16 %v4410_v54, %v4409_v32  ;;  %v4425_v60 = vld [vmem:[%s9926_s13 + $0x560] sm:$0xff]  ;;  %v4462_v7 = vld [vmem:[%s9926_s13 + $0x688] sm:$0xff]  ;;  %v3988_v0 = vadd.f32 %v9346_v31, %v9472_v38 }
 0xe5c   : > { %6498 = vmatprep.subr.bf16.mxu1 %v6497_v10  ;;  %6530 = vmatprep.subr.bf16.mxu0 %v6529_v26  ;;  %v4442_v10 = vld [vmem:[%s9926_s13 + $0x5e8] sm:$0xff]  ;;  %v6511_v26 = vpack.c.bf16 %v4392_v23, %v4391_v43  ;;  %v6543_v1 = vpack.c.bf16 %v4424_v15, %v4423_v56  ;;  %v4461_v18 = vld [vmem:[%s9926_s13 + $0x680] sm:$0xff]  ;;  %v3980_v49 = vadd.f32 %v9295_v45, %v3554_v53  ;;  %v4463_v43 = vld [vmem:[%s9926_s13 + $0x690] sm:$0xff] }
 0xe5d   : > { %v6545_v9 = vpack.c.bf16 %v4442_v10, %v4441_v35  ;;  %v4493_v39 = vld [vmem:[%s9926_s13 + $0x780] sm:$0xff]  ;;  %v6553_v46 = vpack.c.bf16 %v4462_v7, %v4461_v18  ;;  %v4446_v37 = vld [vmem:[%s9926_s13 + $0x608] sm:$0xff]  ;;  %v4464_v23 = vld [vmem:[%s9926_s13 + $0x698] sm:$0xff]  ;;  %v4246_v54 = vmax.f32 %v3988_v0, 0.0 }
 0xe5e   : > { %v6585_v34 = vpack.c.bf16 %v4494_v5, %v4493_v39  ;;  %v4445_v8 = vld [vmem:[%s9926_s13 + $0x600] sm:$0xff]  ;;  %v4495_v31 = vld [vmem:[%s9926_s13 + $0x790] sm:$0xff]  ;;  %v4448_v32 = vld [vmem:[%s9926_s13 + $0x618] sm:$0xff]  ;;  %v6557_v10 = vpack.c.bf16 %v4464_v23, %v4463_v43 }
 0xe5f   : > { %6500 = vmatpush3.bf16.msra.mxu1 %v6499_v33  ;;  %6532 = vmatpush3.bf16.msra.mxu0 %v6531_v11  ;;  %v4426_v33 = vld [vmem:[%s9926_s13 + $0x568] sm:$0xff]  ;;  %v4411_v11 = vld [vmem:[%s9926_s13 + $0x4f0] sm:$0xff]  ;;  %v4477_v45 = vld [vmem:[%s9926_s13 + $0x700] sm:$0xff]  ;;  %v6555_v38 = vpack.c.bf16 %v4446_v37, %v4445_v8 }
 0xe60   : > { %6502 = vmatprep.subr.bf16.mxu1 %v6501_v28  ;;  %6534 = vmatprep.subr.bf16.mxu0 %v6533_v27  ;;  %v4444_v28 = vld [vmem:[%s9926_s13 + $0x5f8] sm:$0xff]  ;;  %v6515_v27 = vpack.c.bf16 %v4394_v55, %v4393_v41  ;;  %v6547_v57 = vpack.c.bf16 %v4426_v33, %v4425_v60  ;;  %v6517_v51 = vpack.c.bf16 %v4412_v12, %v4411_v11  ;;  %v4447_v15 = vld [vmem:[%s9926_s13 + $0x610] sm:$0xff]  ;;  %v4466_v41 = vld [vmem:[%s9926_s13 + $0x6a8] sm:$0xff]  ;;  %v4247_v60 = vmax.f32 %v9344_v21, 0.0 }
 0xe61   : > { %v6549_v25 = vpack.c.bf16 %v4444_v28, %v4443_v62  ;;  %v4497_v55 = vld [vmem:[%s9926_s13 + $0x7a0] sm:$0xff]  ;;  %v6559_v33 = vpack.c.bf16 %v4448_v32, %v4447_v15  ;;  %v4450_v62 = vld [vmem:[%s9926_s13 + $0x628] sm:$0xff]  ;;  %v4234_v28 = vmax.f32 %v9393_v52, 0.0  ;;  %v4468_v52 = vld [vmem:[%s9926_s13 + $0x6b8] sm:$0xff] }
 0xe62   : > { %v4449_v12 = vld [vmem:[%s9926_s13 + $0x620] sm:$0xff]  ;;  %v4452_v18 = vld [vmem:[%s9926_s13 + $0x638] sm:$0xff]  ;;  %v4483_v5 = vld [vmem:[%s9926_s13 + $0x730] sm:$0xff] }
 0xe63   : > { %6504 = vmatpush3.bf16.msra.mxu1 %v6503_v3  ;;  %6536 = vmatpush3.bf16.msra.mxu0 %v6535_v29  ;;  %v4427_v3 = vld [vmem:[%s9926_s13 + $0x570] sm:$0xff]  ;;  %v4428_v29 = vld [vmem:[%s9926_s13 + $0x578] sm:$0xff]  ;;  %v4453_v0 = vld [vmem:[%s9926_s13 + $0x640] sm:$0xff] }
 0xe64   : > { %6506 = vmatprep.subr.bf16.mxu1 %v6505_v30  ;;  %6538 = vmatprep.subr.bf16.mxu0 %v6537_v58  ;;  %v6519_v30 = vpack.c.bf16 %v4396_v20, %v4395_v40  ;;  %v6551_v58 = vpack.c.bf16 %v4428_v29, %v4427_v3  ;;  %v4481_v40 = vld [vmem:[%s9926_s13 + $0x720] sm:$0xff]  ;;  %v4482_v20 = vld [vmem:[%s9926_s13 + $0x728] sm:$0xff]  ;;  %v4451_v29 = vld [vmem:[%s9926_s13 + $0x630] sm:$0xff] }
 0xe65   : > { %v6595_v3 = vpack.c.bf16 %v4482_v20, %v4481_v40  ;;  %v6567_v8 = vpack.c.bf16 %v4452_v18, %v4451_v29  ;;  %v4485_v43 = vld [vmem:[%s9926_s13 + $0x740] sm:$0xff]  ;;  %v4486_v23 = vld [vmem:[%s9926_s13 + $0x748] sm:$0xff]  ;;  %v4456_v15 = vld [vmem:[%s9926_s13 + $0x658] sm:$0xff]  ;;  %v4233_v18 = vmax.f32 %v9380_v16, 0.0 }
 0xe66   : > { %v4459_v20 = vld [vmem:[%s9926_s13 + $0x670] sm:$0xff] }
 0xe67   : > { %6508 = vmatpush3.bf16.msra.mxu1 %v6507_v14  ;;  %6540 = vmatpush3.bf16.msra.mxu0 %v6539_v6  ;;  %v4065_v14 = vadd.f32 %v9348_v47, %v9477_v59  ;;  %v4478_v6 = vld [vmem:[%s9926_s13 + $0x708] sm:$0xff]  ;;  %v4496_v47 = vld [vmem:[%s9926_s13 + $0x798] sm:$0xff]  ;;  %v4229_v59 = vmax.f32 %v3980_v49, 0.0 }
 0xe68   : > { %6510 = vmatprep.subr.bf16.mxu1 %v6509_v2  ;;  %6542 = vmatprep.subr.bf16.mxu0 %v6541_v4  ;;  %v4231_v2 = vmax.f32 %v9304_v50, 0.0  ;;  %v3986_v4 = vadd.f32 %v9332_v63, %v3554_v53  ;;  %v6587_v56 = vpack.c.bf16 %v4478_v6, %v4477_v45  ;;  %v4479_v50 = vld [vmem:[%s9926_s13 + $0x710] sm:$0xff]  ;;  %v4480_v63 = vld [vmem:[%s9926_s13 + $0x718] sm:$0xff]  ;;  %v4470_v49 = vld [vmem:[%s9926_s13 + $0x6c8] sm:$0xff] }
 0xe69   : > { %v4248_v35 = vmax.f32 %v4065_v14, 0.0  ;;  %v6591_v11 = vpack.c.bf16 %v4480_v63, %v4479_v50  ;;  %v4467_v53 = vld [vmem:[%s9926_s13 + $0x6b0] sm:$0xff]  ;;  %v4454_v14 = vld [vmem:[%s9926_s13 + $0x648] sm:$0xff]  ;;  %v4505_v63 = vld [vmem:[%s9926_s13 + $0x7e0] sm:$0xff] }
 0xe6a   : > { %v6565_v7 = vpack.c.bf16 %v4468_v52, %v4467_v53  ;;  %v4474_v50 = vld [vmem:[%s9926_s13 + $0x6e8] sm:$0xff] }
 0xe6b   : > { %6512 = vmatpush3.bf16.msra.mxu1 %v6511_v26  ;;  %6544 = vmatpush3.bf16.msra.mxu0 %v6543_v1  ;;  %v6589_v26 = vpack.c.bf16 %v4496_v47, %v4495_v31  ;;  %v4465_v1 = vld [vmem:[%s9926_s13 + $0x6a0] sm:$0xff]  ;;  %v4471_v31 = vld [vmem:[%s9926_s13 + $0x6d0] sm:$0xff]  ;;  %v4472_v47 = vld [vmem:[%s9926_s13 + $0x6d8] sm:$0xff] }
 0xe6c   : > { %6514 = vmatprep.subr.bf16.mxu1 %v6513_v24  ;;  %6546 = vmatprep.subr.bf16.mxu0 %v6545_v9  ;;  %v4498_v24 = vld [vmem:[%s9926_s13 + $0x7a8] sm:$0xff]  ;;  %v4245_v9 = vmax.f32 %v3986_v4, 0.0  ;;  %v6603_v4 = vpack.c.bf16 %v4486_v23, %v4485_v43  ;;  %v6573_v32 = vpack.c.bf16 %v4472_v47, %v4471_v31 }
 0xe6d   : > { %v6593_v21 = vpack.c.bf16 %v4498_v24, %v4497_v55  ;;  %v4457_v24 = vld [vmem:[%s9926_s13 + $0x660] sm:$0xff] }
 0xe6f   : > { %6516 = vmatpush3.bf16.msra.mxu1 %v6515_v27  ;;  %6548 = vmatpush3.bf16.msra.mxu0 %v6547_v57  ;;  %v4236_v27 = vmax.f32 %v9395_v61, 0.0  ;;  %v6561_v57 = vpack.c.bf16 %v4466_v41, %v4465_v1  ;;  %v4499_v61 = vld [vmem:[%s9926_s13 + $0x7b0] sm:$0xff]  ;;  %v4506_v1 = vld [vmem:[%s9926_s13 + $0x7e8] sm:$0xff] }
 0xe70   : > { %6518 = vmatprep.subr.bf16.mxu1 %v6517_v51  ;;  %6550 = vmatprep.subr.bf16.mxu0 %v6549_v25  ;;  %v4500_v51 = vld [vmem:[%s9926_s13 + $0x7b8] sm:$0xff]  ;;  %v6563_v25 = vpack.c.bf16 %v4450_v62, %v4449_v12  ;;  %v4490_v12 = vld [vmem:[%s9926_s13 + $0x768] sm:$0xff]  ;;  %v4475_v62 = vld [vmem:[%s9926_s13 + $0x6f0] sm:$0xff] }
 0xe71   : > { %v6597_v39 = vpack.c.bf16 %v4500_v51, %v4499_v61  ;;  %v4460_v61 = vld [vmem:[%s9926_s13 + $0x678] sm:$0xff]  ;;  %v4491_v51 = vld [vmem:[%s9926_s13 + $0x770] sm:$0xff] }
 0xe73   : > { %6520 = vmatpush3.bf16.msra.mxu1 %v6519_v30  ;;  %6552 = vmatpush3.bf16.msra.mxu0 %v6551_v58  ;;  %v4484_v30 = vld [vmem:[%s9926_s13 + $0x738] sm:$0xff]  ;;  %v4469_v58 = vld [vmem:[%s9926_s13 + $0x6c0] sm:$0xff] }
 0xe74   : > { %6554 = vmatprep.subr.bf16.mxu1 %v6553_v46  ;;  %6586 = vmatprep.subr.bf16.mxu0 %v6585_v34  ;;  %v4501_v46 = vld [vmem:[%s9926_s13 + $0x7c0] sm:$0xff]  ;;  %v4502_v34 = vld [vmem:[%s9926_s13 + $0x7c8] sm:$0xff]  ;;  %v6599_v37 = vpack.c.bf16 %v4484_v30, %v4483_v5  ;;  %v6569_v45 = vpack.c.bf16 %v4470_v49, %v4469_v58  ;;  %v4252_v5 = vmax.f32 %v9431_v17, 0.0  ;;  %v4249_v30 = vmax.f32 %v9416_v44, 0.0 }
 0xe75   : > { %v6601_v6 = vpack.c.bf16 %v4502_v34, %v4501_v46  ;;  %v4251_v58 = vmax.f32 %v9418_v22, 0.0  ;;  %v6709_v49 = vld [vmem:[%s6823_s27] sm:$0xff] }
 0xe76   : > { %4874 = vmatmul.mubr.f32.vlgmr.msra.gmra.mrb[38].mxu1 %v4229_v59  ;;  %4949 = vmatmul.mubr.f32.vlgmr.msra.gmra.mrb[36].mxu0 %v4231_v2  ;;  %v4504_v59 = vld [vmem:[%s9926_s13 + $0x7d8] sm:$0xff]  ;;  %v6571_v2 = vpack.c.bf16 %v4454_v14, %v4453_v0 }
 0xe77   : > { %4878 = vmatprep.mubr.f32.mxu1 %v4246_v54  ;;  %4953 = vmatprep.mubr.f32.mxu0 %v4248_v35  ;;  %v4487_v35 = vld [vmem:[%s9926_s13 + $0x750] sm:$0xff] }
 0xe78   : > { %6556 = vmatpush3.bf16.msra.mxu1 %v6555_v38  ;;  %6588 = vmatpush3.bf16.msra.mxu0 %v6587_v56  ;;  %v4503_v38 = vld [vmem:[%s9926_s13 + $0x7d0] sm:$0xff] }
 0xe79   : > { %6558 = vmatprep.subr.bf16.mxu1 %v6557_v10  ;;  %6590 = vmatprep.subr.bf16.mxu0 %v6589_v26  ;;  %v4455_v56 = vld [vmem:[%s9926_s13 + $0x650] sm:$0xff]  ;;  %v6605_v54 = vpack.c.bf16 %v4504_v59, %v4503_v38  ;;  %v4488_v10 = vld [vmem:[%s9926_s13 + $0x758] sm:$0xff]  ;;  %v4473_v26 = vld [vmem:[%s9926_s13 + $0x6e0] sm:$0xff] }
 0xe7a   : > { %4879 = vmatmul.mubr.f32.gmra.mrb[40].mxu1 %v4245_v9  ;;  %4954 = vmatmul.mubr.f32.gmra.mrb[38].mxu0 %v4247_v60  ;;  %v6575_v41 = vpack.c.bf16 %v4456_v15, %v4455_v56  ;;  %v6607_v55 = vpack.c.bf16 %v4488_v10, %v4487_v35  ;;  %v4458_v9 = vld [vmem:[%s9926_s13 + $0x668] sm:$0xff]  ;;  %v6577_v60 = vpack.c.bf16 %v4474_v50, %v4473_v26 }
 0xe7b   : > { %5023 = vmatprep.mubr.f32.mxu1 %v4234_v28  ;;  %5098 = vmatprep.mubr.f32.mxu0 %v4236_v27  ;;  %v4476_v28 = vld [vmem:[%s9926_s13 + $0x6f8] sm:$0xff]  ;;  %v4507_v27 = vld [vmem:[%s9926_s13 + $0x7f0] sm:$0xff] }
 0xe7c   : > { %6560 = vmatpush3.bf16.msra.mxu1 %v6559_v33  ;;  %6592 = vmatpush3.bf16.msra.mxu0 %v6591_v11  ;;  %v6609_v33 = vpack.c.bf16 %v4506_v1, %v4505_v63  ;;  %v4489_v11 = vld [vmem:[%s9926_s13 + $0x760] sm:$0xff]  ;;  %v6581_v53 = vpack.c.bf16 %v4476_v28, %v4475_v62 }
 0xe7d   : > { %6562 = vmatprep.subr.bf16.mxu1 %v6561_v57  ;;  %6594 = vmatprep.subr.bf16.mxu0 %v6593_v21  ;;  %v4508_v57 = vld [vmem:[%s9926_s13 + $0x7f8] sm:$0xff]  ;;  %v6579_v21 = vpack.c.bf16 %v4458_v9, %v4457_v24  ;;  %v6611_v40 = vpack.c.bf16 %v4490_v12, %v4489_v11 }
 0xe7e   : > { %v6613_v52 = vpack.c.bf16 %v4508_v57, %v4507_v27 }
 0xe80   : > { %6564 = vmatpush3.bf16.msra.mxu1 %v6563_v25  ;;  %6596 = vmatpush3.bf16.msra.mxu0 %v6595_v3  ;;  %v4492_v25 = vld [vmem:[%s9926_s13 + $0x778] sm:$0xff]  ;;  %v6583_v3 = vpack.c.bf16 %v4460_v61, %v4459_v20 }
 0xe81   : > { %6566 = vmatprep.subr.bf16.mxu1 %v6565_v7  ;;  %6598 = vmatprep.subr.bf16.mxu0 %v6597_v39  ;;  %v6615_v29 = vpack.c.bf16 %v4492_v25, %v4491_v51  ;;  %v4235_v7 = vmax.f32 %v9382_v19, 0.0  ;;  %v4250_v39 = vmax.f32 %v9429_v36, 0.0 }
 0xe84   : > { %6568 = vmatpush3.bf16.msra.mxu1 %v6567_v8  ;;  %6600 = vmatpush3.bf16.msra.mxu0 %v6599_v37 }
 0xe85   : > { %6570 = vmatprep.subr.bf16.mxu1 %v6569_v45  ;;  %6602 = vmatprep.subr.bf16.mxu0 %v6601_v6 }
 0xe88   : > { %6572 = vmatpush3.bf16.msra.mxu1 %v6571_v2  ;;  %6604 = vmatpush3.bf16.msra.mxu0 %v6603_v4 }
 0xe89   : > { %6574 = vmatprep.subr.bf16.mxu1 %v6573_v32  ;;  %6606 = vmatprep.subr.bf16.mxu0 %v6605_v54 }
 0xe8c   : > { %6576 = vmatpush3.bf16.msra.mxu1 %v6575_v41  ;;  %6608 = vmatpush3.bf16.msra.mxu0 %v6607_v55 }
 0xe8d   : > { %6578 = vmatprep.subr.bf16.mxu1 %v6577_v60  ;;  %6610 = vmatprep.subr.bf16.mxu0 %v6609_v33 }
 0xe90   : > { %6580 = vmatpush3.bf16.msra.mxu1 %v6579_v21  ;;  %6612 = vmatpush3.bf16.msra.mxu0 %v6611_v40 }
 0xe91   : > { %6582 = vmatprep.subr.bf16.mxu1 %v6581_v53  ;;  %6614 = vmatprep.subr.bf16.mxu0 %v6613_v52 }
 0xe94   : > { %6584 = vmatpush3.bf16.msra.mxu1 %v6583_v3  ;;  %6616 = vmatpush3.bf16.msra.mxu0 %v6615_v29 }
 0xe97   : > { %5024 = vmatmul.mubr.f32.vlgmr.msra.gmra.mrb[42].mxu1 %v4233_v18  ;;  %5099 = vmatmul.mubr.f32.vlgmr.msra.gmra.mrb[40].mxu0 %v4235_v7 }
 0xe98   : > { %5028 = vmatprep.mubr.f32.mxu1 %v4250_v39  ;;  %5103 = vmatprep.mubr.f32.mxu0 %v4252_v5 }
 0xe9b   : > { %5029 = vmatmul.mubr.f32.gmra.mrb[44].mxu1 %v4249_v30  ;;  %5104 = vmatmul.mubr.f32.gmra.mrb[42].mxu0 %v4251_v58 }
 0xe9c   : > { %6157 = vmatprep.mubr.msk.f32.mxu1 %vm10046_vm10, %v6709_v49  ;;  %v5589_v49 = vld [vmem:[%s9927_s14] ss:$0 sm:$0xff] }
 0xf08   : > { %v5720_v16 = vpop.f32.mrb[30].mxu1  ;;  %v5758_v46 = vpop.f32.mrb[28].mxu0 }
 0xf09   : > { %v5721_v19 = vpop.f32.mrb[31].mxu1  ;;  %v5759_v34 = vpop.f32.mrb[29].mxu0 }
 0xf0a   : > { %v5722_v36 = vadd.f32 %v5721_v19, %v5720_v16  ;;  %v5760_v8 = vadd.f32 %v5759_v34, %v5758_v46 }
 0xf0c   : > { %v4651_v17 = vadd.f32 %v5760_v8, %v5722_v36  ;;  %v5723_v37 = vpop.f32.mrb[32].mxu1  ;;  %v5761_v0 = vpop.f32.mrb[30].mxu0 }
 0xf0d   : > { %v5724_v14 = vpop.f32.mrb[33].mxu1  ;;  %v5762_v45 = vpop.f32.mrb[31].mxu0 }
 0xf0e   : > { %v5725_v6 = vadd.f32 %v5724_v14, %v5723_v37  ;;  %v5763_v44 = vadd.f32 %v5762_v45, %v5761_v0  ;;  %v6711_v37 = vld [vmem:[%s6823_s27 + $0x10] sm:$0xff]  ;;  %v6713_v0 = vld [vmem:[%s6823_s27 + $0x20] sm:$0xff]  ;;  %v6714_v14 = vld [vmem:[%s6823_s27 + $0x28] sm:$0xff] }
 0xf0f   : > { %v6715_v45 = vld [vmem:[%s6823_s27 + $0x30] sm:$0xff] }
 0xf10   : > { %v4656_v43 = vadd.f32 %v5763_v44, %v5725_v6  ;;  %v552_v6 = vld [vmem:[%s6818_s24] sm:$0xff] }
 0xf11   : > { %6185 = vmatprep.mubr.msk.f32.mxu0 %vm2055_vm2, %v552_v6 }
 0xf28   : > { %v5796_v22 = vpop.f32.mrb[34].mxu1  ;;  %v5834_v23 = vpop.f32.mrb[32].mxu0 }
 0xf29   : > { %v5797_v31 = vpop.f32.mrb[35].mxu1  ;;  %v5835_v47 = vpop.f32.mrb[33].mxu0 }
 0xf2a   : > { %v5798_v38 = vadd.f32 %v5797_v31, %v5796_v22  ;;  %v5836_v59 = vadd.f32 %v5835_v47, %v5834_v23 }
 0xf2c   : > { %v4726_v2 = vadd.f32 %v5798_v38, %v4651_v17  ;;  %v5799_v4 = vpop.f32.mrb[36].mxu1  ;;  %v5837_v56 = vpop.f32.mrb[34].mxu0 }
 0xf2d   : > { %v5800_v15 = vpop.f32.mrb[37].mxu1  ;;  %v5838_v32 = vpop.f32.mrb[35].mxu0 }
 0xf2e   : > { %v4801_v54 = vadd.f32 %v5836_v59, %v4726_v2  ;;  %v5801_v35 = vadd.f32 %v5800_v15, %v5799_v4  ;;  %v5839_v10 = vadd.f32 %v5838_v32, %v5837_v56  ;;  %v553_v32 = vld [vmem:[%s6818_s24 + $0x8] sm:$0xff] }
 0xf30   : > { %v4731_v26 = vadd.f32 %v5801_v35, %v4656_v43  ;;  %v555_v35 = vld [vmem:[%s6818_s24 + $0x18] sm:$0xff] }
 0xf32   : > { %v4806_v50 = vadd.f32 %v5839_v10, %v4731_v26  ;;  %v556_v10 = vld [vmem:[%s6818_s24 + $0x20] sm:$0xff]  ;;  %v557_v26 = vld [vmem:[%s6818_s24 + $0x28] sm:$0xff] }
 0xf49   : > { %v5872_v63 = vpop.f32.mrb[38].mxu1  ;;  %v5910_v1 = vpop.f32.mrb[36].mxu0 }
 0xf4a   : > { %v5873_v41 = vpop.f32.mrb[39].mxu1  ;;  %v5911_v55 = vpop.f32.mrb[37].mxu0 }
 0xf4b   : > { %v5874_v24 = vadd.f32 %v5873_v41, %v5872_v63  ;;  %v5912_v9 = vadd.f32 %v5911_v55, %v5910_v1  ;;  %v559_v63 = vld [vmem:[%s6818_s24 + $0x38] sm:$0xff] }
 0xf4d   : > { %v4876_v60 = vadd.f32 %v5874_v24, %v4801_v54  ;;  %v5875_v33 = vpop.f32.mrb[40].mxu1  ;;  %v5913_v11 = vpop.f32.mrb[38].mxu0  ;;  %v554_v54 = vld [vmem:[%s6818_s24 + $0x10] sm:$0xff] }
 0xf4e   : > { %v5876_v12 = vpop.f32.mrb[41].mxu1  ;;  %v5914_v62 = vpop.f32.mrb[39].mxu0 }
 0xf4f   : > { %v4951_v28 = vadd.f32 %v5912_v9, %v4876_v60  ;;  %v5877_v27 = vadd.f32 %v5876_v12, %v5875_v33  ;;  %v5915_v57 = vadd.f32 %v5914_v62, %v5913_v11 }
 0xf51   : > { %v4881_v21 = vadd.f32 %v5877_v27, %v4806_v50  ;;  %v558_v50 = vld [vmem:[%s6818_s24 + $0x30] sm:$0xff] }
 0xf53   : > { %v4956_v40 = vadd.f32 %v5915_v57, %v4881_v21 }
 0xf6a   : > { %v5948_v20 = vpop.f32.mrb[42].mxu1  ;;  %v5986_v53 = vpop.f32.mrb[40].mxu0 }
 0xf6b   : > { %v5949_v52 = vpop.f32.mrb[43].mxu1  ;;  %v5987_v61 = vpop.f32.mrb[41].mxu0 }
 0xf6c   : > { %v5950_v51 = vadd.f32 %v5949_v52, %v5948_v20  ;;  %v5988_v25 = vadd.f32 %v5987_v61, %v5986_v53 }
 0xf6e   : > { %v5026_v3 = vadd.f32 %v5950_v51, %v4951_v28  ;;  %v5951_v29 = vpop.f32.mrb[44].mxu1  ;;  %v5989_v18 = vpop.f32.mrb[42].mxu0 }
 0xf6f   : > { %v5952_v7 = vpop.f32.mrb[45].mxu1  ;;  %v5990_v39 = vpop.f32.mrb[43].mxu0 }
 0xf70   : > { %v5101_v5 = vadd.f32 %v5988_v25, %v5026_v3  ;;  %v5953_v30 = vadd.f32 %v5952_v7, %v5951_v29  ;;  %v5991_v58 = vadd.f32 %v5990_v39, %v5989_v18 }
 0xf72   : > { %v5109_v16 = vadd.f32 %v5101_v5, %v8674_v13  ;;  %v5031_v46 = vadd.f32 %v5953_v30, %v4956_v40  ;;  %v6710_v13 = vld [vmem:[%s6823_s27 + $0x8] sm:$0xff] }
 0xf74   : > { %v5118_v19 = vadd.f32 %v5589_v49, %v5109_v16  ;;  %v5106_v34 = vadd.f32 %v5991_v58, %v5031_v46 }
 0xf76   : > { %5120 = vst.msk [vmem:[#allocation2] sm:$0xff] %vm10047_vm8, %v5118_v19  ;;  %v5110_v36 = vadd.f32 %v5106_v34, %v8671_v48  ;;  %v6712_v48 = vld [vmem:[%s6823_s27 + $0x18] sm:$0xff] }
 0xf78   : > { %v5119_v8 = vadd.f32 %v5589_v49, %v5110_v36 }
 0xf7a   : > { %5121 = vst.msk [vmem:[#allocation2 + $0x8] sm:$0xff] %vm10048_vm13, %v5119_v8  ;;  %v6617_v17 = vpack.c.bf16 %v5119_v8, %v5118_v19 }
 0xf7c   : > { %6619 = vmatprep.subr.msk.bf16.mxu1 %vm7748_vm6, %v6617_v17 }
 0xf7d   : > { %6622 = vmatpush3.bf16.xpose.msk.msra.mxu1 %vm7748_vm6, %v6617_v17  ;;  %vm10054_vm6 = vmmov %vm10026_vm0 }
 0xf84   : > { %6158 = vmatmul.mubr.msk.f32.vlgmr.msra.gmra.mrb[46].mxu1 %vm10026_vm0, %v6710_v13 }
 0xf85   : > { %6160 = vmatprep.mubr.msk.f32.mxu1 %vm10049_vm1, %v6711_v37 }
 0xf88   : > { %6161 = vmatmul.mubr.msk.f32.gmra.mrb[48].mxu1 %vm10050_vm9, %v6712_v48 }
 0xf89   : > { %6163 = vmatprep.mubr.msk.f32.mxu1 %vm10051_vm5, %v6713_v0 }
 0xf8c   : > { %6164 = vmatmul.mubr.msk.f32.gmra.mrb[50].mxu1 %vm10052_vm7, %v6714_v14 }
 0xf8d   : > { %6166 = vmatprep.mubr.msk.f32.mxu1 %vm10053_vm14, %v6715_v45 }
 0xf90   : > { %6167 = vmatmul.mubr.msk.f32.gmra.mrb[52].mxu1 %vm10054_vm6, %v6716_v42 }
0x1057   : > { %v6159_v44 = vpop.f32.mrb[46].mxu1 }
0x1058   : > { %v5218_v43 = vpop.f32.mrb[47].mxu1 }
0x1059   : > { %v6623_v22 = vpack.c.bf16 %v6159_v44, %v5218_v43 }
0x105b   : > { %v6162_v23 = vpop.f32.mrb[48].mxu1  ;;  %6624 = vmatprep.subr.bf16.mxu0 %v6623_v22 }
0x105c   : > { %v5228_v31 = vpop.f32.mrb[49].mxu1  ;;  %6626 = vmatpush3.bf16.msra.mxu0 %v6623_v22 }
0x105d   : > { %v6627_v47 = vpack.c.bf16 %v6162_v23, %v5228_v31 }
0x105f   : > { %v6165_v38 = vpop.f32.mrb[50].mxu1  ;;  %6628 = vmatprep.subr.bf16.mxu0 %v6627_v47 }
0x1060   : > { %v5238_v59 = vpop.f32.mrb[51].mxu1  ;;  %6630 = vmatpush3.bf16.msra.mxu0 %v6627_v47 }
0x1061   : > { %v6631_v2 = vpack.c.bf16 %v6165_v38, %v5238_v59 }
0x1063   : > { %v6168_v4 = vpop.f32.mrb[52].mxu1  ;;  %6632 = vmatprep.subr.bf16.mxu0 %v6631_v2 }
0x1064   : > { %v5248_v56 = vpop.f32.mrb[53].mxu1  ;;  %6634 = vmatpush3.bf16.msra.mxu0 %v6631_v2 }
0x1065   : > { %v6635_v15 = vpack.c.bf16 %v6168_v4, %v5248_v56 }
0x1067   : > { %6636 = vmatprep.subr.bf16.mxu0 %v6635_v15 }
0x1068   : > { %6638 = vmatpush3.bf16.msra.mxu0 %v6635_v15 }
0x106b   : > { %6186 = vmatmul.mubr.msk.f32.vlgmr.msra.gmra.mrb[44].mxu0 %vm2055_vm2, %v553_v32 }
0x106c   : > { %6188 = vmatprep.mubr.msk.f32.mxu0 %vm2055_vm2, %v554_v54 }
0x106f   : > { %6189 = vmatmul.mubr.msk.f32.gmra.mrb[46].mxu0 %vm2055_vm2, %v555_v35 }
0x1070   : > { %6191 = vmatprep.mubr.msk.f32.mxu0 %vm2055_vm2, %v556_v10 }
0x1073   : > { %6192 = vmatmul.mubr.msk.f32.gmra.mrb[48].mxu0 %vm2055_vm2, %v557_v26 }
0x1074   : > { %6194 = vmatprep.mubr.msk.f32.mxu0 %vm2055_vm2, %v558_v50 }
0x1077   : > { %6195 = vmatmul.mubr.msk.f32.gmra.mrb[50].mxu0 %vm2055_vm2, %v559_v63  ;;  %vm10059_vm2 = vmmov %vm10055_vm3 }
0x1078   : > { %vm10060_vm15 = vmmov %vm10059_vm2 }
0x1079   : > { %vm10061_vm10 = vmmov %vm10059_vm2 }
0x107a   : > { %vm10062_vm8 = vmmov %vm10059_vm2 }
0x113e   : > { %v6187_v1 = vpop.f32.mrb[44].mxu0 }
0x113f   : > { %v5387_v41 = vmax.f32 %v6187_v1, 0.0  ;;  %v5347_v55 = vpop.f32.mrb[45].mxu0 }
0x1140   : > { %v5386_v24 = vmax.f32 %v5347_v55, 0.0 }
0x1141   : > { %5395 = vst.msk [vmem:[%s6833_s18 + $0x8] sm:$0xff] %vm10055_vm3, %v5387_v41 }
0x1142   : > { %5394 = vst.msk [vmem:[%s6833_s18] sm:$0xff] %vm10056_vm12, %v5386_v24  ;;  %v6190_v9 = vpop.f32.mrb[46].mxu0 }
0x1143   : > { %v5389_v60 = vmax.f32 %v6190_v9, 0.0  ;;  %v5357_v33 = vpop.f32.mrb[47].mxu0 }
0x1144   : > { %v5388_v11 = vmax.f32 %v5357_v33, 0.0 }
0x1145   : > { %5397 = vst.msk [vmem:[%s6833_s18 + $0x18] sm:$0xff] %vm10057_vm4, %v5389_v60 }
0x1146   : > { %5396 = vst.msk [vmem:[%s6833_s18 + $0x10] sm:$0xff] %vm10058_vm11, %v5388_v11  ;;  %v6193_v12 = vpop.f32.mrb[48].mxu0 }
0x1147   : > { %v5391_v62 = vmax.f32 %v6193_v12, 0.0  ;;  %v5367_v28 = vpop.f32.mrb[49].mxu0 }
0x1148   : > { %v5390_v27 = vmax.f32 %v5367_v28, 0.0 }
0x1149   : > { %5399 = vst.msk [vmem:[%s6833_s18 + $0x28] sm:$0xff] %vm10059_vm2, %v5391_v62 }
0x114a   : > { %5398 = vst.msk [vmem:[%s6833_s18 + $0x20] sm:$0xff] %vm10060_vm15, %v5390_v27  ;;  %v6196_v57 = vpop.f32.mrb[50].mxu0 }
0x114b   : > { %v5393_v21 = vmax.f32 %v6196_v57, 0.0  ;;  %v5377_v40 = vpop.f32.mrb[51].mxu0 }
0x114c   : > { %v5392_v20 = vmax.f32 %v5377_v40, 0.0 }
0x114d   : > { %5401 = vst.msk [vmem:[%s6833_s18 + $0x38] sm:$0xff] %vm10061_vm10, %v5393_v21 }
0x114e   : > { %5400 = vst.msk [vmem:[%s6833_s18 + $0x30] sm:$0xff] %vm10062_vm8, %v5392_v20 }
0x114f PF: > { %s10063_s24 = sld [smem:[#allocation3_spill]] }
0x1155   : > { %s25_s18 = sadd.s32 1, %s10063_s24  }
0x1156   : > { %p22_p5 = scmp.ge.s32.totalorder %s25_s18, 5  }
0x1158   :  { %24 = sbr.rel (!%p22_p5) target bundleno = 1 (0x1), region = 136 }

</bundles_post_ra>
